<compile_context>
chip_gen: v7x
topology: tpu7x:2x2x1
jax: 0.10.0
libtpu: 0.0.40
codegen_flags: <defaults>
</compile_context>

<pallas_src>
import jax
import jax.numpy as jnp
from jax.experimental import pallas as pl
from jax.experimental.pallas import tpu as pltpu

# ---------------- scaled-down ViT config (same structure as vit-base) -------
IMG        = 48
PATCH      = 16
GRID_HW    = IMG // PATCH            # 3
N_PATCH    = GRID_HW * GRID_HW       # 9
SEQ        = N_PATCH + 1             # 10 tokens (CLS + patches)
DIM        = 32
HEADS      = 2
DHEAD      = DIM // HEADS            # 16
MLP_DIM    = 4 * DIM                 # 128
LAYERS     = 2
PATCH_FEAT = 3 * PATCH * PATCH       # 768
LN_EPS     = 1e-12
BN_EPS     = 1e-5

# mapping-head geometry: Conv2d(1,3,(3,3),stride=2) -> ReLU -> BN -> MaxPool(4,4)
HC = (SEQ - 3) // 2 + 1              # 4   conv output height
WC = (DIM - 3) // 2 + 1              # 15  conv output width
HP = (HC - 4) // 4 + 1               # 1   pooled height (floor mode)
WP = (WC - 4) // 4 + 1               # 3   pooled width  (floor mode)
OUT_FEAT = 3 * HP * WP               # 9


def _ln(x, g, b):
    """LayerNorm over the last (feature / lane) axis."""
    mu = jnp.mean(x, axis=-1, keepdims=True)
    xc = x - mu
    var = jnp.mean(xc * xc, axis=-1, keepdims=True)
    return xc * jax.lax.rsqrt(var + LN_EPS) * g + b


# --------------------- single fused per-batch-element kernel -----------------
def _fused_vit_kernel(patches_ref, pw_ref, add_ref,
                      ln1g_ref, ln1b_ref, wqkv_ref, bqkv_ref, wo_ref, bo_ref,
                      ln2g_ref, ln2b_ref, w1_ref, b1_ref, w2_ref, b2_ref,
                      lnfg_ref, lnfb_ref,
                      cw_ref, cb_ref, bns_ref, bnh_ref, o_ref):
    # ---- patch embedding + CLS/pos (row 0 of `patches` is zeros; add_ref
    #      already carries cls+pos for row 0 and patch_bias+pos for rows 1..) ----
    h = jnp.dot(patches_ref[0], pw_ref[...],
                preferred_element_type=jnp.float32) + add_ref[...]          # (SEQ, DIM)

    # ---- transformer encoder, fully unrolled (pre-LN, like HF ViTLayer) ----
    for l in range(LAYERS):
        hn = _ln(h, ln1g_ref[l:l + 1, :], ln1b_ref[l:l + 1, :])
        attn = bo_ref[l:l + 1, :]                                           # (1, DIM)
        for hd in range(HEADS):
            def proj(which, _hn=hn, _l=l, _hd=hd):
                idx = which * HEADS + _hd
                w = wqkv_ref[_l, idx]                                       # (DIM, DHEAD)
                b = bqkv_ref[_l * 3 * HEADS + idx:_l * 3 * HEADS + idx + 1, :]
                return jnp.dot(_hn, w, preferred_element_type=jnp.float32) + b
            q, k, v = proj(0), proj(1), proj(2)                             # (SEQ, DHEAD)
            s = jax.lax.dot_general(q, k, (((1,), (1,)), ((), ())),
                                    preferred_element_type=jnp.float32)
            s = s * (DHEAD ** -0.5)                                         # (SEQ, SEQ)
            p = jnp.exp(s - jnp.max(s, axis=-1, keepdims=True))
            p = p / jnp.sum(p, axis=-1, keepdims=True)
            ctx = jnp.dot(p, v, preferred_element_type=jnp.float32)         # (SEQ, DHEAD)
            attn = attn + jnp.dot(ctx, wo_ref[l, hd],
                                  preferred_element_type=jnp.float32)       # (SEQ, DIM)
        h = h + attn                                                        # residual
        hn = _ln(h, ln2g_ref[l:l + 1, :], ln2b_ref[l:l + 1, :])
        mid = jnp.dot(hn, w1_ref[l], preferred_element_type=jnp.float32) + b1_ref[l:l + 1, :]
        # TODO(synk): HF ViT uses exact erf-GELU; tanh approximation used here.
        mid = jax.nn.gelu(mid, approximate=True)
        h = h + jnp.dot(mid, w2_ref[l], preferred_element_type=jnp.float32) + b2_ref[l:l + 1, :]

    last = _ln(h, lnfg_ref[...], lnfb_ref[...])                             # (SEQ, DIM)

    # ---- mapping head: Conv2d(1,3,3x3,s=2) -> ReLU -> BN(eval) -> MaxPool(4,4) ----
    # Lane shifts (+1, +2) are done with tiny in-kernel one-hot matmuls (avoids
    # lane-unaligned slices); sublane shifts are plain static slices.  The conv
    # stride-2 subsample and the 4x4 MaxPool are handled by masking the
    # un-strided conv output (iota masks) and taking window maxima.
    a_i = jax.lax.broadcasted_iota(jnp.int32, (DIM, DIM), 0)
    b_i = jax.lax.broadcasted_iota(jnp.int32, (DIM, DIM), 1)
    xs = [last]                                                             # dj = 0
    for dj in (1, 2):
        shift = (a_i == b_i + dj).astype(jnp.float32)                       # shift[l+dj, l] = 1
        xs.append(jnp.dot(last, shift, preferred_element_type=jnp.float32)) # [:, l] = last[:, l+dj]
    taps = [xs[dj][di:di + 2 * HC, :] for di in range(3) for dj in range(3)]  # 9 x (8, DIM)

    row_i = jax.lax.broadcasted_iota(jnp.int32, (2 * HC, DIM), 0)
    col_i = jax.lax.broadcasted_iota(jnp.int32, (2 * HC, DIM), 1)
    even = jnp.logical_and((row_i & 1) == 0, (col_i & 1) == 0)              # stride-2 lattice
    lane_out = jax.lax.broadcasted_iota(jnp.int32, (1, OUT_FEAT), 1)
    neg = jnp.float32(-3e38)
    out = jnp.zeros((1, OUT_FEAT), jnp.float32)
    for c in range(3):
        acc = jnp.zeros((2 * HC, DIM), jnp.float32)
        for t in range(9):                                                  # conv accumulate
            acc = acc + cw_ref[c * 9 + t] * taps[t]
        val = jnp.maximum(acc + cb_ref[c], 0.0) * bns_ref[c] + bnh_ref[c]   # ReLU + BN (eval)
        val = jnp.where(even, val, neg)
        for qdx in range(WP):                                               # MaxPool2d(4,4)
            win = jnp.where(jnp.logical_and(col_i >= 8 * qdx,
                                            col_i < 8 * (qdx + 1)), val, neg)
            m = jnp.max(jnp.max(win, axis=1, keepdims=True), axis=0, keepdims=True)
            out = jnp.where(lane_out == (c * WP + qdx), m, out)
    o_ref[0] = out                                                          # (1, OUT_FEAT)


# ------------------------------ parameter setup -------------------------------
def init_params(key):
    ks = iter(jax.random.split(key, 32))
    nrm = lambda shape, s=0.02: (s * jax.random.normal(next(ks), shape)).astype(jnp.float32)
    return {
        "patch_w": nrm((PATCH_FEAT, DIM)), "patch_b": nrm((DIM,)),
        "cls": nrm((DIM,)), "pos": nrm((SEQ, DIM)),
        "ln1_g": jnp.ones((LAYERS, DIM), jnp.float32), "ln1_b": nrm((LAYERS, DIM)),
        # per-(q/k/v, head) projection weights: wqkv[l, which*HEADS + hd] is (DIM, DHEAD)
        "wqkv": nrm((LAYERS, 3 * HEADS, DIM, DHEAD)),
        "bqkv": nrm((LAYERS * 3 * HEADS, DHEAD)),
        "wo": nrm((LAYERS, HEADS, DHEAD, DIM)), "bo": nrm((LAYERS, DIM)),
        "ln2_g": jnp.ones((LAYERS, DIM), jnp.float32), "ln2_b": nrm((LAYERS, DIM)),
        "w1": nrm((LAYERS, DIM, MLP_DIM)), "b1": nrm((LAYERS, MLP_DIM)),
        "w2": nrm((LAYERS, MLP_DIM, DIM)), "b2": nrm((LAYERS, DIM)),
        "lnf_g": jnp.ones((1, DIM), jnp.float32), "lnf_b": nrm((1, DIM)),
        "conv_w": nrm((3, 1, 3, 3), 0.2), "conv_b": nrm((3,), 0.2),
        "bn_gamma": 1.0 + nrm((3,), 0.1), "bn_beta": nrm((3,), 0.1),
        "bn_mean": nrm((3,), 0.1), "bn_var": 1.0 + jnp.abs(nrm((3,), 0.1)),
    }


def _full_spec(shape):
    nd = len(shape)
    return pl.BlockSpec(shape, lambda b, _nd=nd: (0,) * _nd)


# --------------------------------- forward -----------------------------------
def vit_encoder_forward(params, x):
    # x: (B, 3, IMG, IMG) float32 in [0, 255] (NCHW, like the torch module).
    bsz = x.shape[0]
    # ViTFeatureExtractor: rescale(1/255) + normalize(mean=0.5, std=0.5)
    pix = (x / 255.0 - 0.5) / 0.5
    # patch extraction (pure layout plumbing, left to XLA)
    patches = pix.reshape(bsz, 3, GRID_HW, PATCH, GRID_HW, PATCH)
    patches = patches.transpose(0, 2, 4, 1, 3, 5).reshape(bsz, N_PATCH, PATCH_FEAT)
    patches_ext = jnp.concatenate(
        [jnp.zeros((bsz, 1, PATCH_FEAT), jnp.float32), patches], axis=1)    # row 0 = CLS slot

    # fold CLS token / position embeddings / patch bias into one additive slab
    add_row = params["pos"] + params["patch_b"][None, :]
    add_row = add_row.at[0].set(params["cls"] + params["pos"][0])

    # eval-mode BatchNorm folded to per-channel scale/shift; conv weight as 1-D SMEM
    bn_scale = params["bn_gamma"] / jnp.sqrt(params["bn_var"] + BN_EPS)
    bn_shift = params["bn_beta"] - params["bn_mean"] * bn_scale
    conv_w_flat = params["conv_w"].reshape(3 * 9)

    smem = pl.BlockSpec(memory_space=pltpu.MemorySpace.SMEM)
    in_specs = [
        pl.BlockSpec((1, SEQ, PATCH_FEAT), lambda b: (b, 0, 0)),            # patches_ext
        _full_spec((PATCH_FEAT, DIM)),                                      # patch_w
        _full_spec((SEQ, DIM)),                                             # add_row
        _full_spec((LAYERS, DIM)), _full_spec((LAYERS, DIM)),               # ln1 g/b
        _full_spec((LAYERS, 3 * HEADS, DIM, DHEAD)),                        # wqkv
        _full_spec((LAYERS * 3 * HEADS, DHEAD)),                            # bqkv
        _full_spec((LAYERS, HEADS, DHEAD, DIM)),                            # wo
        _full_spec((LAYERS, DIM)),                                          # bo
        _full_spec((LAYERS, DIM)), _full_spec((LAYERS, DIM)),               # ln2 g/b
        _full_spec((LAYERS, DIM, MLP_DIM)), _full_spec((LAYERS, MLP_DIM)),  # w1 / b1
        _full_spec((LAYERS, MLP_DIM, DIM)), _full_spec((LAYERS, DIM)),      # w2 / b2
        _full_spec((1, DIM)), _full_spec((1, DIM)),                         # final LN g/b
        smem, smem, smem, smem,                                             # conv_w, conv_b, bn s/s
    ]
    out = pl.pallas_call(
        _fused_vit_kernel,
        grid=(bsz,),
        in_specs=in_specs,
        out_specs=pl.BlockSpec((1, 1, OUT_FEAT), lambda b: (b, 0, 0)),
        out_shape=jax.ShapeDtypeStruct((bsz, 1, OUT_FEAT), jnp.float32),
        compiler_params=pltpu.CompilerParams(dimension_semantics=("parallel",)),
    )(patches_ext, params["patch_w"], add_row,
      params["ln1_g"], params["ln1_b"],
      params["wqkv"], params["bqkv"], params["wo"], params["bo"],
      params["ln2_g"], params["ln2_b"],
      params["w1"], params["b1"], params["w2"], params["b2"],
      params["lnf_g"], params["lnf_b"],
      conv_w_flat, params["conv_b"], bn_scale, bn_shift)
    return out.reshape(bsz, OUT_FEAT)                                       # (B, 3*HP*WP)


if __name__ == "__main__":
    key = jax.random.PRNGKey(0)
    pkey, xkey = jax.random.split(key)
    params = init_params(pkey)
    x = jax.random.uniform(xkey, (2, 3, IMG, IMG), jnp.float32, 0.0, 255.0)
    fwd = jax.jit(vit_encoder_forward)
    out = fwd(params, x)
    jax.block_until_ready(out)
    assert out.shape == (2, OUT_FEAT), out.shape
    assert bool(jnp.all(jnp.isfinite(out)))
    print("KERNEL_OK")
</pallas_src>

<mosaic_0001>
module attributes {stable_mosaic.version = 11 : i64} {
  func.func @_fused_vit_kernel(%arg0: i32, %arg1: memref<1x10x768xf32, #tpu.memory_space<vmem>>, %arg2: memref<768x32xf32, #tpu.memory_space<vmem>>, %arg3: memref<10x32xf32, #tpu.memory_space<vmem>>, %arg4: memref<2x32xf32, #tpu.memory_space<vmem>>, %arg5: memref<2x32xf32, #tpu.memory_space<vmem>>, %arg6: memref<2x6x32x16xf32, #tpu.memory_space<vmem>>, %arg7: memref<12x16xf32, #tpu.memory_space<vmem>>, %arg8: memref<2x2x16x32xf32, #tpu.memory_space<vmem>>, %arg9: memref<2x32xf32, #tpu.memory_space<vmem>>, %arg10: memref<2x32xf32, #tpu.memory_space<vmem>>, %arg11: memref<2x32xf32, #tpu.memory_space<vmem>>, %arg12: memref<2x32x128xf32, #tpu.memory_space<vmem>>, %arg13: memref<2x128xf32, #tpu.memory_space<vmem>>, %arg14: memref<2x128x32xf32, #tpu.memory_space<vmem>>, %arg15: memref<2x32xf32, #tpu.memory_space<vmem>>, %arg16: memref<1x32xf32, #tpu.memory_space<vmem>>, %arg17: memref<1x32xf32, #tpu.memory_space<vmem>>, %arg18: memref<27xf32, #tpu.memory_space<smem>>, %arg19: memref<3xf32, #tpu.memory_space<smem>>, %arg20: memref<3xf32, #tpu.memory_space<smem>>, %arg21: memref<3xf32, #tpu.memory_space<smem>>, %arg22: memref<1x1x9xf32, #tpu.memory_space<vmem>>) attributes {dimension_semantics = [#tpu.dimension_semantics<parallel>], iteration_bounds = array<i64: 2>, scalar_prefetch = 0 : i64, scratch_operands = 0 : i64, tpu.core_type = #tpu.core_type<tc>, window_params = [{transform_indices = @transform_0, window_bounds = array<i64: 1, 10, 768>}, {pipeline_mode = #tpu.pipeline_mode<synchronous>, transform_indices = @transform_1, window_bounds = array<i64: 768, 32>}, {pipeline_mode = #tpu.pipeline_mode<synchronous>, transform_indices = @transform_2, window_bounds = array<i64: 10, 32>}, {pipeline_mode = #tpu.pipeline_mode<synchronous>, transform_indices = @transform_3, window_bounds = array<i64: 2, 32>}, {pipeline_mode = #tpu.pipeline_mode<synchronous>, transform_indices = @transform_4, window_bounds = array<i64: 2, 32>}, {pipeline_mode = #tpu.pipeline_mode<synchronous>, transform_indices = @transform_5, window_bounds = array<i64: 2, 6, 32, 16>}, {pipeline_mode = #tpu.pipeline_mode<synchronous>, transform_indices = @transform_6, window_bounds = array<i64: 12, 16>}, {pipeline_mode = #tpu.pipeline_mode<synchronous>, transform_indices = @transform_7, window_bounds = array<i64: 2, 2, 16, 32>}, {pipeline_mode = #tpu.pipeline_mode<synchronous>, transform_indices = @transform_8, window_bounds = array<i64: 2, 32>}, {pipeline_mode = #tpu.pipeline_mode<synchronous>, transform_indices = @transform_9, window_bounds = array<i64: 2, 32>}, {pipeline_mode = #tpu.pipeline_mode<synchronous>, transform_indices = @transform_10, window_bounds = array<i64: 2, 32>}, {pipeline_mode = #tpu.pipeline_mode<synchronous>, transform_indices = @transform_11, window_bounds = array<i64: 2, 32, 128>}, {pipeline_mode = #tpu.pipeline_mode<synchronous>, transform_indices = @transform_12, window_bounds = array<i64: 2, 128>}, {pipeline_mode = #tpu.pipeline_mode<synchronous>, transform_indices = @transform_13, window_bounds = array<i64: 2, 128, 32>}, {pipeline_mode = #tpu.pipeline_mode<synchronous>, transform_indices = @transform_14, window_bounds = array<i64: 2, 32>}, {pipeline_mode = #tpu.pipeline_mode<synchronous>, transform_indices = @transform_15, window_bounds = array<i64: 1, 32>}, {pipeline_mode = #tpu.pipeline_mode<synchronous>, transform_indices = @transform_16, window_bounds = array<i64: 1, 32>}, {transform_indices = @transform_17, window_bounds = array<i64: 27>}, {transform_indices = @transform_18, window_bounds = array<i64: 3>}, {transform_indices = @transform_19, window_bounds = array<i64: 3>}, {transform_indices = @transform_20, window_bounds = array<i64: 3>}, {transform_indices = @transform_21, window_bounds = array<i64: 1, 1, 9>}]} {
    %c0 = arith.constant 0 : index
    %c0_0 = arith.constant 0 : index
    %c0_1 = arith.constant 0 : index
    %0 = vector.load %arg1[%c0, %c0_0, %c0_1] : memref<1x10x768xf32, #tpu.memory_space<vmem>>, vector<1x10x768xf32>
    %1 = vector.shape_cast %0 : vector<1x10x768xf32> to vector<10x768xf32>
    %c0_2 = arith.constant 0 : index
    %c0_3 = arith.constant 0 : index
    %2 = vector.load %arg2[%c0_2, %c0_3] : memref<768x32xf32, #tpu.memory_space<vmem>>, vector<768x32xf32>
    %cst = arith.constant dense<0.000000e+00> : vector<10x32xf32>
    %3 = tpu.matmul %1, %2, %cst {dimension_numbers = #tpu.dot_dimension_numbers<[1], [0], [0], [1], [0, 0, 1, 1], [], []>} : vector<10x768xf32>, vector<768x32xf32>, vector<10x32xf32> -> vector<10x32xf32>
    %c0_4 = arith.constant 0 : index
    %c0_5 = arith.constant 0 : index
    %4 = vector.load %arg3[%c0_4, %c0_5] : memref<10x32xf32, #tpu.memory_space<vmem>>, vector<10x32xf32>
    %5 = arith.addf %3, %4 : vector<10x32xf32>
    %c0_6 = arith.constant 0 : index
    %c0_7 = arith.constant 0 : index
    %6 = vector.load %arg4[%c0_6, %c0_7] : memref<2x32xf32, #tpu.memory_space<vmem>>, vector<1x32xf32>
    %c0_8 = arith.constant 0 : index
    %c0_9 = arith.constant 0 : index
    %7 = vector.load %arg5[%c0_8, %c0_9] : memref<2x32xf32, #tpu.memory_space<vmem>>, vector<1x32xf32>
    %cst_10 = arith.constant dense<0.000000e+00> : vector<10xf32>
    %8 = vector.multi_reduction <add>, %5, %cst_10 [1] : vector<10x32xf32> to vector<10xf32>
    %9 = vector.shape_cast %8 : vector<10xf32> to vector<10x1xf32>
    %cst_11 = arith.constant 3.200000e+01 : f32
    %10 = vector.broadcast %cst_11 : f32 to vector<10x1xf32>
    %11 = arith.divf %9, %10 : vector<10x1xf32>
    %12 = vector.broadcast %11 : vector<10x1xf32> to vector<10x32xf32>
    %13 = arith.subf %5, %12 : vector<10x32xf32>
    %14 = arith.mulf %13, %13 : vector<10x32xf32>
    %cst_12 = arith.constant dense<0.000000e+00> : vector<10xf32>
    %15 = vector.multi_reduction <add>, %14, %cst_12 [1] : vector<10x32xf32> to vector<10xf32>
    %16 = vector.shape_cast %15 : vector<10xf32> to vector<10x1xf32>
    %cst_13 = arith.constant 3.200000e+01 : f32
    %17 = vector.broadcast %cst_13 : f32 to vector<10x1xf32>
    %18 = arith.divf %16, %17 : vector<10x1xf32>
    %cst_14 = arith.constant 9.99999996E-13 : f32
    %19 = vector.broadcast %cst_14 : f32 to vector<10x1xf32>
    %20 = arith.addf %18, %19 : vector<10x1xf32>
    %21 = math.rsqrt %20 : vector<10x1xf32>
    %22 = vector.broadcast %21 : vector<10x1xf32> to vector<10x32xf32>
    %23 = arith.mulf %13, %22 : vector<10x32xf32>
    %24 = vector.broadcast %6 : vector<1x32xf32> to vector<10x32xf32>
    %25 = arith.mulf %23, %24 : vector<10x32xf32>
    %26 = vector.broadcast %7 : vector<1x32xf32> to vector<10x32xf32>
    %27 = arith.addf %25, %26 : vector<10x32xf32>
    %c0_15 = arith.constant 0 : index
    %c0_16 = arith.constant 0 : index
    %28 = vector.load %arg9[%c0_15, %c0_16] : memref<2x32xf32, #tpu.memory_space<vmem>>, vector<1x32xf32>
    %c0_17 = arith.constant 0 : index
    %c0_18 = arith.constant 0 : index
    %c0_19 = arith.constant 0 : index
    %c0_20 = arith.constant 0 : index
    %29 = vector.load %arg6[%c0_17, %c0_18, %c0_19, %c0_20] : memref<2x6x32x16xf32, #tpu.memory_space<vmem>>, vector<1x1x32x16xf32>
    %30 = vector.shape_cast %29 : vector<1x1x32x16xf32> to vector<32x16xf32>
    %c0_21 = arith.constant 0 : index
    %c0_22 = arith.constant 0 : index
    %31 = vector.load %arg7[%c0_21, %c0_22] : memref<12x16xf32, #tpu.memory_space<vmem>>, vector<1x16xf32>
    %cst_23 = arith.constant dense<0.000000e+00> : vector<10x16xf32>
    %32 = tpu.matmul %27, %30, %cst_23 {dimension_numbers = #tpu.dot_dimension_numbers<[1], [0], [0], [1], [0, 0, 1, 1], [], []>} : vector<10x32xf32>, vector<32x16xf32>, vector<10x16xf32> -> vector<10x16xf32>
    %33 = vector.broadcast %31 : vector<1x16xf32> to vector<10x16xf32>
    %34 = arith.addf %32, %33 : vector<10x16xf32>
    %c0_24 = arith.constant 0 : index
    %c2 = arith.constant 2 : index
    %c0_25 = arith.constant 0 : index
    %c0_26 = arith.constant 0 : index
    %35 = vector.load %arg6[%c0_24, %c2, %c0_25, %c0_26] : memref<2x6x32x16xf32, #tpu.memory_space<vmem>>, vector<1x1x32x16xf32>
    %36 = vector.shape_cast %35 : vector<1x1x32x16xf32> to vector<32x16xf32>
    %c2_27 = arith.constant 2 : index
    %c0_28 = arith.constant 0 : index
    %37 = vector.load %arg7[%c2_27, %c0_28] : memref<12x16xf32, #tpu.memory_space<vmem>>, vector<1x16xf32>
    %cst_29 = arith.constant dense<0.000000e+00> : vector<10x16xf32>
    %38 = tpu.matmul %27, %36, %cst_29 {dimension_numbers = #tpu.dot_dimension_numbers<[1], [0], [0], [1], [0, 0, 1, 1], [], []>} : vector<10x32xf32>, vector<32x16xf32>, vector<10x16xf32> -> vector<10x16xf32>
    %39 = vector.broadcast %37 : vector<1x16xf32> to vector<10x16xf32>
    %40 = arith.addf %38, %39 : vector<10x16xf32>
    %c0_30 = arith.constant 0 : index
    %c4 = arith.constant 4 : index
    %c0_31 = arith.constant 0 : index
    %c0_32 = arith.constant 0 : index
    %41 = vector.load %arg6[%c0_30, %c4, %c0_31, %c0_32] : memref<2x6x32x16xf32, #tpu.memory_space<vmem>>, vector<1x1x32x16xf32>
    %42 = vector.shape_cast %41 : vector<1x1x32x16xf32> to vector<32x16xf32>
    %c4_33 = arith.constant 4 : index
    %c0_34 = arith.constant 0 : index
    %43 = vector.load %arg7[%c4_33, %c0_34] : memref<12x16xf32, #tpu.memory_space<vmem>>, vector<1x16xf32>
    %cst_35 = arith.constant dense<0.000000e+00> : vector<10x16xf32>
    %44 = tpu.matmul %27, %42, %cst_35 {dimension_numbers = #tpu.dot_dimension_numbers<[1], [0], [0], [1], [0, 0, 1, 1], [], []>} : vector<10x32xf32>, vector<32x16xf32>, vector<10x16xf32> -> vector<10x16xf32>
    %45 = vector.broadcast %43 : vector<1x16xf32> to vector<10x16xf32>
    %46 = arith.addf %44, %45 : vector<10x16xf32>
    %cst_36 = arith.constant dense<0.000000e+00> : vector<10x10xf32>
    %47 = tpu.matmul %34, %40, %cst_36 {dimension_numbers = #tpu.dot_dimension_numbers<[1], [1], [0], [0], [0, 0, 1, 0], [], []>} : vector<10x16xf32>, vector<10x16xf32>, vector<10x10xf32> -> vector<10x10xf32>
    %cst_37 = arith.constant 2.500000e-01 : f32
    %48 = vector.broadcast %cst_37 : f32 to vector<10x10xf32>
    %49 = arith.mulf %47, %48 : vector<10x10xf32>
    %cst_38 = arith.constant dense<0xFF800000> : vector<10xf32>
    %50 = vector.multi_reduction <maximumf>, %49, %cst_38 [1] : vector<10x10xf32> to vector<10xf32>
    %51 = vector.shape_cast %50 : vector<10xf32> to vector<10x1xf32>
    %52 = vector.broadcast %51 : vector<10x1xf32> to vector<10x10xf32>
    %53 = arith.subf %49, %52 : vector<10x10xf32>
    %54 = math.exp %53 : vector<10x10xf32>
    %cst_39 = arith.constant dense<0.000000e+00> : vector<10xf32>
    %55 = vector.multi_reduction <add>, %54, %cst_39 [1] : vector<10x10xf32> to vector<10xf32>
    %56 = vector.shape_cast %55 : vector<10xf32> to vector<10x1xf32>
    %57 = vector.broadcast %56 : vector<10x1xf32> to vector<10x10xf32>
    %58 = arith.divf %54, %57 : vector<10x10xf32>
    %cst_40 = arith.constant dense<0.000000e+00> : vector<10x16xf32>
    %59 = tpu.matmul %58, %46, %cst_40 {dimension_numbers = #tpu.dot_dimension_numbers<[1], [0], [0], [1], [0, 0, 1, 1], [], []>} : vector<10x10xf32>, vector<10x16xf32>, vector<10x16xf32> -> vector<10x16xf32>
    %c0_41 = arith.constant 0 : index
    %c0_42 = arith.constant 0 : index
    %c0_43 = arith.constant 0 : index
    %c0_44 = arith.constant 0 : index
    %60 = vector.load %arg8[%c0_41, %c0_42, %c0_43, %c0_44] : memref<2x2x16x32xf32, #tpu.memory_space<vmem>>, vector<1x1x16x32xf32>
    %61 = vector.shape_cast %60 : vector<1x1x16x32xf32> to vector<16x32xf32>
    %cst_45 = arith.constant dense<0.000000e+00> : vector<10x32xf32>
    %62 = tpu.matmul %59, %61, %cst_45 {dimension_numbers = #tpu.dot_dimension_numbers<[1], [0], [0], [1], [0, 0, 1, 1], [], []>} : vector<10x16xf32>, vector<16x32xf32>, vector<10x32xf32> -> vector<10x32xf32>
    %63 = vector.broadcast %28 : vector<1x32xf32> to vector<10x32xf32>
    %64 = arith.addf %63, %62 : vector<10x32xf32>
    %c0_46 = arith.constant 0 : index
    %c1 = arith.constant 1 : index
    %c0_47 = arith.constant 0 : index
    %c0_48 = arith.constant 0 : index
    %65 = vector.load %arg6[%c0_46, %c1, %c0_47, %c0_48] : memref<2x6x32x16xf32, #tpu.memory_space<vmem>>, vector<1x1x32x16xf32>
    %66 = vector.shape_cast %65 : vector<1x1x32x16xf32> to vector<32x16xf32>
    %c1_49 = arith.constant 1 : index
    %c0_50 = arith.constant 0 : index
    %67 = vector.load %arg7[%c1_49, %c0_50] : memref<12x16xf32, #tpu.memory_space<vmem>>, vector<1x16xf32>
    %cst_51 = arith.constant dense<0.000000e+00> : vector<10x16xf32>
    %68 = tpu.matmul %27, %66, %cst_51 {dimension_numbers = #tpu.dot_dimension_numbers<[1], [0], [0], [1], [0, 0, 1, 1], [], []>} : vector<10x32xf32>, vector<32x16xf32>, vector<10x16xf32> -> vector<10x16xf32>
    %69 = vector.broadcast %67 : vector<1x16xf32> to vector<10x16xf32>
    %70 = arith.addf %68, %69 : vector<10x16xf32>
    %c0_52 = arith.constant 0 : index
    %c3 = arith.constant 3 : index
    %c0_53 = arith.constant 0 : index
    %c0_54 = arith.constant 0 : index
    %71 = vector.load %arg6[%c0_52, %c3, %c0_53, %c0_54] : memref<2x6x32x16xf32, #tpu.memory_space<vmem>>, vector<1x1x32x16xf32>
    %72 = vector.shape_cast %71 : vector<1x1x32x16xf32> to vector<32x16xf32>
    %c3_55 = arith.constant 3 : index
    %c0_56 = arith.constant 0 : index
    %73 = vector.load %arg7[%c3_55, %c0_56] : memref<12x16xf32, #tpu.memory_space<vmem>>, vector<1x16xf32>
    %cst_57 = arith.constant dense<0.000000e+00> : vector<10x16xf32>
    %74 = tpu.matmul %27, %72, %cst_57 {dimension_numbers = #tpu.dot_dimension_numbers<[1], [0], [0], [1], [0, 0, 1, 1], [], []>} : vector<10x32xf32>, vector<32x16xf32>, vector<10x16xf32> -> vector<10x16xf32>
    %75 = vector.broadcast %73 : vector<1x16xf32> to vector<10x16xf32>
    %76 = arith.addf %74, %75 : vector<10x16xf32>
    %c0_58 = arith.constant 0 : index
    %c5 = arith.constant 5 : index
    %c0_59 = arith.constant 0 : index
    %c0_60 = arith.constant 0 : index
    %77 = vector.load %arg6[%c0_58, %c5, %c0_59, %c0_60] : memref<2x6x32x16xf32, #tpu.memory_space<vmem>>, vector<1x1x32x16xf32>
    %78 = vector.shape_cast %77 : vector<1x1x32x16xf32> to vector<32x16xf32>
    %c5_61 = arith.constant 5 : index
    %c0_62 = arith.constant 0 : index
    %79 = vector.load %arg7[%c5_61, %c0_62] : memref<12x16xf32, #tpu.memory_space<vmem>>, vector<1x16xf32>
    %cst_63 = arith.constant dense<0.000000e+00> : vector<10x16xf32>
    %80 = tpu.matmul %27, %78, %cst_63 {dimension_numbers = #tpu.dot_dimension_numbers<[1], [0], [0], [1], [0, 0, 1, 1], [], []>} : vector<10x32xf32>, vector<32x16xf32>, vector<10x16xf32> -> vector<10x16xf32>
    %81 = vector.broadcast %79 : vector<1x16xf32> to vector<10x16xf32>
    %82 = arith.addf %80, %81 : vector<10x16xf32>
    %cst_64 = arith.constant dense<0.000000e+00> : vector<10x10xf32>
    %83 = tpu.matmul %70, %76, %cst_64 {dimension_numbers = #tpu.dot_dimension_numbers<[1], [1], [0], [0], [0, 0, 1, 0], [], []>} : vector<10x16xf32>, vector<10x16xf32>, vector<10x10xf32> -> vector<10x10xf32>
    %cst_65 = arith.constant 2.500000e-01 : f32
    %84 = vector.broadcast %cst_65 : f32 to vector<10x10xf32>
    %85 = arith.mulf %83, %84 : vector<10x10xf32>
    %cst_66 = arith.constant dense<0xFF800000> : vector<10xf32>
    %86 = vector.multi_reduction <maximumf>, %85, %cst_66 [1] : vector<10x10xf32> to vector<10xf32>
    %87 = vector.shape_cast %86 : vector<10xf32> to vector<10x1xf32>
    %88 = vector.broadcast %87 : vector<10x1xf32> to vector<10x10xf32>
    %89 = arith.subf %85, %88 : vector<10x10xf32>
    %90 = math.exp %89 : vector<10x10xf32>
    %cst_67 = arith.constant dense<0.000000e+00> : vector<10xf32>
    %91 = vector.multi_reduction <add>, %90, %cst_67 [1] : vector<10x10xf32> to vector<10xf32>
    %92 = vector.shape_cast %91 : vector<10xf32> to vector<10x1xf32>
    %93 = vector.broadcast %92 : vector<10x1xf32> to vector<10x10xf32>
    %94 = arith.divf %90, %93 : vector<10x10xf32>
    %cst_68 = arith.constant dense<0.000000e+00> : vector<10x16xf32>
    %95 = tpu.matmul %94, %82, %cst_68 {dimension_numbers = #tpu.dot_dimension_numbers<[1], [0], [0], [1], [0, 0, 1, 1], [], []>} : vector<10x10xf32>, vector<10x16xf32>, vector<10x16xf32> -> vector<10x16xf32>
    %c0_69 = arith.constant 0 : index
    %c1_70 = arith.constant 1 : index
    %c0_71 = arith.constant 0 : index
    %c0_72 = arith.constant 0 : index
    %96 = vector.load %arg8[%c0_69, %c1_70, %c0_71, %c0_72] : memref<2x2x16x32xf32, #tpu.memory_space<vmem>>, vector<1x1x16x32xf32>
    %97 = vector.shape_cast %96 : vector<1x1x16x32xf32> to vector<16x32xf32>
    %cst_73 = arith.constant dense<0.000000e+00> : vector<10x32xf32>
    %98 = tpu.matmul %95, %97, %cst_73 {dimension_numbers = #tpu.dot_dimension_numbers<[1], [0], [0], [1], [0, 0, 1, 1], [], []>} : vector<10x16xf32>, vector<16x32xf32>, vector<10x32xf32> -> vector<10x32xf32>
    %99 = arith.addf %64, %98 : vector<10x32xf32>
    %100 = arith.addf %5, %99 : vector<10x32xf32>
    %c0_74 = arith.constant 0 : index
    %c0_75 = arith.constant 0 : index
    %101 = vector.load %arg10[%c0_74, %c0_75] : memref<2x32xf32, #tpu.memory_space<vmem>>, vector<1x32xf32>
    %c0_76 = arith.constant 0 : index
    %c0_77 = arith.constant 0 : index
    %102 = vector.load %arg11[%c0_76, %c0_77] : memref<2x32xf32, #tpu.memory_space<vmem>>, vector<1x32xf32>
    %cst_78 = arith.constant dense<0.000000e+00> : vector<10xf32>
    %103 = vector.multi_reduction <add>, %100, %cst_78 [1] : vector<10x32xf32> to vector<10xf32>
    %104 = vector.shape_cast %103 : vector<10xf32> to vector<10x1xf32>
    %cst_79 = arith.constant 3.200000e+01 : f32
    %105 = vector.broadcast %cst_79 : f32 to vector<10x1xf32>
    %106 = arith.divf %104, %105 : vector<10x1xf32>
    %107 = vector.broadcast %106 : vector<10x1xf32> to vector<10x32xf32>
    %108 = arith.subf %100, %107 : vector<10x32xf32>
    %109 = arith.mulf %108, %108 : vector<10x32xf32>
    %cst_80 = arith.constant dense<0.000000e+00> : vector<10xf32>
    %110 = vector.multi_reduction <add>, %109, %cst_80 [1] : vector<10x32xf32> to vector<10xf32>
    %111 = vector.shape_cast %110 : vector<10xf32> to vector<10x1xf32>
    %cst_81 = arith.constant 3.200000e+01 : f32
    %112 = vector.broadcast %cst_81 : f32 to vector<10x1xf32>
    %113 = arith.divf %111, %112 : vector<10x1xf32>
    %cst_82 = arith.constant 9.99999996E-13 : f32
    %114 = vector.broadcast %cst_82 : f32 to vector<10x1xf32>
    %115 = arith.addf %113, %114 : vector<10x1xf32>
    %116 = math.rsqrt %115 : vector<10x1xf32>
    %117 = vector.broadcast %116 : vector<10x1xf32> to vector<10x32xf32>
    %118 = arith.mulf %108, %117 : vector<10x32xf32>
    %119 = vector.broadcast %101 : vector<1x32xf32> to vector<10x32xf32>
    %120 = arith.mulf %118, %119 : vector<10x32xf32>
    %121 = vector.broadcast %102 : vector<1x32xf32> to vector<10x32xf32>
    %122 = arith.addf %120, %121 : vector<10x32xf32>
    %c0_83 = arith.constant 0 : index
    %c0_84 = arith.constant 0 : index
    %c0_85 = arith.constant 0 : index
    %123 = vector.load %arg12[%c0_83, %c0_84, %c0_85] : memref<2x32x128xf32, #tpu.memory_space<vmem>>, vector<1x32x128xf32>
    %124 = vector.shape_cast %123 : vector<1x32x128xf32> to vector<32x128xf32>
    %cst_86 = arith.constant dense<0.000000e+00> : vector<10x128xf32>
    %125 = tpu.matmul %122, %124, %cst_86 {dimension_numbers = #tpu.dot_dimension_numbers<[1], [0], [0], [1], [0, 0, 1, 1], [], []>} : vector<10x32xf32>, vector<32x128xf32>, vector<10x128xf32> -> vector<10x128xf32>
    %c0_87 = arith.constant 0 : index
    %c0_88 = arith.constant 0 : index
    %126 = vector.load %arg13[%c0_87, %c0_88] : memref<2x128xf32, #tpu.memory_space<vmem>>, vector<1x128xf32>
    %127 = vector.broadcast %126 : vector<1x128xf32> to vector<10x128xf32>
    %128 = arith.addf %125, %127 : vector<10x128xf32>
    %129 = arith.mulf %128, %128 : vector<10x128xf32>
    %130 = arith.mulf %128, %129 : vector<10x128xf32>
    %cst_89 = arith.constant 4.471500e-02 : f32
    %131 = vector.broadcast %cst_89 : f32 to vector<10x128xf32>
    %132 = arith.mulf %131, %130 : vector<10x128xf32>
    %133 = arith.addf %128, %132 : vector<10x128xf32>
    %cst_90 = arith.constant 0.797884583 : f32
    %134 = vector.broadcast %cst_90 : f32 to vector<10x128xf32>
    %135 = arith.mulf %134, %133 : vector<10x128xf32>
    %136 = math.tanh %135 : vector<10x128xf32>
    %cst_91 = arith.constant 1.000000e+00 : f32
    %137 = vector.broadcast %cst_91 : f32 to vector<10x128xf32>
    %138 = arith.addf %137, %136 : vector<10x128xf32>
    %cst_92 = arith.constant 5.000000e-01 : f32
    %139 = vector.broadcast %cst_92 : f32 to vector<10x128xf32>
    %140 = arith.mulf %139, %138 : vector<10x128xf32>
    %141 = arith.mulf %128, %140 : vector<10x128xf32>
    %c0_93 = arith.constant 0 : index
    %c0_94 = arith.constant 0 : index
    %c0_95 = arith.constant 0 : index
    %142 = vector.load %arg14[%c0_93, %c0_94, %c0_95] : memref<2x128x32xf32, #tpu.memory_space<vmem>>, vector<1x128x32xf32>
    %143 = vector.shape_cast %142 : vector<1x128x32xf32> to vector<128x32xf32>
    %cst_96 = arith.constant dense<0.000000e+00> : vector<10x32xf32>
    %144 = tpu.matmul %141, %143, %cst_96 {dimension_numbers = #tpu.dot_dimension_numbers<[1], [0], [0], [1], [0, 0, 1, 1], [], []>} : vector<10x128xf32>, vector<128x32xf32>, vector<10x32xf32> -> vector<10x32xf32>
    %145 = arith.addf %100, %144 : vector<10x32xf32>
    %c0_97 = arith.constant 0 : index
    %c0_98 = arith.constant 0 : index
    %146 = vector.load %arg15[%c0_97, %c0_98] : memref<2x32xf32, #tpu.memory_space<vmem>>, vector<1x32xf32>
    %147 = vector.broadcast %146 : vector<1x32xf32> to vector<10x32xf32>
    %148 = arith.addf %145, %147 : vector<10x32xf32>
    %c1_99 = arith.constant 1 : index
    %c0_100 = arith.constant 0 : index
    %149 = vector.load %arg4[%c1_99, %c0_100] : memref<2x32xf32, #tpu.memory_space<vmem>>, vector<1x32xf32>
    %c1_101 = arith.constant 1 : index
    %c0_102 = arith.constant 0 : index
    %150 = vector.load %arg5[%c1_101, %c0_102] : memref<2x32xf32, #tpu.memory_space<vmem>>, vector<1x32xf32>
    %cst_103 = arith.constant dense<0.000000e+00> : vector<10xf32>
    %151 = vector.multi_reduction <add>, %148, %cst_103 [1] : vector<10x32xf32> to vector<10xf32>
    %152 = vector.shape_cast %151 : vector<10xf32> to vector<10x1xf32>
    %cst_104 = arith.constant 3.200000e+01 : f32
    %153 = vector.broadcast %cst_104 : f32 to vector<10x1xf32>
    %154 = arith.divf %152, %153 : vector<10x1xf32>
    %155 = vector.broadcast %154 : vector<10x1xf32> to vector<10x32xf32>
    %156 = arith.subf %148, %155 : vector<10x32xf32>
    %157 = arith.mulf %156, %156 : vector<10x32xf32>
    %cst_105 = arith.constant dense<0.000000e+00> : vector<10xf32>
    %158 = vector.multi_reduction <add>, %157, %cst_105 [1] : vector<10x32xf32> to vector<10xf32>
    %159 = vector.shape_cast %158 : vector<10xf32> to vector<10x1xf32>
    %cst_106 = arith.constant 3.200000e+01 : f32
    %160 = vector.broadcast %cst_106 : f32 to vector<10x1xf32>
    %161 = arith.divf %159, %160 : vector<10x1xf32>
    %cst_107 = arith.constant 9.99999996E-13 : f32
    %162 = vector.broadcast %cst_107 : f32 to vector<10x1xf32>
    %163 = arith.addf %161, %162 : vector<10x1xf32>
    %164 = math.rsqrt %163 : vector<10x1xf32>
    %165 = vector.broadcast %164 : vector<10x1xf32> to vector<10x32xf32>
    %166 = arith.mulf %156, %165 : vector<10x32xf32>
    %167 = vector.broadcast %149 : vector<1x32xf32> to vector<10x32xf32>
    %168 = arith.mulf %166, %167 : vector<10x32xf32>
    %169 = vector.broadcast %150 : vector<1x32xf32> to vector<10x32xf32>
    %170 = arith.addf %168, %169 : vector<10x32xf32>
    %c1_108 = arith.constant 1 : index
    %c0_109 = arith.constant 0 : index
    %171 = vector.load %arg9[%c1_108, %c0_109] : memref<2x32xf32, #tpu.memory_space<vmem>>, vector<1x32xf32>
    %c1_110 = arith.constant 1 : index
    %c0_111 = arith.constant 0 : index
    %c0_112 = arith.constant 0 : index
    %c0_113 = arith.constant 0 : index
    %172 = vector.load %arg6[%c1_110, %c0_111, %c0_112, %c0_113] : memref<2x6x32x16xf32, #tpu.memory_space<vmem>>, vector<1x1x32x16xf32>
    %173 = vector.shape_cast %172 : vector<1x1x32x16xf32> to vector<32x16xf32>
    %c6 = arith.constant 6 : index
    %c0_114 = arith.constant 0 : index
    %174 = vector.load %arg7[%c6, %c0_114] : memref<12x16xf32, #tpu.memory_space<vmem>>, vector<1x16xf32>
    %cst_115 = arith.constant dense<0.000000e+00> : vector<10x16xf32>
    %175 = tpu.matmul %170, %173, %cst_115 {dimension_numbers = #tpu.dot_dimension_numbers<[1], [0], [0], [1], [0, 0, 1, 1], [], []>} : vector<10x32xf32>, vector<32x16xf32>, vector<10x16xf32> -> vector<10x16xf32>
    %176 = vector.broadcast %174 : vector<1x16xf32> to vector<10x16xf32>
    %177 = arith.addf %175, %176 : vector<10x16xf32>
    %c1_116 = arith.constant 1 : index
    %c2_117 = arith.constant 2 : index
    %c0_118 = arith.constant 0 : index
    %c0_119 = arith.constant 0 : index
    %178 = vector.load %arg6[%c1_116, %c2_117, %c0_118, %c0_119] : memref<2x6x32x16xf32, #tpu.memory_space<vmem>>, vector<1x1x32x16xf32>
    %179 = vector.shape_cast %178 : vector<1x1x32x16xf32> to vector<32x16xf32>
    %c8 = arith.constant 8 : index
    %c0_120 = arith.constant 0 : index
    %180 = vector.load %arg7[%c8, %c0_120] : memref<12x16xf32, #tpu.memory_space<vmem>>, vector<1x16xf32>
    %cst_121 = arith.constant dense<0.000000e+00> : vector<10x16xf32>
    %181 = tpu.matmul %170, %179, %cst_121 {dimension_numbers = #tpu.dot_dimension_numbers<[1], [0], [0], [1], [0, 0, 1, 1], [], []>} : vector<10x32xf32>, vector<32x16xf32>, vector<10x16xf32> -> vector<10x16xf32>
    %182 = vector.broadcast %180 : vector<1x16xf32> to vector<10x16xf32>
    %183 = arith.addf %181, %182 : vector<10x16xf32>
    %c1_122 = arith.constant 1 : index
    %c4_123 = arith.constant 4 : index
    %c0_124 = arith.constant 0 : index
    %c0_125 = arith.constant 0 : index
    %184 = vector.load %arg6[%c1_122, %c4_123, %c0_124, %c0_125] : memref<2x6x32x16xf32, #tpu.memory_space<vmem>>, vector<1x1x32x16xf32>
    %185 = vector.shape_cast %184 : vector<1x1x32x16xf32> to vector<32x16xf32>
    %c10 = arith.constant 10 : index
    %c0_126 = arith.constant 0 : index
    %186 = vector.load %arg7[%c10, %c0_126] : memref<12x16xf32, #tpu.memory_space<vmem>>, vector<1x16xf32>
    %cst_127 = arith.constant dense<0.000000e+00> : vector<10x16xf32>
    %187 = tpu.matmul %170, %185, %cst_127 {dimension_numbers = #tpu.dot_dimension_numbers<[1], [0], [0], [1], [0, 0, 1, 1], [], []>} : vector<10x32xf32>, vector<32x16xf32>, vector<10x16xf32> -> vector<10x16xf32>
    %188 = vector.broadcast %186 : vector<1x16xf32> to vector<10x16xf32>
    %189 = arith.addf %187, %188 : vector<10x16xf32>
    %cst_128 = arith.constant dense<0.000000e+00> : vector<10x10xf32>
    %190 = tpu.matmul %177, %183, %cst_128 {dimension_numbers = #tpu.dot_dimension_numbers<[1], [1], [0], [0], [0, 0, 1, 0], [], []>} : vector<10x16xf32>, vector<10x16xf32>, vector<10x10xf32> -> vector<10x10xf32>
    %cst_129 = arith.constant 2.500000e-01 : f32
    %191 = vector.broadcast %cst_129 : f32 to vector<10x10xf32>
    %192 = arith.mulf %190, %191 : vector<10x10xf32>
    %cst_130 = arith.constant dense<0xFF800000> : vector<10xf32>
    %193 = vector.multi_reduction <maximumf>, %192, %cst_130 [1] : vector<10x10xf32> to vector<10xf32>
    %194 = vector.shape_cast %193 : vector<10xf32> to vector<10x1xf32>
    %195 = vector.broadcast %194 : vector<10x1xf32> to vector<10x10xf32>
    %196 = arith.subf %192, %195 : vector<10x10xf32>
    %197 = math.exp %196 : vector<10x10xf32>
    %cst_131 = arith.constant dense<0.000000e+00> : vector<10xf32>
    %198 = vector.multi_reduction <add>, %197, %cst_131 [1] : vector<10x10xf32> to vector<10xf32>
    %199 = vector.shape_cast %198 : vector<10xf32> to vector<10x1xf32>
    %200 = vector.broadcast %199 : vector<10x1xf32> to vector<10x10xf32>
    %201 = arith.divf %197, %200 : vector<10x10xf32>
    %cst_132 = arith.constant dense<0.000000e+00> : vector<10x16xf32>
    %202 = tpu.matmul %201, %189, %cst_132 {dimension_numbers = #tpu.dot_dimension_numbers<[1], [0], [0], [1], [0, 0, 1, 1], [], []>} : vector<10x10xf32>, vector<10x16xf32>, vector<10x16xf32> -> vector<10x16xf32>
    %c1_133 = arith.constant 1 : index
    %c0_134 = arith.constant 0 : index
    %c0_135 = arith.constant 0 : index
    %c0_136 = arith.constant 0 : index
    %203 = vector.load %arg8[%c1_133, %c0_134, %c0_135, %c0_136] : memref<2x2x16x32xf32, #tpu.memory_space<vmem>>, vector<1x1x16x32xf32>
    %204 = vector.shape_cast %203 : vector<1x1x16x32xf32> to vector<16x32xf32>
    %cst_137 = arith.constant dense<0.000000e+00> : vector<10x32xf32>
    %205 = tpu.matmul %202, %204, %cst_137 {dimension_numbers = #tpu.dot_dimension_numbers<[1], [0], [0], [1], [0, 0, 1, 1], [], []>} : vector<10x16xf32>, vector<16x32xf32>, vector<10x32xf32> -> vector<10x32xf32>
    %206 = vector.broadcast %171 : vector<1x32xf32> to vector<10x32xf32>
    %207 = arith.addf %206, %205 : vector<10x32xf32>
    %c1_138 = arith.constant 1 : index
    %c1_139 = arith.constant 1 : index
    %c0_140 = arith.constant 0 : index
    %c0_141 = arith.constant 0 : index
    %208 = vector.load %arg6[%c1_138, %c1_139, %c0_140, %c0_141] : memref<2x6x32x16xf32, #tpu.memory_space<vmem>>, vector<1x1x32x16xf32>
    %209 = vector.shape_cast %208 : vector<1x1x32x16xf32> to vector<32x16xf32>
    %c7 = arith.constant 7 : index
    %c0_142 = arith.constant 0 : index
    %210 = vector.load %arg7[%c7, %c0_142] : memref<12x16xf32, #tpu.memory_space<vmem>>, vector<1x16xf32>
    %cst_143 = arith.constant dense<0.000000e+00> : vector<10x16xf32>
    %211 = tpu.matmul %170, %209, %cst_143 {dimension_numbers = #tpu.dot_dimension_numbers<[1], [0], [0], [1], [0, 0, 1, 1], [], []>} : vector<10x32xf32>, vector<32x16xf32>, vector<10x16xf32> -> vector<10x16xf32>
    %212 = vector.broadcast %210 : vector<1x16xf32> to vector<10x16xf32>
    %213 = arith.addf %211, %212 : vector<10x16xf32>
    %c1_144 = arith.constant 1 : index
    %c3_145 = arith.constant 3 : index
    %c0_146 = arith.constant 0 : index
    %c0_147 = arith.constant 0 : index
    %214 = vector.load %arg6[%c1_144, %c3_145, %c0_146, %c0_147] : memref<2x6x32x16xf32, #tpu.memory_space<vmem>>, vector<1x1x32x16xf32>
    %215 = vector.shape_cast %214 : vector<1x1x32x16xf32> to vector<32x16xf32>
    %c9 = arith.constant 9 : index
    %c0_148 = arith.constant 0 : index
    %216 = vector.load %arg7[%c9, %c0_148] : memref<12x16xf32, #tpu.memory_space<vmem>>, vector<1x16xf32>
    %cst_149 = arith.constant dense<0.000000e+00> : vector<10x16xf32>
    %217 = tpu.matmul %170, %215, %cst_149 {dimension_numbers = #tpu.dot_dimension_numbers<[1], [0], [0], [1], [0, 0, 1, 1], [], []>} : vector<10x32xf32>, vector<32x16xf32>, vector<10x16xf32> -> vector<10x16xf32>
    %218 = vector.broadcast %216 : vector<1x16xf32> to vector<10x16xf32>
    %219 = arith.addf %217, %218 : vector<10x16xf32>
    %c1_150 = arith.constant 1 : index
    %c5_151 = arith.constant 5 : index
    %c0_152 = arith.constant 0 : index
    %c0_153 = arith.constant 0 : index
    %220 = vector.load %arg6[%c1_150, %c5_151, %c0_152, %c0_153] : memref<2x6x32x16xf32, #tpu.memory_space<vmem>>, vector<1x1x32x16xf32>
    %221 = vector.shape_cast %220 : vector<1x1x32x16xf32> to vector<32x16xf32>
    %c11 = arith.constant 11 : index
    %c0_154 = arith.constant 0 : index
    %222 = vector.load %arg7[%c11, %c0_154] : memref<12x16xf32, #tpu.memory_space<vmem>>, vector<1x16xf32>
    %cst_155 = arith.constant dense<0.000000e+00> : vector<10x16xf32>
    %223 = tpu.matmul %170, %221, %cst_155 {dimension_numbers = #tpu.dot_dimension_numbers<[1], [0], [0], [1], [0, 0, 1, 1], [], []>} : vector<10x32xf32>, vector<32x16xf32>, vector<10x16xf32> -> vector<10x16xf32>
    %224 = vector.broadcast %222 : vector<1x16xf32> to vector<10x16xf32>
    %225 = arith.addf %223, %224 : vector<10x16xf32>
    %cst_156 = arith.constant dense<0.000000e+00> : vector<10x10xf32>
    %226 = tpu.matmul %213, %219, %cst_156 {dimension_numbers = #tpu.dot_dimension_numbers<[1], [1], [0], [0], [0, 0, 1, 0], [], []>} : vector<10x16xf32>, vector<10x16xf32>, vector<10x10xf32> -> vector<10x10xf32>
    %cst_157 = arith.constant 2.500000e-01 : f32
    %227 = vector.broadcast %cst_157 : f32 to vector<10x10xf32>
    %228 = arith.mulf %226, %227 : vector<10x10xf32>
    %cst_158 = arith.constant dense<0xFF800000> : vector<10xf32>
    %229 = vector.multi_reduction <maximumf>, %228, %cst_158 [1] : vector<10x10xf32> to vector<10xf32>
    %230 = vector.shape_cast %229 : vector<10xf32> to vector<10x1xf32>
    %231 = vector.broadcast %230 : vector<10x1xf32> to vector<10x10xf32>
    %232 = arith.subf %228, %231 : vector<10x10xf32>
    %233 = math.exp %232 : vector<10x10xf32>
    %cst_159 = arith.constant dense<0.000000e+00> : vector<10xf32>
    %234 = vector.multi_reduction <add>, %233, %cst_159 [1] : vector<10x10xf32> to vector<10xf32>
    %235 = vector.shape_cast %234 : vector<10xf32> to vector<10x1xf32>
    %236 = vector.broadcast %235 : vector<10x1xf32> to vector<10x10xf32>
    %237 = arith.divf %233, %236 : vector<10x10xf32>
    %cst_160 = arith.constant dense<0.000000e+00> : vector<10x16xf32>
    %238 = tpu.matmul %237, %225, %cst_160 {dimension_numbers = #tpu.dot_dimension_numbers<[1], [0], [0], [1], [0, 0, 1, 1], [], []>} : vector<10x10xf32>, vector<10x16xf32>, vector<10x16xf32> -> vector<10x16xf32>
    %c1_161 = arith.constant 1 : index
    %c1_162 = arith.constant 1 : index
    %c0_163 = arith.constant 0 : index
    %c0_164 = arith.constant 0 : index
    %239 = vector.load %arg8[%c1_161, %c1_162, %c0_163, %c0_164] : memref<2x2x16x32xf32, #tpu.memory_space<vmem>>, vector<1x1x16x32xf32>
    %240 = vector.shape_cast %239 : vector<1x1x16x32xf32> to vector<16x32xf32>
    %cst_165 = arith.constant dense<0.000000e+00> : vector<10x32xf32>
    %241 = tpu.matmul %238, %240, %cst_165 {dimension_numbers = #tpu.dot_dimension_numbers<[1], [0], [0], [1], [0, 0, 1, 1], [], []>} : vector<10x16xf32>, vector<16x32xf32>, vector<10x32xf32> -> vector<10x32xf32>
    %242 = arith.addf %207, %241 : vector<10x32xf32>
    %243 = arith.addf %148, %242 : vector<10x32xf32>
    %c1_166 = arith.constant 1 : index
    %c0_167 = arith.constant 0 : index
    %244 = vector.load %arg10[%c1_166, %c0_167] : memref<2x32xf32, #tpu.memory_space<vmem>>, vector<1x32xf32>
    %c1_168 = arith.constant 1 : index
    %c0_169 = arith.constant 0 : index
    %245 = vector.load %arg11[%c1_168, %c0_169] : memref<2x32xf32, #tpu.memory_space<vmem>>, vector<1x32xf32>
    %cst_170 = arith.constant dense<0.000000e+00> : vector<10xf32>
    %246 = vector.multi_reduction <add>, %243, %cst_170 [1] : vector<10x32xf32> to vector<10xf32>
    %247 = vector.shape_cast %246 : vector<10xf32> to vector<10x1xf32>
    %cst_171 = arith.constant 3.200000e+01 : f32
    %248 = vector.broadcast %cst_171 : f32 to vector<10x1xf32>
    %249 = arith.divf %247, %248 : vector<10x1xf32>
    %250 = vector.broadcast %249 : vector<10x1xf32> to vector<10x32xf32>
    %251 = arith.subf %243, %250 : vector<10x32xf32>
    %252 = arith.mulf %251, %251 : vector<10x32xf32>
    %cst_172 = arith.constant dense<0.000000e+00> : vector<10xf32>
    %253 = vector.multi_reduction <add>, %252, %cst_172 [1] : vector<10x32xf32> to vector<10xf32>
    %254 = vector.shape_cast %253 : vector<10xf32> to vector<10x1xf32>
    %cst_173 = arith.constant 3.200000e+01 : f32
    %255 = vector.broadcast %cst_173 : f32 to vector<10x1xf32>
    %256 = arith.divf %254, %255 : vector<10x1xf32>
    %cst_174 = arith.constant 9.99999996E-13 : f32
    %257 = vector.broadcast %cst_174 : f32 to vector<10x1xf32>
    %258 = arith.addf %256, %257 : vector<10x1xf32>
    %259 = math.rsqrt %258 : vector<10x1xf32>
    %260 = vector.broadcast %259 : vector<10x1xf32> to vector<10x32xf32>
    %261 = arith.mulf %251, %260 : vector<10x32xf32>
    %262 = vector.broadcast %244 : vector<1x32xf32> to vector<10x32xf32>
    %263 = arith.mulf %261, %262 : vector<10x32xf32>
    %264 = vector.broadcast %245 : vector<1x32xf32> to vector<10x32xf32>
    %265 = arith.addf %263, %264 : vector<10x32xf32>
    %c1_175 = arith.constant 1 : index
    %c0_176 = arith.constant 0 : index
    %c0_177 = arith.constant 0 : index
    %266 = vector.load %arg12[%c1_175, %c0_176, %c0_177] : memref<2x32x128xf32, #tpu.memory_space<vmem>>, vector<1x32x128xf32>
    %267 = vector.shape_cast %266 : vector<1x32x128xf32> to vector<32x128xf32>
    %cst_178 = arith.constant dense<0.000000e+00> : vector<10x128xf32>
    %268 = tpu.matmul %265, %267, %cst_178 {dimension_numbers = #tpu.dot_dimension_numbers<[1], [0], [0], [1], [0, 0, 1, 1], [], []>} : vector<10x32xf32>, vector<32x128xf32>, vector<10x128xf32> -> vector<10x128xf32>
    %c1_179 = arith.constant 1 : index
    %c0_180 = arith.constant 0 : index
    %269 = vector.load %arg13[%c1_179, %c0_180] : memref<2x128xf32, #tpu.memory_space<vmem>>, vector<1x128xf32>
    %270 = vector.broadcast %269 : vector<1x128xf32> to vector<10x128xf32>
    %271 = arith.addf %268, %270 : vector<10x128xf32>
    %272 = arith.mulf %271, %271 : vector<10x128xf32>
    %273 = arith.mulf %271, %272 : vector<10x128xf32>
    %cst_181 = arith.constant 4.471500e-02 : f32
    %274 = vector.broadcast %cst_181 : f32 to vector<10x128xf32>
    %275 = arith.mulf %274, %273 : vector<10x128xf32>
    %276 = arith.addf %271, %275 : vector<10x128xf32>
    %cst_182 = arith.constant 0.797884583 : f32
    %277 = vector.broadcast %cst_182 : f32 to vector<10x128xf32>
    %278 = arith.mulf %277, %276 : vector<10x128xf32>
    %279 = math.tanh %278 : vector<10x128xf32>
    %cst_183 = arith.constant 1.000000e+00 : f32
    %280 = vector.broadcast %cst_183 : f32 to vector<10x128xf32>
    %281 = arith.addf %280, %279 : vector<10x128xf32>
    %cst_184 = arith.constant 5.000000e-01 : f32
    %282 = vector.broadcast %cst_184 : f32 to vector<10x128xf32>
    %283 = arith.mulf %282, %281 : vector<10x128xf32>
    %284 = arith.mulf %271, %283 : vector<10x128xf32>
    %c1_185 = arith.constant 1 : index
    %c0_186 = arith.constant 0 : index
    %c0_187 = arith.constant 0 : index
    %285 = vector.load %arg14[%c1_185, %c0_186, %c0_187] : memref<2x128x32xf32, #tpu.memory_space<vmem>>, vector<1x128x32xf32>
    %286 = vector.shape_cast %285 : vector<1x128x32xf32> to vector<128x32xf32>
    %cst_188 = arith.constant dense<0.000000e+00> : vector<10x32xf32>
    %287 = tpu.matmul %284, %286, %cst_188 {dimension_numbers = #tpu.dot_dimension_numbers<[1], [0], [0], [1], [0, 0, 1, 1], [], []>} : vector<10x128xf32>, vector<128x32xf32>, vector<10x32xf32> -> vector<10x32xf32>
    %288 = arith.addf %243, %287 : vector<10x32xf32>
    %c1_189 = arith.constant 1 : index
    %c0_190 = arith.constant 0 : index
    %289 = vector.load %arg15[%c1_189, %c0_190] : memref<2x32xf32, #tpu.memory_space<vmem>>, vector<1x32xf32>
    %290 = vector.broadcast %289 : vector<1x32xf32> to vector<10x32xf32>
    %291 = arith.addf %288, %290 : vector<10x32xf32>
    %c0_191 = arith.constant 0 : index
    %c0_192 = arith.constant 0 : index
    %292 = vector.load %arg16[%c0_191, %c0_192] : memref<1x32xf32, #tpu.memory_space<vmem>>, vector<1x32xf32>
    %c0_193 = arith.constant 0 : index
    %c0_194 = arith.constant 0 : index
    %293 = vector.load %arg17[%c0_193, %c0_194] : memref<1x32xf32, #tpu.memory_space<vmem>>, vector<1x32xf32>
    %cst_195 = arith.constant dense<0.000000e+00> : vector<10xf32>
    %294 = vector.multi_reduction <add>, %291, %cst_195 [1] : vector<10x32xf32> to vector<10xf32>
    %295 = vector.shape_cast %294 : vector<10xf32> to vector<10x1xf32>
    %cst_196 = arith.constant 3.200000e+01 : f32
    %296 = vector.broadcast %cst_196 : f32 to vector<10x1xf32>
    %297 = arith.divf %295, %296 : vector<10x1xf32>
    %298 = vector.broadcast %297 : vector<10x1xf32> to vector<10x32xf32>
    %299 = arith.subf %291, %298 : vector<10x32xf32>
    %300 = arith.mulf %299, %299 : vector<10x32xf32>
    %cst_197 = arith.constant dense<0.000000e+00> : vector<10xf32>
    %301 = vector.multi_reduction <add>, %300, %cst_197 [1] : vector<10x32xf32> to vector<10xf32>
    %302 = vector.shape_cast %301 : vector<10xf32> to vector<10x1xf32>
    %cst_198 = arith.constant 3.200000e+01 : f32
    %303 = vector.broadcast %cst_198 : f32 to vector<10x1xf32>
    %304 = arith.divf %302, %303 : vector<10x1xf32>
    %cst_199 = arith.constant 9.99999996E-13 : f32
    %305 = vector.broadcast %cst_199 : f32 to vector<10x1xf32>
    %306 = arith.addf %304, %305 : vector<10x1xf32>
    %307 = math.rsqrt %306 : vector<10x1xf32>
    %308 = vector.broadcast %307 : vector<10x1xf32> to vector<10x32xf32>
    %309 = arith.mulf %299, %308 : vector<10x32xf32>
    %310 = vector.broadcast %292 : vector<1x32xf32> to vector<10x32xf32>
    %311 = arith.mulf %309, %310 : vector<10x32xf32>
    %312 = vector.broadcast %293 : vector<1x32xf32> to vector<10x32xf32>
    %313 = arith.addf %311, %312 : vector<10x32xf32>
    %314 = tpu.iota {dimensions = array<i32: 0>} : vector<32x32xi32>
    %315 = tpu.iota {dimensions = array<i32: 1>} : vector<32x32xi32>
    %c1_i32 = arith.constant 1 : i32
    %316 = vector.broadcast %c1_i32 : i32 to vector<32x32xi32>
    %317 = arith.addi %315, %316 : vector<32x32xi32>
    %318 = arith.cmpi eq, %314, %317 : vector<32x32xi32>
    %319 = arith.extui %318 : vector<32x32xi1> to vector<32x32xi32>
    %320 = arith.sitofp %319 : vector<32x32xi32> to vector<32x32xf32>
    %cst_200 = arith.constant dense<0.000000e+00> : vector<10x32xf32>
    %321 = tpu.matmul %313, %320, %cst_200 {dimension_numbers = #tpu.dot_dimension_numbers<[1], [0], [0], [1], [0, 0, 1, 1], [], []>} : vector<10x32xf32>, vector<32x32xf32>, vector<10x32xf32> -> vector<10x32xf32>
    %c2_i32 = arith.constant 2 : i32
    %322 = vector.broadcast %c2_i32 : i32 to vector<32x32xi32>
    %323 = arith.addi %315, %322 : vector<32x32xi32>
    %324 = arith.cmpi eq, %314, %323 : vector<32x32xi32>
    %325 = arith.extui %324 : vector<32x32xi1> to vector<32x32xi32>
    %326 = arith.sitofp %325 : vector<32x32xi32> to vector<32x32xf32>
    %cst_201 = arith.constant dense<0.000000e+00> : vector<10x32xf32>
    %327 = tpu.matmul %313, %326, %cst_201 {dimension_numbers = #tpu.dot_dimension_numbers<[1], [0], [0], [1], [0, 0, 1, 1], [], []>} : vector<10x32xf32>, vector<32x32xf32>, vector<10x32xf32> -> vector<10x32xf32>
    %328 = vector.extract_strided_slice %313 {offsets = [0, 0], sizes = [8, 32], strides = [1, 1]} : vector<10x32xf32> to vector<8x32xf32>
    %329 = vector.extract_strided_slice %321 {offsets = [0, 0], sizes = [8, 32], strides = [1, 1]} : vector<10x32xf32> to vector<8x32xf32>
    %330 = vector.extract_strided_slice %327 {offsets = [0, 0], sizes = [8, 32], strides = [1, 1]} : vector<10x32xf32> to vector<8x32xf32>
    %331 = vector.extract_strided_slice %313 {offsets = [1, 0], sizes = [8, 32], strides = [1, 1]} : vector<10x32xf32> to vector<8x32xf32>
    %332 = vector.extract_strided_slice %321 {offsets = [1, 0], sizes = [8, 32], strides = [1, 1]} : vector<10x32xf32> to vector<8x32xf32>
    %333 = vector.extract_strided_slice %327 {offsets = [1, 0], sizes = [8, 32], strides = [1, 1]} : vector<10x32xf32> to vector<8x32xf32>
    %334 = vector.extract_strided_slice %313 {offsets = [2, 0], sizes = [8, 32], strides = [1, 1]} : vector<10x32xf32> to vector<8x32xf32>
    %335 = vector.extract_strided_slice %321 {offsets = [2, 0], sizes = [8, 32], strides = [1, 1]} : vector<10x32xf32> to vector<8x32xf32>
    %336 = vector.extract_strided_slice %327 {offsets = [2, 0], sizes = [8, 32], strides = [1, 1]} : vector<10x32xf32> to vector<8x32xf32>
    %337 = tpu.iota {dimensions = array<i32: 0>} : vector<8x32xi32>
    %338 = tpu.iota {dimensions = array<i32: 1>} : vector<8x32xi32>
    %c1_i32_202 = arith.constant 1 : i32
    %339 = vector.broadcast %c1_i32_202 : i32 to vector<8x32xi32>
    %340 = arith.andi %337, %339 : vector<8x32xi32>
    %c0_i32 = arith.constant 0 : i32
    %341 = vector.broadcast %c0_i32 : i32 to vector<8x32xi32>
    %342 = arith.cmpi eq, %340, %341 : vector<8x32xi32>
    %c1_i32_203 = arith.constant 1 : i32
    %343 = vector.broadcast %c1_i32_203 : i32 to vector<8x32xi32>
    %344 = arith.andi %338, %343 : vector<8x32xi32>
    %c0_i32_204 = arith.constant 0 : i32
    %345 = vector.broadcast %c0_i32_204 : i32 to vector<8x32xi32>
    %346 = arith.cmpi eq, %344, %345 : vector<8x32xi32>
    %347 = arith.andi %342, %346 : vector<8x32xi1>
    %348 = tpu.iota {dimensions = array<i32: 1>} : vector<1x9xi32>
    %cst_205 = arith.constant 0.000000e+00 : f32
    %349 = vector.broadcast %cst_205 : f32 to vector<1x9xf32>
    %cst_206 = arith.constant 0.000000e+00 : f32
    %350 = vector.broadcast %cst_206 : f32 to vector<8x32xf32>
    %c0_207 = arith.constant 0 : index
    %351 = memref.load %arg18[%c0_207] : memref<27xf32, #tpu.memory_space<smem>>
    %352 = vector.broadcast %351 : f32 to vector<8x32xf32>
    %353 = arith.mulf %352, %328 : vector<8x32xf32>
    %354 = arith.addf %350, %353 : vector<8x32xf32>
    %c1_208 = arith.constant 1 : index
    %355 = memref.load %arg18[%c1_208] : memref<27xf32, #tpu.memory_space<smem>>
    %356 = vector.broadcast %355 : f32 to vector<8x32xf32>
    %357 = arith.mulf %356, %329 : vector<8x32xf32>
    %358 = arith.addf %354, %357 : vector<8x32xf32>
    %c2_209 = arith.constant 2 : index
    %359 = memref.load %arg18[%c2_209] : memref<27xf32, #tpu.memory_space<smem>>
    %360 = vector.broadcast %359 : f32 to vector<8x32xf32>
    %361 = arith.mulf %360, %330 : vector<8x32xf32>
    %362 = arith.addf %358, %361 : vector<8x32xf32>
    %c3_210 = arith.constant 3 : index
    %363 = memref.load %arg18[%c3_210] : memref<27xf32, #tpu.memory_space<smem>>
    %364 = vector.broadcast %363 : f32 to vector<8x32xf32>
    %365 = arith.mulf %364, %331 : vector<8x32xf32>
    %366 = arith.addf %362, %365 : vector<8x32xf32>
    %c4_211 = arith.constant 4 : index
    %367 = memref.load %arg18[%c4_211] : memref<27xf32, #tpu.memory_space<smem>>
    %368 = vector.broadcast %367 : f32 to vector<8x32xf32>
    %369 = arith.mulf %368, %332 : vector<8x32xf32>
    %370 = arith.addf %366, %369 : vector<8x32xf32>
    %c5_212 = arith.constant 5 : index
    %371 = memref.load %arg18[%c5_212] : memref<27xf32, #tpu.memory_space<smem>>
    %372 = vector.broadcast %371 : f32 to vector<8x32xf32>
    %373 = arith.mulf %372, %333 : vector<8x32xf32>
    %374 = arith.addf %370, %373 : vector<8x32xf32>
    %c6_213 = arith.constant 6 : index
    %375 = memref.load %arg18[%c6_213] : memref<27xf32, #tpu.memory_space<smem>>
    %376 = vector.broadcast %375 : f32 to vector<8x32xf32>
    %377 = arith.mulf %376, %334 : vector<8x32xf32>
    %378 = arith.addf %374, %377 : vector<8x32xf32>
    %c7_214 = arith.constant 7 : index
    %379 = memref.load %arg18[%c7_214] : memref<27xf32, #tpu.memory_space<smem>>
    %380 = vector.broadcast %379 : f32 to vector<8x32xf32>
    %381 = arith.mulf %380, %335 : vector<8x32xf32>
    %382 = arith.addf %378, %381 : vector<8x32xf32>
    %c8_215 = arith.constant 8 : index
    %383 = memref.load %arg18[%c8_215] : memref<27xf32, #tpu.memory_space<smem>>
    %384 = vector.broadcast %383 : f32 to vector<8x32xf32>
    %385 = arith.mulf %384, %336 : vector<8x32xf32>
    %386 = arith.addf %382, %385 : vector<8x32xf32>
    %c0_216 = arith.constant 0 : index
    %387 = memref.load %arg19[%c0_216] : memref<3xf32, #tpu.memory_space<smem>>
    %388 = vector.broadcast %387 : f32 to vector<8x32xf32>
    %389 = arith.addf %386, %388 : vector<8x32xf32>
    %cst_217 = arith.constant 0.000000e+00 : f32
    %390 = vector.broadcast %cst_217 : f32 to vector<8x32xf32>
    %391 = arith.maximumf %389, %390 : vector<8x32xf32>
    %c0_218 = arith.constant 0 : index
    %392 = memref.load %arg20[%c0_218] : memref<3xf32, #tpu.memory_space<smem>>
    %393 = vector.broadcast %392 : f32 to vector<8x32xf32>
    %394 = arith.mulf %391, %393 : vector<8x32xf32>
    %c0_219 = arith.constant 0 : index
    %395 = memref.load %arg21[%c0_219] : memref<3xf32, #tpu.memory_space<smem>>
    %396 = vector.broadcast %395 : f32 to vector<8x32xf32>
    %397 = arith.addf %394, %396 : vector<8x32xf32>
    %cst_220 = arith.constant -3.000000e+38 : f32
    %398 = vector.broadcast %cst_220 : f32 to vector<8x32xf32>
    %399 = arith.select %347, %397, %398 : vector<8x32xi1>, vector<8x32xf32>
    %c0_i32_221 = arith.constant 0 : i32
    %400 = vector.broadcast %c0_i32_221 : i32 to vector<8x32xi32>
    %401 = arith.cmpi sge, %338, %400 : vector<8x32xi32>
    %c8_i32 = arith.constant 8 : i32
    %402 = vector.broadcast %c8_i32 : i32 to vector<8x32xi32>
    %403 = arith.cmpi slt, %338, %402 : vector<8x32xi32>
    %404 = arith.andi %401, %403 : vector<8x32xi1>
    %cst_222 = arith.constant -3.000000e+38 : f32
    %405 = vector.broadcast %cst_222 : f32 to vector<8x32xf32>
    %406 = arith.select %404, %399, %405 : vector<8x32xi1>, vector<8x32xf32>
    %cst_223 = arith.constant dense<0xFF800000> : vector<8xf32>
    %407 = vector.multi_reduction <maximumf>, %406, %cst_223 [1] : vector<8x32xf32> to vector<8xf32>
    %408 = vector.shape_cast %407 : vector<8xf32> to vector<8x1xf32>
    %cst_224 = arith.constant dense<0xFF800000> : vector<1xf32>
    %409 = vector.multi_reduction <maximumf>, %408, %cst_224 [0] : vector<8x1xf32> to vector<1xf32>
    %410 = vector.shape_cast %409 : vector<1xf32> to vector<1x1xf32>
    %c0_i32_225 = arith.constant 0 : i32
    %411 = vector.broadcast %c0_i32_225 : i32 to vector<1x9xi32>
    %412 = arith.cmpi eq, %348, %411 : vector<1x9xi32>
    %413 = vector.shape_cast %410 : vector<1x1xf32> to vector<1x1xf32>
    %414 = vector.broadcast %413 : vector<1x1xf32> to vector<1x9xf32>
    %415 = arith.select %412, %414, %349 : vector<1x9xi1>, vector<1x9xf32>
    %c8_i32_226 = arith.constant 8 : i32
    %416 = vector.broadcast %c8_i32_226 : i32 to vector<8x32xi32>
    %417 = arith.cmpi sge, %338, %416 : vector<8x32xi32>
    %c16_i32 = arith.constant 16 : i32
    %418 = vector.broadcast %c16_i32 : i32 to vector<8x32xi32>
    %419 = arith.cmpi slt, %338, %418 : vector<8x32xi32>
    %420 = arith.andi %417, %419 : vector<8x32xi1>
    %cst_227 = arith.constant -3.000000e+38 : f32
    %421 = vector.broadcast %cst_227 : f32 to vector<8x32xf32>
    %422 = arith.select %420, %399, %421 : vector<8x32xi1>, vector<8x32xf32>
    %cst_228 = arith.constant dense<0xFF800000> : vector<8xf32>
    %423 = vector.multi_reduction <maximumf>, %422, %cst_228 [1] : vector<8x32xf32> to vector<8xf32>
    %424 = vector.shape_cast %423 : vector<8xf32> to vector<8x1xf32>
    %cst_229 = arith.constant dense<0xFF800000> : vector<1xf32>
    %425 = vector.multi_reduction <maximumf>, %424, %cst_229 [0] : vector<8x1xf32> to vector<1xf32>
    %426 = vector.shape_cast %425 : vector<1xf32> to vector<1x1xf32>
    %c1_i32_230 = arith.constant 1 : i32
    %427 = vector.broadcast %c1_i32_230 : i32 to vector<1x9xi32>
    %428 = arith.cmpi eq, %348, %427 : vector<1x9xi32>
    %429 = vector.shape_cast %426 : vector<1x1xf32> to vector<1x1xf32>
    %430 = vector.broadcast %429 : vector<1x1xf32> to vector<1x9xf32>
    %431 = arith.select %428, %430, %415 : vector<1x9xi1>, vector<1x9xf32>
    %c16_i32_231 = arith.constant 16 : i32
    %432 = vector.broadcast %c16_i32_231 : i32 to vector<8x32xi32>
    %433 = arith.cmpi sge, %338, %432 : vector<8x32xi32>
    %c24_i32 = arith.constant 24 : i32
    %434 = vector.broadcast %c24_i32 : i32 to vector<8x32xi32>
    %435 = arith.cmpi slt, %338, %434 : vector<8x32xi32>
    %436 = arith.andi %433, %435 : vector<8x32xi1>
    %cst_232 = arith.constant -3.000000e+38 : f32
    %437 = vector.broadcast %cst_232 : f32 to vector<8x32xf32>
    %438 = arith.select %436, %399, %437 : vector<8x32xi1>, vector<8x32xf32>
    %cst_233 = arith.constant dense<0xFF800000> : vector<8xf32>
    %439 = vector.multi_reduction <maximumf>, %438, %cst_233 [1] : vector<8x32xf32> to vector<8xf32>
    %440 = vector.shape_cast %439 : vector<8xf32> to vector<8x1xf32>
    %cst_234 = arith.constant dense<0xFF800000> : vector<1xf32>
    %441 = vector.multi_reduction <maximumf>, %440, %cst_234 [0] : vector<8x1xf32> to vector<1xf32>
    %442 = vector.shape_cast %441 : vector<1xf32> to vector<1x1xf32>
    %c2_i32_235 = arith.constant 2 : i32
    %443 = vector.broadcast %c2_i32_235 : i32 to vector<1x9xi32>
    %444 = arith.cmpi eq, %348, %443 : vector<1x9xi32>
    %445 = vector.shape_cast %442 : vector<1x1xf32> to vector<1x1xf32>
    %446 = vector.broadcast %445 : vector<1x1xf32> to vector<1x9xf32>
    %447 = arith.select %444, %446, %431 : vector<1x9xi1>, vector<1x9xf32>
    %cst_236 = arith.constant 0.000000e+00 : f32
    %448 = vector.broadcast %cst_236 : f32 to vector<8x32xf32>
    %c9_237 = arith.constant 9 : index
    %449 = memref.load %arg18[%c9_237] : memref<27xf32, #tpu.memory_space<smem>>
    %450 = vector.broadcast %449 : f32 to vector<8x32xf32>
    %451 = arith.mulf %450, %328 : vector<8x32xf32>
    %452 = arith.addf %448, %451 : vector<8x32xf32>
    %c10_238 = arith.constant 10 : index
    %453 = memref.load %arg18[%c10_238] : memref<27xf32, #tpu.memory_space<smem>>
    %454 = vector.broadcast %453 : f32 to vector<8x32xf32>
    %455 = arith.mulf %454, %329 : vector<8x32xf32>
    %456 = arith.addf %452, %455 : vector<8x32xf32>
    %c11_239 = arith.constant 11 : index
    %457 = memref.load %arg18[%c11_239] : memref<27xf32, #tpu.memory_space<smem>>
    %458 = vector.broadcast %457 : f32 to vector<8x32xf32>
    %459 = arith.mulf %458, %330 : vector<8x32xf32>
    %460 = arith.addf %456, %459 : vector<8x32xf32>
    %c12 = arith.constant 12 : index
    %461 = memref.load %arg18[%c12] : memref<27xf32, #tpu.memory_space<smem>>
    %462 = vector.broadcast %461 : f32 to vector<8x32xf32>
    %463 = arith.mulf %462, %331 : vector<8x32xf32>
    %464 = arith.addf %460, %463 : vector<8x32xf32>
    %c13 = arith.constant 13 : index
    %465 = memref.load %arg18[%c13] : memref<27xf32, #tpu.memory_space<smem>>
    %466 = vector.broadcast %465 : f32 to vector<8x32xf32>
    %467 = arith.mulf %466, %332 : vector<8x32xf32>
    %468 = arith.addf %464, %467 : vector<8x32xf32>
    %c14 = arith.constant 14 : index
    %469 = memref.load %arg18[%c14] : memref<27xf32, #tpu.memory_space<smem>>
    %470 = vector.broadcast %469 : f32 to vector<8x32xf32>
    %471 = arith.mulf %470, %333 : vector<8x32xf32>
    %472 = arith.addf %468, %471 : vector<8x32xf32>
    %c15 = arith.constant 15 : index
    %473 = memref.load %arg18[%c15] : memref<27xf32, #tpu.memory_space<smem>>
    %474 = vector.broadcast %473 : f32 to vector<8x32xf32>
    %475 = arith.mulf %474, %334 : vector<8x32xf32>
    %476 = arith.addf %472, %475 : vector<8x32xf32>
    %c16 = arith.constant 16 : index
    %477 = memref.load %arg18[%c16] : memref<27xf32, #tpu.memory_space<smem>>
    %478 = vector.broadcast %477 : f32 to vector<8x32xf32>
    %479 = arith.mulf %478, %335 : vector<8x32xf32>
    %480 = arith.addf %476, %479 : vector<8x32xf32>
    %c17 = arith.constant 17 : index
    %481 = memref.load %arg18[%c17] : memref<27xf32, #tpu.memory_space<smem>>
    %482 = vector.broadcast %481 : f32 to vector<8x32xf32>
    %483 = arith.mulf %482, %336 : vector<8x32xf32>
    %484 = arith.addf %480, %483 : vector<8x32xf32>
    %c1_240 = arith.constant 1 : index
    %485 = memref.load %arg19[%c1_240] : memref<3xf32, #tpu.memory_space<smem>>
    %486 = vector.broadcast %485 : f32 to vector<8x32xf32>
    %487 = arith.addf %484, %486 : vector<8x32xf32>
    %cst_241 = arith.constant 0.000000e+00 : f32
    %488 = vector.broadcast %cst_241 : f32 to vector<8x32xf32>
    %489 = arith.maximumf %487, %488 : vector<8x32xf32>
    %c1_242 = arith.constant 1 : index
    %490 = memref.load %arg20[%c1_242] : memref<3xf32, #tpu.memory_space<smem>>
    %491 = vector.broadcast %490 : f32 to vector<8x32xf32>
    %492 = arith.mulf %489, %491 : vector<8x32xf32>
    %c1_243 = arith.constant 1 : index
    %493 = memref.load %arg21[%c1_243] : memref<3xf32, #tpu.memory_space<smem>>
    %494 = vector.broadcast %493 : f32 to vector<8x32xf32>
    %495 = arith.addf %492, %494 : vector<8x32xf32>
    %cst_244 = arith.constant -3.000000e+38 : f32
    %496 = vector.broadcast %cst_244 : f32 to vector<8x32xf32>
    %497 = arith.select %347, %495, %496 : vector<8x32xi1>, vector<8x32xf32>
    %c0_i32_245 = arith.constant 0 : i32
    %498 = vector.broadcast %c0_i32_245 : i32 to vector<8x32xi32>
    %499 = arith.cmpi sge, %338, %498 : vector<8x32xi32>
    %c8_i32_246 = arith.constant 8 : i32
    %500 = vector.broadcast %c8_i32_246 : i32 to vector<8x32xi32>
    %501 = arith.cmpi slt, %338, %500 : vector<8x32xi32>
    %502 = arith.andi %499, %501 : vector<8x32xi1>
    %cst_247 = arith.constant -3.000000e+38 : f32
    %503 = vector.broadcast %cst_247 : f32 to vector<8x32xf32>
    %504 = arith.select %502, %497, %503 : vector<8x32xi1>, vector<8x32xf32>
    %cst_248 = arith.constant dense<0xFF800000> : vector<8xf32>
    %505 = vector.multi_reduction <maximumf>, %504, %cst_248 [1] : vector<8x32xf32> to vector<8xf32>
    %506 = vector.shape_cast %505 : vector<8xf32> to vector<8x1xf32>
    %cst_249 = arith.constant dense<0xFF800000> : vector<1xf32>
    %507 = vector.multi_reduction <maximumf>, %506, %cst_249 [0] : vector<8x1xf32> to vector<1xf32>
    %508 = vector.shape_cast %507 : vector<1xf32> to vector<1x1xf32>
    %c3_i32 = arith.constant 3 : i32
    %509 = vector.broadcast %c3_i32 : i32 to vector<1x9xi32>
    %510 = arith.cmpi eq, %348, %509 : vector<1x9xi32>
    %511 = vector.shape_cast %508 : vector<1x1xf32> to vector<1x1xf32>
    %512 = vector.broadcast %511 : vector<1x1xf32> to vector<1x9xf32>
    %513 = arith.select %510, %512, %447 : vector<1x9xi1>, vector<1x9xf32>
    %c8_i32_250 = arith.constant 8 : i32
    %514 = vector.broadcast %c8_i32_250 : i32 to vector<8x32xi32>
    %515 = arith.cmpi sge, %338, %514 : vector<8x32xi32>
    %c16_i32_251 = arith.constant 16 : i32
    %516 = vector.broadcast %c16_i32_251 : i32 to vector<8x32xi32>
    %517 = arith.cmpi slt, %338, %516 : vector<8x32xi32>
    %518 = arith.andi %515, %517 : vector<8x32xi1>
    %cst_252 = arith.constant -3.000000e+38 : f32
    %519 = vector.broadcast %cst_252 : f32 to vector<8x32xf32>
    %520 = arith.select %518, %497, %519 : vector<8x32xi1>, vector<8x32xf32>
    %cst_253 = arith.constant dense<0xFF800000> : vector<8xf32>
    %521 = vector.multi_reduction <maximumf>, %520, %cst_253 [1] : vector<8x32xf32> to vector<8xf32>
    %522 = vector.shape_cast %521 : vector<8xf32> to vector<8x1xf32>
    %cst_254 = arith.constant dense<0xFF800000> : vector<1xf32>
    %523 = vector.multi_reduction <maximumf>, %522, %cst_254 [0] : vector<8x1xf32> to vector<1xf32>
    %524 = vector.shape_cast %523 : vector<1xf32> to vector<1x1xf32>
    %c4_i32 = arith.constant 4 : i32
    %525 = vector.broadcast %c4_i32 : i32 to vector<1x9xi32>
    %526 = arith.cmpi eq, %348, %525 : vector<1x9xi32>
    %527 = vector.shape_cast %524 : vector<1x1xf32> to vector<1x1xf32>
    %528 = vector.broadcast %527 : vector<1x1xf32> to vector<1x9xf32>
    %529 = arith.select %526, %528, %513 : vector<1x9xi1>, vector<1x9xf32>
    %c16_i32_255 = arith.constant 16 : i32
    %530 = vector.broadcast %c16_i32_255 : i32 to vector<8x32xi32>
    %531 = arith.cmpi sge, %338, %530 : vector<8x32xi32>
    %c24_i32_256 = arith.constant 24 : i32
    %532 = vector.broadcast %c24_i32_256 : i32 to vector<8x32xi32>
    %533 = arith.cmpi slt, %338, %532 : vector<8x32xi32>
    %534 = arith.andi %531, %533 : vector<8x32xi1>
    %cst_257 = arith.constant -3.000000e+38 : f32
    %535 = vector.broadcast %cst_257 : f32 to vector<8x32xf32>
    %536 = arith.select %534, %497, %535 : vector<8x32xi1>, vector<8x32xf32>
    %cst_258 = arith.constant dense<0xFF800000> : vector<8xf32>
    %537 = vector.multi_reduction <maximumf>, %536, %cst_258 [1] : vector<8x32xf32> to vector<8xf32>
    %538 = vector.shape_cast %537 : vector<8xf32> to vector<8x1xf32>
    %cst_259 = arith.constant dense<0xFF800000> : vector<1xf32>
    %539 = vector.multi_reduction <maximumf>, %538, %cst_259 [0] : vector<8x1xf32> to vector<1xf32>
    %540 = vector.shape_cast %539 : vector<1xf32> to vector<1x1xf32>
    %c5_i32 = arith.constant 5 : i32
    %541 = vector.broadcast %c5_i32 : i32 to vector<1x9xi32>
    %542 = arith.cmpi eq, %348, %541 : vector<1x9xi32>
    %543 = vector.shape_cast %540 : vector<1x1xf32> to vector<1x1xf32>
    %544 = vector.broadcast %543 : vector<1x1xf32> to vector<1x9xf32>
    %545 = arith.select %542, %544, %529 : vector<1x9xi1>, vector<1x9xf32>
    %cst_260 = arith.constant 0.000000e+00 : f32
    %546 = vector.broadcast %cst_260 : f32 to vector<8x32xf32>
    %c18 = arith.constant 18 : index
    %547 = memref.load %arg18[%c18] : memref<27xf32, #tpu.memory_space<smem>>
    %548 = vector.broadcast %547 : f32 to vector<8x32xf32>
    %549 = arith.mulf %548, %328 : vector<8x32xf32>
    %550 = arith.addf %546, %549 : vector<8x32xf32>
    %c19 = arith.constant 19 : index
    %551 = memref.load %arg18[%c19] : memref<27xf32, #tpu.memory_space<smem>>
    %552 = vector.broadcast %551 : f32 to vector<8x32xf32>
    %553 = arith.mulf %552, %329 : vector<8x32xf32>
    %554 = arith.addf %550, %553 : vector<8x32xf32>
    %c20 = arith.constant 20 : index
    %555 = memref.load %arg18[%c20] : memref<27xf32, #tpu.memory_space<smem>>
    %556 = vector.broadcast %555 : f32 to vector<8x32xf32>
    %557 = arith.mulf %556, %330 : vector<8x32xf32>
    %558 = arith.addf %554, %557 : vector<8x32xf32>
    %c21 = arith.constant 21 : index
    %559 = memref.load %arg18[%c21] : memref<27xf32, #tpu.memory_space<smem>>
    %560 = vector.broadcast %559 : f32 to vector<8x32xf32>
    %561 = arith.mulf %560, %331 : vector<8x32xf32>
    %562 = arith.addf %558, %561 : vector<8x32xf32>
    %c22 = arith.constant 22 : index
    %563 = memref.load %arg18[%c22] : memref<27xf32, #tpu.memory_space<smem>>
    %564 = vector.broadcast %563 : f32 to vector<8x32xf32>
    %565 = arith.mulf %564, %332 : vector<8x32xf32>
    %566 = arith.addf %562, %565 : vector<8x32xf32>
    %c23 = arith.constant 23 : index
    %567 = memref.load %arg18[%c23] : memref<27xf32, #tpu.memory_space<smem>>
    %568 = vector.broadcast %567 : f32 to vector<8x32xf32>
    %569 = arith.mulf %568, %333 : vector<8x32xf32>
    %570 = arith.addf %566, %569 : vector<8x32xf32>
    %c24 = arith.constant 24 : index
    %571 = memref.load %arg18[%c24] : memref<27xf32, #tpu.memory_space<smem>>
    %572 = vector.broadcast %571 : f32 to vector<8x32xf32>
    %573 = arith.mulf %572, %334 : vector<8x32xf32>
    %574 = arith.addf %570, %573 : vector<8x32xf32>
    %c25 = arith.constant 25 : index
    %575 = memref.load %arg18[%c25] : memref<27xf32, #tpu.memory_space<smem>>
    %576 = vector.broadcast %575 : f32 to vector<8x32xf32>
    %577 = arith.mulf %576, %335 : vector<8x32xf32>
    %578 = arith.addf %574, %577 : vector<8x32xf32>
    %c26 = arith.constant 26 : index
    %579 = memref.load %arg18[%c26] : memref<27xf32, #tpu.memory_space<smem>>
    %580 = vector.broadcast %579 : f32 to vector<8x32xf32>
    %581 = arith.mulf %580, %336 : vector<8x32xf32>
    %582 = arith.addf %578, %581 : vector<8x32xf32>
    %c2_261 = arith.constant 2 : index
    %583 = memref.load %arg19[%c2_261] : memref<3xf32, #tpu.memory_space<smem>>
    %584 = vector.broadcast %583 : f32 to vector<8x32xf32>
    %585 = arith.addf %582, %584 : vector<8x32xf32>
    %cst_262 = arith.constant 0.000000e+00 : f32
    %586 = vector.broadcast %cst_262 : f32 to vector<8x32xf32>
    %587 = arith.maximumf %585, %586 : vector<8x32xf32>
    %c2_263 = arith.constant 2 : index
    %588 = memref.load %arg20[%c2_263] : memref<3xf32, #tpu.memory_space<smem>>
    %589 = vector.broadcast %588 : f32 to vector<8x32xf32>
    %590 = arith.mulf %587, %589 : vector<8x32xf32>
    %c2_264 = arith.constant 2 : index
    %591 = memref.load %arg21[%c2_264] : memref<3xf32, #tpu.memory_space<smem>>
    %592 = vector.broadcast %591 : f32 to vector<8x32xf32>
    %593 = arith.addf %590, %592 : vector<8x32xf32>
    %cst_265 = arith.constant -3.000000e+38 : f32
    %594 = vector.broadcast %cst_265 : f32 to vector<8x32xf32>
    %595 = arith.select %347, %593, %594 : vector<8x32xi1>, vector<8x32xf32>
    %c0_i32_266 = arith.constant 0 : i32
    %596 = vector.broadcast %c0_i32_266 : i32 to vector<8x32xi32>
    %597 = arith.cmpi sge, %338, %596 : vector<8x32xi32>
    %c8_i32_267 = arith.constant 8 : i32
    %598 = vector.broadcast %c8_i32_267 : i32 to vector<8x32xi32>
    %599 = arith.cmpi slt, %338, %598 : vector<8x32xi32>
    %600 = arith.andi %597, %599 : vector<8x32xi1>
    %cst_268 = arith.constant -3.000000e+38 : f32
    %601 = vector.broadcast %cst_268 : f32 to vector<8x32xf32>
    %602 = arith.select %600, %595, %601 : vector<8x32xi1>, vector<8x32xf32>
    %cst_269 = arith.constant dense<0xFF800000> : vector<8xf32>
    %603 = vector.multi_reduction <maximumf>, %602, %cst_269 [1] : vector<8x32xf32> to vector<8xf32>
    %604 = vector.shape_cast %603 : vector<8xf32> to vector<8x1xf32>
    %cst_270 = arith.constant dense<0xFF800000> : vector<1xf32>
    %605 = vector.multi_reduction <maximumf>, %604, %cst_270 [0] : vector<8x1xf32> to vector<1xf32>
    %606 = vector.shape_cast %605 : vector<1xf32> to vector<1x1xf32>
    %c6_i32 = arith.constant 6 : i32
    %607 = vector.broadcast %c6_i32 : i32 to vector<1x9xi32>
    %608 = arith.cmpi eq, %348, %607 : vector<1x9xi32>
    %609 = vector.shape_cast %606 : vector<1x1xf32> to vector<1x1xf32>
    %610 = vector.broadcast %609 : vector<1x1xf32> to vector<1x9xf32>
    %611 = arith.select %608, %610, %545 : vector<1x9xi1>, vector<1x9xf32>
    %c8_i32_271 = arith.constant 8 : i32
    %612 = vector.broadcast %c8_i32_271 : i32 to vector<8x32xi32>
    %613 = arith.cmpi sge, %338, %612 : vector<8x32xi32>
    %c16_i32_272 = arith.constant 16 : i32
    %614 = vector.broadcast %c16_i32_272 : i32 to vector<8x32xi32>
    %615 = arith.cmpi slt, %338, %614 : vector<8x32xi32>
    %616 = arith.andi %613, %615 : vector<8x32xi1>
    %cst_273 = arith.constant -3.000000e+38 : f32
    %617 = vector.broadcast %cst_273 : f32 to vector<8x32xf32>
    %618 = arith.select %616, %595, %617 : vector<8x32xi1>, vector<8x32xf32>
    %cst_274 = arith.constant dense<0xFF800000> : vector<8xf32>
    %619 = vector.multi_reduction <maximumf>, %618, %cst_274 [1] : vector<8x32xf32> to vector<8xf32>
    %620 = vector.shape_cast %619 : vector<8xf32> to vector<8x1xf32>
    %cst_275 = arith.constant dense<0xFF800000> : vector<1xf32>
    %621 = vector.multi_reduction <maximumf>, %620, %cst_275 [0] : vector<8x1xf32> to vector<1xf32>
    %622 = vector.shape_cast %621 : vector<1xf32> to vector<1x1xf32>
    %c7_i32 = arith.constant 7 : i32
    %623 = vector.broadcast %c7_i32 : i32 to vector<1x9xi32>
    %624 = arith.cmpi eq, %348, %623 : vector<1x9xi32>
    %625 = vector.shape_cast %622 : vector<1x1xf32> to vector<1x1xf32>
    %626 = vector.broadcast %625 : vector<1x1xf32> to vector<1x9xf32>
    %627 = arith.select %624, %626, %611 : vector<1x9xi1>, vector<1x9xf32>
    %c16_i32_276 = arith.constant 16 : i32
    %628 = vector.broadcast %c16_i32_276 : i32 to vector<8x32xi32>
    %629 = arith.cmpi sge, %338, %628 : vector<8x32xi32>
    %c24_i32_277 = arith.constant 24 : i32
    %630 = vector.broadcast %c24_i32_277 : i32 to vector<8x32xi32>
    %631 = arith.cmpi slt, %338, %630 : vector<8x32xi32>
    %632 = arith.andi %629, %631 : vector<8x32xi1>
    %cst_278 = arith.constant -3.000000e+38 : f32
    %633 = vector.broadcast %cst_278 : f32 to vector<8x32xf32>
    %634 = arith.select %632, %595, %633 : vector<8x32xi1>, vector<8x32xf32>
    %cst_279 = arith.constant dense<0xFF800000> : vector<8xf32>
    %635 = vector.multi_reduction <maximumf>, %634, %cst_279 [1] : vector<8x32xf32> to vector<8xf32>
    %636 = vector.shape_cast %635 : vector<8xf32> to vector<8x1xf32>
    %cst_280 = arith.constant dense<0xFF800000> : vector<1xf32>
    %637 = vector.multi_reduction <maximumf>, %636, %cst_280 [0] : vector<8x1xf32> to vector<1xf32>
    %638 = vector.shape_cast %637 : vector<1xf32> to vector<1x1xf32>
    %c8_i32_281 = arith.constant 8 : i32
    %639 = vector.broadcast %c8_i32_281 : i32 to vector<1x9xi32>
    %640 = arith.cmpi eq, %348, %639 : vector<1x9xi32>
    %641 = vector.shape_cast %638 : vector<1x1xf32> to vector<1x1xf32>
    %642 = vector.broadcast %641 : vector<1x1xf32> to vector<1x9xf32>
    %643 = arith.select %640, %642, %627 : vector<1x9xi1>, vector<1x9xf32>
    %c0_282 = arith.constant 0 : index
    %c0_283 = arith.constant 0 : index
    %c0_284 = arith.constant 0 : index
    %644 = vector.load %arg22[%c0_282, %c0_283, %c0_284] : memref<1x1x9xf32, #tpu.memory_space<vmem>>, vector<1x1x9xf32>
    %645 = vector.shape_cast %644 : vector<1x1x9xf32> to vector<1x9xf32>
    %646 = vector.shape_cast %643 : vector<1x9xf32> to vector<1x1x9xf32>
    tpu.vector_store %arg22[%c0_282, %c0_283, %c0_284], %646 {strides = array<i32>} : memref<1x1x9xf32, #tpu.memory_space<vmem>>, vector<1x1x9xf32>,
    return
  }
  func.func @transform_0(%arg0: i32) -> (i32, i32, i32) {
    %c0_i32 = arith.constant 0 : i32
    %c0_i32_0 = arith.constant 0 : i32
    %c0_i32_1 = arith.constant 0 : i32
    return %arg0, %c0_i32, %c0_i32_0 : i32, i32, i32
  }
  func.func @transform_1(%arg0: i32) -> (i32, i32) {
    %c0_i32 = arith.constant 0 : i32
    %c0_i32_0 = arith.constant 0 : i32
    %c0_i32_1 = arith.constant 0 : i32
    return %c0_i32, %c0_i32_0 : i32, i32
  }
  func.func @transform_2(%arg0: i32) -> (i32, i32) {
    %c0_i32 = arith.constant 0 : i32
    %c0_i32_0 = arith.constant 0 : i32
    %c0_i32_1 = arith.constant 0 : i32
    return %c0_i32, %c0_i32_0 : i32, i32
  }
  func.func @transform_3(%arg0: i32) -> (i32, i32) {
    %c0_i32 = arith.constant 0 : i32
    %c0_i32_0 = arith.constant 0 : i32
    %c0_i32_1 = arith.constant 0 : i32
    return %c0_i32, %c0_i32_0 : i32, i32
  }
  func.func @transform_4(%arg0: i32) -> (i32, i32) {
    %c0_i32 = arith.constant 0 : i32
    %c0_i32_0 = arith.constant 0 : i32
    %c0_i32_1 = arith.constant 0 : i32
    return %c0_i32, %c0_i32_0 : i32, i32
  }
  func.func @transform_5(%arg0: i32) -> (i32, i32, i32, i32) {
    %c0_i32 = arith.constant 0 : i32
    %c0_i32_0 = arith.constant 0 : i32
    %c0_i32_1 = arith.constant 0 : i32
    %c0_i32_2 = arith.constant 0 : i32
    %c0_i32_3 = arith.constant 0 : i32
    return %c0_i32, %c0_i32_0, %c0_i32_1, %c0_i32_2 : i32, i32, i32, i32
  }
  func.func @transform_6(%arg0: i32) -> (i32, i32) {
    %c0_i32 = arith.constant 0 : i32
    %c0_i32_0 = arith.constant 0 : i32
    %c0_i32_1 = arith.constant 0 : i32
    return %c0_i32, %c0_i32_0 : i32, i32
  }
  func.func @transform_7(%arg0: i32) -> (i32, i32, i32, i32) {
    %c0_i32 = arith.constant 0 : i32
    %c0_i32_0 = arith.constant 0 : i32
    %c0_i32_1 = arith.constant 0 : i32
    %c0_i32_2 = arith.constant 0 : i32
    %c0_i32_3 = arith.constant 0 : i32
    return %c0_i32, %c0_i32_0, %c0_i32_1, %c0_i32_2 : i32, i32, i32, i32
  }
  func.func @transform_8(%arg0: i32) -> (i32, i32) {
    %c0_i32 = arith.constant 0 : i32
    %c0_i32_0 = arith.constant 0 : i32
    %c0_i32_1 = arith.constant 0 : i32
    return %c0_i32, %c0_i32_0 : i32, i32
  }
  func.func @transform_9(%arg0: i32) -> (i32, i32) {
    %c0_i32 = arith.constant 0 : i32
    %c0_i32_0 = arith.constant 0 : i32
    %c0_i32_1 = arith.constant 0 : i32
    return %c0_i32, %c0_i32_0 : i32, i32
  }
  func.func @transform_10(%arg0: i32) -> (i32, i32) {
    %c0_i32 = arith.constant 0 : i32
    %c0_i32_0 = arith.constant 0 : i32
    %c0_i32_1 = arith.constant 0 : i32
    return %c0_i32, %c0_i32_0 : i32, i32
  }
  func.func @transform_11(%arg0: i32) -> (i32, i32, i32) {
    %c0_i32 = arith.constant 0 : i32
    %c0_i32_0 = arith.constant 0 : i32
    %c0_i32_1 = arith.constant 0 : i32
    %c0_i32_2 = arith.constant 0 : i32
    return %c0_i32, %c0_i32_0, %c0_i32_1 : i32, i32, i32
  }
  func.func @transform_12(%arg0: i32) -> (i32, i32) {
    %c0_i32 = arith.constant 0 : i32
    %c0_i32_0 = arith.constant 0 : i32
    %c0_i32_1 = arith.constant 0 : i32
    return %c0_i32, %c0_i32_0 : i32, i32
  }
  func.func @transform_13(%arg0: i32) -> (i32, i32, i32) {
    %c0_i32 = arith.constant 0 : i32
    %c0_i32_0 = arith.constant 0 : i32
    %c0_i32_1 = arith.constant 0 : i32
    %c0_i32_2 = arith.constant 0 : i32
    return %c0_i32, %c0_i32_0, %c0_i32_1 : i32, i32, i32
  }
  func.func @transform_14(%arg0: i32) -> (i32, i32) {
    %c0_i32 = arith.constant 0 : i32
    %c0_i32_0 = arith.constant 0 : i32
    %c0_i32_1 = arith.constant 0 : i32
    return %c0_i32, %c0_i32_0 : i32, i32
  }
  func.func @transform_15(%arg0: i32) -> (i32, i32) {
    %c0_i32 = arith.constant 0 : i32
    %c0_i32_0 = arith.constant 0 : i32
    %c0_i32_1 = arith.constant 0 : i32
    return %c0_i32, %c0_i32_0 : i32, i32
  }
  func.func @transform_16(%arg0: i32) -> (i32, i32) {
    %c0_i32 = arith.constant 0 : i32
    %c0_i32_0 = arith.constant 0 : i32
    %c0_i32_1 = arith.constant 0 : i32
    return %c0_i32, %c0_i32_0 : i32, i32
  }
  func.func @transform_17(%arg0: i32) -> i32 {
    %c0_i32 = arith.constant 0 : i32
    %c0_i32_0 = arith.constant 0 : i32
    return %c0_i32 : i32
  }
  func.func @transform_18(%arg0: i32) -> i32 {
    %c0_i32 = arith.constant 0 : i32
    %c0_i32_0 = arith.constant 0 : i32
    return %c0_i32 : i32
  }
  func.func @transform_19(%arg0: i32) -> i32 {
    %c0_i32 = arith.constant 0 : i32
    %c0_i32_0 = arith.constant 0 : i32
    return %c0_i32 : i32
  }
  func.func @transform_20(%arg0: i32) -> i32 {
    %c0_i32 = arith.constant 0 : i32
    %c0_i32_0 = arith.constant 0 : i32
    return %c0_i32 : i32
  }
  func.func @transform_21(%arg0: i32) -> (i32, i32, i32) {
    %c0_i32 = arith.constant 0 : i32
    %c0_i32_0 = arith.constant 0 : i32
    %c0_i32_1 = arith.constant 0 : i32
    return %arg0, %c0_i32, %c0_i32_0 : i32, i32, i32
  }
}

</mosaic_0001>

<bundles_post_ra>
// kernel: vit_encoder_forward.1
= control target key start
LH: loop header
LB: loop body
LE: loop exit
PB: predicated region body
PF: predicated region fallthrough
CT: control target
= control target key end

     0   :  { %s7473_s0 = inlined_call_operand.vmem [shape: f32[2,10,768], index: 0, kind: input, shape index: {}]   ;;  %s7474_s1 = inlined_call_operand.vmem [shape: f32[768,32], index: 1, kind: input, shape index: {}]   ;;  %s7475_s2 = inlined_call_operand.vmem [shape: f32[10,32], index: 2, kind: input, shape index: {}]   ;;  %s7476_s3 = inlined_call_operand.vmem [shape: f32[2,32], index: 3, kind: input, shape index: {}]   ;;  %s7477_s4 = inlined_call_operand.vmem [shape: f32[2,32], index: 4, kind: input, shape index: {}]   ;;  %s7478_s5 = inlined_call_operand.vmem [shape: f32[2,6,32,16], index: 5, kind: input, shape index: {}]   ;;  %s7479_s6 = inlined_call_operand.vmem [shape: f32[12,16], index: 6, kind: input, shape index: {}]   ;;  %s7480_s7 = inlined_call_operand.vmem [shape: f32[2,2,16,32], index: 7, kind: input, shape index: {}]   ;;  %s7481_s8 = inlined_call_operand.vmem [shape: f32[2,32], index: 8, kind: input, shape index: {}]   ;;  %s7482_s9 = inlined_call_operand.vmem [shape: f32[2,32], index: 9, kind: input, shape index: {}]   ;;  %s7483_s10 = inlined_call_operand.vmem [shape: f32[2,32], index: 10, kind: input, shape index: {}]   ;;  %s7484_s11 = inlined_call_operand.vmem [shape: f32[2,32,128], index: 11, kind: input, shape index: {}]   ;;  %s7485_s12 = inlined_call_operand.vmem [shape: f32[2,128], index: 12, kind: input, shape index: {}]   ;;  %s7486_s13 = inlined_call_operand.vmem [shape: f32[2,128,32], index: 13, kind: input, shape index: {}]   ;;  %s7487_s14 = inlined_call_operand.vmem [shape: f32[2,32], index: 14, kind: input, shape index: {}]   ;;  %s7488_s15 = inlined_call_operand.vmem [shape: f32[1,32], index: 15, kind: input, shape index: {}]   ;;  %s7489_s16 = inlined_call_operand.vmem [shape: f32[1,32], index: 16, kind: input, shape index: {}]   ;;  %s7490_s17 = inlined_call_operand.vmem [shape: f32[27], index: 17, kind: input, shape index: {}]   ;;  %s7491_s18 = inlined_call_operand.vmem [shape: f32[3], index: 18, kind: input, shape index: {}]   ;;  %s7492_s19 = inlined_call_operand.vmem [shape: f32[3], index: 19, kind: input, shape index: {}]   ;;  %s7493_s20 = inlined_call_operand.vmem [shape: f32[3], index: 20, kind: input, shape index: {}]   ;;  %s7494_s21 = inlined_call_operand.hbm [shape: f32[2,1,9], index: 21, kind: output, shape index: {}]  }
   0x1   :  { %7508 = sst [smem:[#allocation20_spill]] %s7473_s0 }
   0x2   :  { %7509 = sst [smem:[#allocation21_spill]] %s7474_s1 }
   0x3   :  { %7510 = sst [smem:[#allocation22_spill]] %s7475_s2 }
   0x4   :  { %7511 = sst [smem:[#allocation23_spill]] %s7476_s3 }
   0x5   :  { %7512 = sst [smem:[#allocation24_spill]] %s7477_s4 }
   0x6   :  { %7513 = sst [smem:[#allocation25_spill]] %s7478_s5 }
   0x7   :  { %7514 = sst [smem:[#allocation26_spill]] %s7479_s6 }
   0x8   :  { %7515 = sst [smem:[#allocation27_spill]] %s7480_s7 }
   0x9   :  { %7516 = sst [smem:[#allocation28_spill]] %s7481_s8 }
   0xa   :  { %7517 = sst [smem:[#allocation29_spill]] %s7482_s9 }
   0xb   :  { %7518 = sst [smem:[#allocation30_spill]] %s7483_s10 }
   0xc   :  { %7519 = sst [smem:[#allocation31_spill]] %s7484_s11 }
   0xd   :  { %7520 = sst [smem:[#allocation32_spill]] %s7485_s12 }
   0xe   :  { %7521 = sst [smem:[#allocation33_spill]] %s7486_s13 }
   0xf   :  { %7522 = sst [smem:[#allocation34_spill]] %s7487_s14 }
  0x10   :  { %7523 = sst [smem:[#allocation35_spill]] %s7488_s15 }
  0x11   :  { %7524 = sst [smem:[#allocation36_spill]] %s7489_s16 }
  0x12   :  { %7525 = sst [smem:[#allocation37_spill]] %s7490_s17 }
  0x13   :  { %7526 = sst [smem:[#allocation38_spill]] %s7491_s18 }
  0x14   :  { %7527 = sst [smem:[#allocation39_spill]] %s7492_s19 }
  0x15   :  { %7528 = sst [smem:[#allocation40_spill]] %s7493_s20 }
  0x16   :  { %26 = vsyncpa [#allocation4], 0 }
  0x17   :  { %27 = vsyncpa [#allocation6], 0 }
  0x18   :  { %28 = vsyncpa [#allocation9], 0 }
  0x19   :  { %29 = vsyncpa [#allocation3], 0 }
  0x1a   :  { %31 = vsyncpa [#allocation3 + $0x1], 0  ;;  %s6139_s2 = smov 0   ;;  %s6141_s25 = smov 0  }
  0x1b   :  { %s6143_s26 = smov 0   ;;  %s6145_s27 = smov 0  }
  0x1c LB: > { %7529 = sst [smem:[#allocation15_spill]] %s6008_s2  ;;  %s6160_s3 = sadd.s32 4294967295, %s6020_s27   ;;  %s6020_s27 = sphi %s6145_s27, %s7585_s27   ;;  %s6016_s26 = sphi %s6143_s26, %s7587_s26   ;;  %s6012_s25 = sphi %s6141_s25, %s7589_s25   ;;  %s6008_s2 = sphi %s6139_s2, %s7588_s2  }
  0x1d   : > { %7530 = sst [smem:[#allocation16_spill]] %s6016_s26  ;;  %s4529_s28 = sadd.s32 4294967294, %s6020_s27  }
  0x1e   : > { %s6164_s29 = sadd.s32 1, %s6020_s27   ;;  %s490_s0 = sadd.s32 1, %s6016_s26 }
  0x1f   : > { %7531 = sst [smem:[#allocation17_spill]] %s6164_s29  ;;  %s487_s4 = ssub.s32 %s6020_s27, %s6164_s29 }
  0x20   : > { %p500_p0 = scmp.ne.s32.totalorder %s6016_s26, %s6012_s25  ;;  %p488_p1 = scmp.eq.s32.totalorder %s487_s4, 0 }
  0x21   : > { %p501_p2 = scmp.eq.s32.totalorder %s6160_s3, 1  ;;  %p506_p3 = scmp.ne.s32.totalorder %s6012_s25, %s6008_s2 }
  0x22   : > { %p507_p4 = scmp.eq.s32.totalorder %s4529_s28, 1  ;;  %p4530_p7 = scmp.ge.s32.totalorder %s6020_s27, 1 }
  0x23   : > { %s6175_s30 = scalar_select %p488_p1, %s6016_s26, %s490_s0  }
  0x24   : > { %p6177_p5 = por %p501_p2, %p500_p0  ;;  %p6181_p6 = por %p507_p4, %p506_p3 }
  0x25   : > { %7532 = sst [smem:[#allocation18_spill]] %s6175_s30  ;;  %p514_p8 = scmp.lt.s32.totalorder %s6020_s27, 3 }
  0x26   : > { %s7533_s5 = scalar_select %p6177_p5, 1, 0 }
  0x27   : > { %s7534_s22 = scalar_select %p6181_p6, 1, 0 }
  0x28   : > { %p7505_p9 = scmp.eq.s32.totalorder %s6160_s3, 0  ;;  %p6188_p10 = pnand %p4530_p7, %p514_p8 }
  0x29   : > { %7535 = sst [smem:[#allocation19_spill]] %s7534_s22  ;;  %s7537_s18 = sld [smem:[#allocation38_spill]] }
  0x2a   : > { %s7536_s23 = scalar_select %p6188_p10, 1, 0 }
  0x2b   : > { %p5762_p11 = pneg %p6188_p10  ;;  %s7538_s17 = sld [smem:[#allocation37_spill]] }
  0x2c   : > { %s7540_s19 = sld [smem:[#allocation39_spill]]  ;;  %s7541_s20 = sld [smem:[#allocation40_spill]] }
  0x2d   : > { %p6202_p12 = pnand %p7505_p9, %p5762_p11 }
  0x2f   : > { %s586_s28 = sshll.u32 %s7537_s18, 4  ;;  %p5888_p0 = pneg %p6202_p12  ;;  %s587_s28 = int_to_ptr.vmem [resolvable:$true] %s586_s28 }
  0x30   : > { %s5886_s0 = scalar_lea.vmem %s587_s28, 16  ;;  %p5894_p3 = scmp.lt.s32.totalorder %s587_s28, %s587_s28 }
  0x31   : > { %s575_s30 = sshll.u32 %s7538_s17, 4  ;;  %p5887_p13 = scmp.ne.s32.totalorder %s587_s28, %s5886_s0  ;;  %s576_s30 = int_to_ptr.vmem [resolvable:$true] %s575_s30 }
  0x32   : > { %s597_s1 = sshll.u32 %s7540_s19, 4  ;;  %s608_s2 = sshll.u32 %s7541_s20, 4  ;;  %s6209_s1 = int_to_ptr.vmem [resolvable:$true] %s597_s1  ;;  %s609_s2 = int_to_ptr.vmem [resolvable:$true] %s608_s2 }
  0x33   : > { %p5889_p1 = pnand %p5888_p0, %p5887_p13  ;;  %p5895_p4 = scmp.lt.s32.totalorder %s5886_s0, %s5886_s0 }
  0x35   : > { %p5890_p2 = pneg %p5889_p1  ;;  %p5896_p7 = por %p5895_p4, %p5894_p3 }
  0x37   : > { %p5897_p8 = pnand %p5896_p7, %p5890_p2 }
  0x39   : > { %5900 = shalt.err (!%p5897_p8)
}
  0x3a   : > { %s6022_s29 = smov [#allocation5]   ;;  %s5901_s18 = scalar_lea.vmem %s576_s30, 16 }
  0x3b   : > { %5768 = dma.vmem_to_smem (!%p6202_p12), %s587_s28, 16, %s6022_s29, [#allocation6]  }
  0x3c   : > { %p5902_p11 = scmp.ne.s32.totalorder %s576_s30, %s5901_s18  ;;  %p5909_p5 = scmp.lt.s32.totalorder %s576_s30, %s576_s30 }
  0x3d   : > { %p5910_p10 = scmp.lt.s32.totalorder %s5901_s18, %s5901_s18 }
  0x3e   : > { %p5904_p9 = pnand %p5902_p11, %p5888_p0 }
  0x3f   : > { %p5911_p13 = por %p5910_p10, %p5909_p5 }
  0x40   : > { %p5905_p6 = pneg %p5904_p9 }
  0x42   : > { %p5912_p1 = pnand %p5911_p13, %p5905_p6 }
  0x44   : > { %5915 = shalt.err (!%p5912_p1)
}
  0x45   : > { %s6023_s22 = smov [#allocation2]   ;;  %s5916_s28 = scalar_lea.vmem %s6209_s1, 16 }
  0x46   : > { %5765 = dma.vmem_to_smem (!%p6202_p12), %s576_s30, 16, %s6023_s22, [#allocation4]  }
  0x47   : > { %p5917_p2 = scmp.ne.s32.totalorder %s6209_s1, %s5916_s28  ;;  %p5924_p9 = scmp.lt.s32.totalorder %s6209_s1, %s6209_s1 }
  0x48   : > { %p5925_p7 = scmp.lt.s32.totalorder %s5916_s28, %s5916_s28 }
  0x49   : > { %p5919_p3 = pnand %p5917_p2, %p5888_p0 }
  0x4a   : > { %p5926_p5 = por %p5925_p7, %p5924_p9 }
  0x4b   : > { %p5920_p4 = pneg %p5919_p3 }
  0x4d   : > { %p5927_p6 = pnand %p5926_p5, %p5920_p4 }
  0x4f   : > { %5930 = shalt.err (!%p5927_p6)
}
  0x50   : > { %s6024_s4 = smov [#allocation7]   ;;  %s5931_s0 = scalar_lea.vmem %s609_s2, 16 }
  0x51   : > { %5771 = dma.vmem_to_smem (!%p6202_p12), %s6209_s1, 16, %s6024_s4, [#allocation6]  }
  0x52   : > { %p5932_p10 = scmp.ne.s32.totalorder %s609_s2, %s5931_s0  ;;  %p5939_p13 = scmp.lt.s32.totalorder %s609_s2, %s609_s2 }
  0x53   : > { %p5940_p1 = scmp.lt.s32.totalorder %s5931_s0, %s5931_s0 }
  0x54   : > { %p5934_p8 = pnand %p5932_p10, %p5888_p0 }
  0x55   : > { %p5941_p2 = por %p5940_p1, %p5939_p13 }
  0x56   : > { %p5935_p11 = pneg %p5934_p8 }
  0x58   : > { %p5942_p3 = pnand %p5941_p2, %p5935_p11 }
  0x5a   : > { %5945 = shalt.err (!%p5942_p3)
}
  0x5b   : > { %s6025_s29 = smov [#allocation8]   ;;  %p7542_p4 = scmp.ne.s32.totalorder %s7536_s23, 0 }
  0x5c   : > { %5774 = dma.vmem_to_smem (!%p6202_p12), %s609_s2, 16, %s6025_s29, [#allocation9]  }
  0x5d   : > { %629 = sbr.rel (%p7542_p4) target bundleno = 7660 (0x1dec), region = 104  ;;  %p7543_p9 = scmp.eq.s32.totalorder (!%p7542_p4), %s6160_s3, 0 }
  0x64   : > { %5991 = dma.done.wait (%p7543_p9), [#allocation4], 16   ;;  %p7544_p7 = pmov %p7543_p9 }
  0x66   : > { %5993 = vsyncadd (%p7544_p7), [#allocation4], 4294967280  ;;  %p7545_p0 = pmov %p7544_p7 }
  0x68   : > { %5995 = dma.done.wait (%p7545_p0), [#allocation6], 32   ;;  %p7546_p5 = pmov %p7545_p0 }
  0x69   : > { %p7547_p6 = pmov %p7545_p0 }
  0x6a   : > { %5997 = vsyncadd (%p7546_p5), [#allocation6], 4294967264 }
  0x6b   : > { %5999 = dma.done.wait (%p7547_p6), [#allocation9], 16   ;;  %p7548_p12 = pmov %p7545_p0 }
  0x6d   : > { %6001 = vsyncadd (%p7548_p12), [#allocation9], 4294967280 }
  0x6e   : > { %647 = sfence }
  0x6f   : > { %s7549_s23 = sld [smem:[#allocation21_spill]]  ;;  %p701_p10 = scmp.lt.s32.totalorder %s6160_s3, 1  ;;  %vm1043_vm0 = vcmask 261120   ;;  %vm1047_vm1 = vcmask 254976   ;;  %vm1345_vm2 = vcmask 130048   ;;  %vm1465_vm4 = vcmask 1041408  }
  0x70   : > { %s7550_s2 = sld [smem:[#allocation20_spill]]  ;;  %s7551_s22 = sld [smem:[#allocation22_spill]]  ;;  %vm6671_vm3 = vmpackc.low %vm1345_vm2, %vm1345_vm2  ;;  %vm6026_vm5 = vmmov 1   ;;  %vm1439_vm7 = vcmask 74752   ;;  %vm1435_vm8 = vcmask 80896  }
  0x71   : > { %s6353_s28 = scalar_select %p701_p10, %s6160_s3, 1  ;;  %vm6690_vm6 = vmpackc.low %vm1465_vm4, %vm6026_vm5 }
  0x72   : > { %s7555_s29 = sld [smem:[#allocation24_spill]]  ;;  %s7556_s6 = sld [smem:[#allocation26_spill]] }
  0x73   : > { %s5743_s18 = smul.u32 96, %s6353_s28  ;;  %s7561_s7 = sld [smem:[#allocation27_spill]] }
  0x74   : > { %s7562_s8 = sld [smem:[#allocation28_spill]]  ;;  %s7563_s11 = sld [smem:[#allocation31_spill]] }
  0x75   : > { %v734_v0 = vld [vmem:[%s7549_s23 + $0x80] sm:$0xff]  ;;  %v735_v1 = vld [vmem:[%s7549_s23 + $0x88] sm:$0xff]  ;;  %v736_v11 = vld [vmem:[%s7549_s23 + $0x90] sm:$0xff]  ;;  %s7564_s9 = sld [smem:[#allocation29_spill]]  ;;  %s7565_s10 = sld [smem:[#allocation30_spill]] }
  0x76   : > { %v718_v2 = vld [vmem:[%s7549_s23] sm:$0xff]  ;;  %v5383_v3 = vpack.c.bf16 %v735_v1, %v734_v0  ;;  %v719_v4 = vld [vmem:[%s7549_s23 + $0x8] sm:$0xff]  ;;  %v737_v13 = vld [vmem:[%s7549_s23 + $0x98] sm:$0xff]  ;;  %s6410_s26 = scalar_lea.vmem %s7550_s2, %s5743_s18  ;;  %s7552_s18 = sld [smem:[#allocation25_spill]] }
  0x77   : > { %v766_v5 = vld [vmem:[%s7549_s23 + $0x180] sm:$0xff]  ;;  %v767_v6 = vld [vmem:[%s7549_s23 + $0x188] sm:$0xff]  ;;  %v5385_v7 = vpack.c.bf16 %v719_v4, %v718_v2  ;;  %v720_v14 = vld [vmem:[%s7549_s23 + $0x10] sm:$0xff]  ;;  %v5387_v16 = vpack.c.bf16 %v737_v13, %v736_v11  ;;  %s7566_s13 = sld [smem:[#allocation33_spill]]  ;;  %s7567_s12 = sld [smem:[#allocation32_spill]] }
  0x78   : > { %v5415_v8 = vpack.c.bf16 %v767_v6, %v766_v5  ;;  %v750_v9 = vld [vmem:[%s7549_s23 + $0x100] sm:$0xff]  ;;  %v751_v10 = vld [vmem:[%s7549_s23 + $0x108] sm:$0xff]  ;;  %5384 = vmatprep.subr.bf16.mxu0 %v5383_v3  ;;  %v721_v15 = vld [vmem:[%s7549_s23 + $0x18] sm:$0xff]  ;;  %s7568_s14 = sld [smem:[#allocation34_spill]]  ;;  %s4726_s20 = sld [smem:[#allocation2 + $0x3]] }
  0x79   : > { %v5417_v12 = vpack.c.bf16 %v751_v10, %v750_v9  ;;  %5386 = vmatpush3.bf16.msra.mxu0 %v5385_v7  ;;  %v5389_v17 = vpack.c.bf16 %v721_v15, %v720_v14  ;;  %v768_v18 = vld [vmem:[%s7549_s23 + $0x190] sm:$0xff]  ;;  %v769_v19 = vld [vmem:[%s7549_s23 + $0x198] sm:$0xff]  ;;  %v738_v23 = vld [vmem:[%s7549_s23 + $0xa0] sm:$0xff]  ;;  %s7174_s19 = sld [smem:[#allocation2 + $0x6]]  ;;  %s7176_s2 = sld [smem:[#allocation2 + $0xc]] }
  0x7a   : > { %5416 = vmatprep.subr.bf16.mxu1 %v5415_v8  ;;  %v752_v20 = vld [vmem:[%s7549_s23 + $0x110] sm:$0xff]  ;;  %v5419_v21 = vpack.c.bf16 %v769_v19, %v768_v18  ;;  %v753_v22 = vld [vmem:[%s7549_s23 + $0x118] sm:$0xff]  ;;  %v739_v24 = vld [vmem:[%s7549_s23 + $0xa8] sm:$0xff]  ;;  %5388 = vmatprep.subr.bf16.mxu0 %v5387_v16  ;;  %s7178_s28 = sld [smem:[#allocation2 + $0xf]]  ;;  %s7573_s15 = sld [smem:[#allocation35_spill]] }
  0x7b   : > { %5418 = vmatpush3.bf16.msra.mxu1 %v5417_v12  ;;  %v5421_v25 = vpack.c.bf16 %v753_v22, %v752_v20  ;;  %v5391_v26 = vpack.c.bf16 %v739_v24, %v738_v23  ;;  %v722_v27 = vld [vmem:[%s7549_s23 + $0x20] sm:$0xff]  ;;  %v723_v28 = vld [vmem:[%s7549_s23 + $0x28] sm:$0xff]  ;;  %v740_v35 = vld [vmem:[%s7549_s23 + $0xb0] sm:$0xff]  ;;  %s7183_s4 = sld [smem:[#allocation2 + $0x15]]  ;;  %s7185_s24 = sld [smem:[#allocation2 + $0x18]] }
  0x7c   : > { %v770_v29 = vld [vmem:[%s7549_s23 + $0x1a0] sm:$0xff]  ;;  %5420 = vmatprep.subr.bf16.mxu1 %v5419_v21  ;;  %v771_v30 = vld [vmem:[%s7549_s23 + $0x1a8] sm:$0xff]  ;;  %v5393_v33 = vpack.c.bf16 %v723_v28, %v722_v27  ;;  %v741_v36 = vld [vmem:[%s7549_s23 + $0xb8] sm:$0xff]  ;;  %s7574_s16 = sld [smem:[#allocation36_spill]]  ;;  %s7238_s17 = sld [smem:[#allocation2 + $0x7]] }
  0x7d   : > { %v754_v31 = vld [vmem:[%s7549_s23 + $0x120] sm:$0xff]  ;;  %v755_v32 = vld [vmem:[%s7549_s23 + $0x128] sm:$0xff]  ;;  %5390 = vmatpush3.bf16.msra.mxu0 %v5389_v17  ;;  %v5423_v34 = vpack.c.bf16 %v771_v30, %v770_v29  ;;  %v724_v37 = vld [vmem:[%s7549_s23 + $0x30] sm:$0xff]  ;;  %v5395_v39 = vpack.c.bf16 %v741_v36, %v740_v35  ;;  %s7240_s1 = sld [smem:[#allocation2 + $0xd]]  ;;  %s7248_s0 = sld [smem:[#allocation2 + $0x1]] }
  0x7e   : > { %5392 = vmatprep.subr.bf16.mxu0 %v5391_v26  ;;  %v5425_v38 = vpack.c.bf16 %v755_v32, %v754_v31  ;;  %v725_v40 = vld [vmem:[%s7549_s23 + $0x38] sm:$0xff]  ;;  %v772_v41 = vld [vmem:[%s7549_s23 + $0x1b0] sm:$0xff]  ;;  %v742_v46 = vld [vmem:[%s7549_s23 + $0xc0] sm:$0xff]  ;;  %p7581_p11 = scmp.ne.s32.totalorder %s7533_s5, 0 }
  0x7f   : > { %5422 = vmatpush3.bf16.msra.mxu1 %v5421_v25  ;;  %v773_v42 = vld [vmem:[%s7549_s23 + $0x1b8] sm:$0xff]  ;;  %v756_v44 = vld [vmem:[%s7549_s23 + $0x130] sm:$0xff]  ;;  %v743_v47 = vld [vmem:[%s7549_s23 + $0xc8] sm:$0xff]  ;;  %v5397_v48 = vpack.c.bf16 %v725_v40, %v724_v37 }
  0x80   : > { %5424 = vmatprep.subr.bf16.mxu1 %v5423_v34  ;;  %v5427_v43 = vpack.c.bf16 %v773_v42, %v772_v41  ;;  %v757_v45 = vld [vmem:[%s7549_s23 + $0x138] sm:$0xff]  ;;  %v774_v49 = vld [vmem:[%s7549_s23 + $0x1c0] sm:$0xff]  ;;  %v775_v50 = vld [vmem:[%s7549_s23 + $0x1c8] sm:$0xff]  ;;  %v5399_v52 = vpack.c.bf16 %v743_v47, %v742_v46 }
  0x81   : > { %5394 = vmatpush3.bf16.msra.mxu0 %v5393_v33  ;;  %v5429_v51 = vpack.c.bf16 %v757_v45, %v756_v44  ;;  %v726_v53 = vld [vmem:[%s7549_s23 + $0x40] sm:$0xff]  ;;  %v727_v54 = vld [vmem:[%s7549_s23 + $0x48] sm:$0xff]  ;;  %v5431_v56 = vpack.c.bf16 %v775_v50, %v774_v49  ;;  %v744_v58 = vld [vmem:[%s7549_s23 + $0xd0] sm:$0xff] }
  0x82   : > { %5396 = vmatprep.subr.bf16.mxu0 %v5395_v39  ;;  %v758_v55 = vld [vmem:[%s7549_s23 + $0x140] sm:$0xff]  ;;  %v759_v57 = vld [vmem:[%s7549_s23 + $0x148] sm:$0xff]  ;;  %v745_v59 = vld [vmem:[%s7549_s23 + $0xd8] sm:$0xff]  ;;  %v5401_v62 = vpack.c.bf16 %v727_v54, %v726_v53 }
  0x83   : > { %5426 = vmatpush3.bf16.msra.mxu1 %v5425_v38  ;;  %v776_v60 = vld [vmem:[%s7549_s23 + $0x1d0] sm:$0xff]  ;;  %v777_v61 = vld [vmem:[%s7549_s23 + $0x1d8] sm:$0xff]  ;;  %v5433_v63 = vpack.c.bf16 %v759_v57, %v758_v55  ;;  %v5403_v0 = vpack.c.bf16 %v745_v59, %v744_v58  ;;  %v746_v6 = vld [vmem:[%s7549_s23 + $0xe0] sm:$0xff] }
  0x84   : > { %5428 = vmatprep.subr.bf16.mxu1 %v5427_v43  ;;  %v728_v1 = vld [vmem:[%s7549_s23 + $0x50] sm:$0xff]  ;;  %v729_v2 = vld [vmem:[%s7549_s23 + $0x58] sm:$0xff]  ;;  %v5435_v4 = vpack.c.bf16 %v777_v61, %v776_v60  ;;  %v747_v7 = vld [vmem:[%s7549_s23 + $0xe8] sm:$0xff] }
  0x85   : > { %5398 = vmatpush3.bf16.msra.mxu0 %v5397_v48  ;;  %v760_v3 = vld [vmem:[%s7549_s23 + $0x150] sm:$0xff]  ;;  %v761_v5 = vld [vmem:[%s7549_s23 + $0x158] sm:$0xff]  ;;  %v778_v8 = vld [vmem:[%s7549_s23 + $0x1e0] sm:$0xff]  ;;  %v5405_v10 = vpack.c.bf16 %v729_v2, %v728_v1  ;;  %v5407_v14 = vpack.c.bf16 %v747_v7, %v746_v6 }
  0x86   : > { %5400 = vmatprep.subr.bf16.mxu0 %v5399_v52  ;;  %v779_v9 = vld [vmem:[%s7549_s23 + $0x1e8] sm:$0xff]  ;;  %v730_v11 = vld [vmem:[%s7549_s23 + $0x60] sm:$0xff]  ;;  %v5437_v13 = vpack.c.bf16 %v761_v5, %v760_v3  ;;  %v748_v19 = vld [vmem:[%s7549_s23 + $0xf0] sm:$0xff] }
  0x87   : > { %5430 = vmatpush3.bf16.msra.mxu1 %v5429_v51  ;;  %v707_v12 = vld [vmem:[%s6410_s26 + $0x8] sm:$0xff]  ;;  %v762_v16 = vld [vmem:[%s7549_s23 + $0x160] sm:$0xff]  ;;  %v5439_v18 = vpack.c.bf16 %v779_v9, %v778_v8  ;;  %v749_v20 = vld [vmem:[%s7549_s23 + $0xf8] sm:$0xff] }
  0x88   : > { %5432 = vmatprep.subr.bf16.mxu1 %v5431_v56  ;;  %v731_v15 = vld [vmem:[%s7549_s23 + $0x68] sm:$0xff]  ;;  %880 = vmatprep.mubr.f32.mxu0 %v707_v12  ;;  %v709_v21 = vld [vmem:[%s6410_s26 + $0x18] sm:$0xff]  ;;  %v780_v22 = vld [vmem:[%s7549_s23 + $0x1f0] sm:$0xff]  ;;  %v5411_v26 = vpack.c.bf16 %v749_v20, %v748_v19 }
  0x89   : > { %5402 = vmatpush3.bf16.msra.mxu0 %v5401_v62  ;;  %v763_v17 = vld [vmem:[%s7549_s23 + $0x168] sm:$0xff]  ;;  %v781_v23 = vld [vmem:[%s7549_s23 + $0x1f8] sm:$0xff]  ;;  %955 = vmatprep.mubr.f32.mxu1 %v709_v21  ;;  %v5409_v24 = vpack.c.bf16 %v731_v15, %v730_v11  ;;  %v732_v27 = vld [vmem:[%s7549_s23 + $0x70] sm:$0xff] }
  0x8a   : > { %5404 = vmatprep.subr.bf16.mxu0 %v5403_v0  ;;  %v5441_v25 = vpack.c.bf16 %v763_v17, %v762_v16  ;;  %v733_v28 = vld [vmem:[%s7549_s23 + $0x78] sm:$0xff]  ;;  %v764_v29 = vld [vmem:[%s7549_s23 + $0x170] sm:$0xff]  ;;  %v5443_v30 = vpack.c.bf16 %v781_v23, %v780_v22  ;;  %v798_v32 = vld [vmem:[%s7549_s23 + $0x280] sm:$0xff] }
  0x8b   : > { %5434 = vmatpush3.bf16.msra.mxu1 %v5433_v63  ;;  %v765_v31 = vld [vmem:[%s7549_s23 + $0x178] sm:$0xff]  ;;  %v799_v33 = vld [vmem:[%s7549_s23 + $0x288] sm:$0xff]  ;;  %v5413_v34 = vpack.c.bf16 %v733_v28, %v732_v27  ;;  %v782_v37 = vld [vmem:[%s7549_s23 + $0x200] sm:$0xff] }
  0x8c   : > { %5436 = vmatprep.subr.bf16.mxu1 %v5435_v4  ;;  %v5445_v35 = vpack.c.bf16 %v765_v31, %v764_v29  ;;  %v5447_v36 = vpack.c.bf16 %v799_v33, %v798_v32  ;;  %v783_v38 = vld [vmem:[%s7549_s23 + $0x208] sm:$0xff]  ;;  %v800_v39 = vld [vmem:[%s7549_s23 + $0x290] sm:$0xff]  ;;  %v801_v40 = vld [vmem:[%s7549_s23 + $0x298] sm:$0xff] }
  0x8d   : > { %5406 = vmatpush3.bf16.msra.mxu0 %v5405_v10  ;;  %v706_v41 = vld [vmem:[%s6410_s26] sm:$0xff]  ;;  %v5449_v42 = vpack.c.bf16 %v783_v38, %v782_v37  ;;  %v708_v43 = vld [vmem:[%s6410_s26 + $0x10] sm:$0xff]  ;;  %v5451_v44 = vpack.c.bf16 %v801_v40, %v800_v39  ;;  %v785_v46 = vld [vmem:[%s7549_s23 + $0x218] sm:$0xff] }
  0x8e   : > { %5408 = vmatprep.subr.bf16.mxu0 %v5407_v14  ;;  %v784_v45 = vld [vmem:[%s7549_s23 + $0x210] sm:$0xff]  ;;  %v802_v47 = vld [vmem:[%s7549_s23 + $0x2a0] sm:$0xff]  ;;  %v803_v48 = vld [vmem:[%s7549_s23 + $0x2a8] sm:$0xff] }
  0x8f   : > { %5438 = vmatpush3.bf16.msra.mxu1 %v5437_v13  ;;  %v713_v49 = vld [vmem:[%s6410_s26 + $0x38] sm:$0x3]  ;;  %v715_v50 = vld [vmem:[%s6410_s26 + $0x48] sm:$0x3]  ;;  %v5453_v51 = vpack.c.bf16 %v785_v46, %v784_v45  ;;  %v712_v52 = vld [vmem:[%s6410_s26 + $0x30] sm:$0x3]  ;;  %v5455_v53 = vpack.c.bf16 %v803_v48, %v802_v47 }
  0x90   : > { %5440 = vmatprep.subr.bf16.mxu1 %v5439_v18  ;;  %v786_v54 = vld [vmem:[%s7549_s23 + $0x220] sm:$0xff]  ;;  %v787_v55 = vld [vmem:[%s7549_s23 + $0x228] sm:$0xff]  ;;  %v804_v57 = vld [vmem:[%s7549_s23 + $0x2b0] sm:$0xff] }
  0x91   : > { %5410 = vmatpush3.bf16.msra.mxu0 %v5409_v24  ;;  %v714_v56 = vld [vmem:[%s6410_s26 + $0x40] sm:$0x3]  ;;  %v805_v58 = vld [vmem:[%s7549_s23 + $0x2b8] sm:$0xff]  ;;  %v711_v59 = vld [vmem:[%s6410_s26 + $0x28] sm:$0xff]  ;;  %v5457_v60 = vpack.c.bf16 %v787_v55, %v786_v54 }
  0x92   : > { %5412 = vmatprep.subr.bf16.mxu0 %v5411_v26  ;;  %v5459_v61 = vpack.c.bf16 %v805_v58, %v804_v57  ;;  %v788_v62 = vld [vmem:[%s7549_s23 + $0x230] sm:$0xff]  ;;  %v789_v63 = vld [vmem:[%s7549_s23 + $0x238] sm:$0xff]  ;;  %v806_v0 = vld [vmem:[%s7549_s23 + $0x2c0] sm:$0xff] }
  0x93   : > { %5442 = vmatpush3.bf16.msra.mxu1 %v5441_v25  ;;  %v807_v1 = vld [vmem:[%s7549_s23 + $0x2c8] sm:$0xff]  ;;  %v5461_v2 = vpack.c.bf16 %v789_v63, %v788_v62  ;;  %v790_v4 = vld [vmem:[%s7549_s23 + $0x240] sm:$0xff]  ;;  %v808_v6 = vld [vmem:[%s7549_s23 + $0x2d0] sm:$0xff] }
  0x94   : > { %5444 = vmatprep.subr.bf16.mxu1 %v5443_v30  ;;  %v5463_v3 = vpack.c.bf16 %v807_v1, %v806_v0  ;;  %v791_v5 = vld [vmem:[%s7549_s23 + $0x248] sm:$0xff]  ;;  %v809_v7 = vld [vmem:[%s7549_s23 + $0x2d8] sm:$0xff]  ;;  %v792_v10 = vld [vmem:[%s7549_s23 + $0x250] sm:$0xff] }
  0x95   : > { %5414 = vmatpush3.bf16.msra.mxu0 %v5413_v34  ;;  %v5465_v8 = vpack.c.bf16 %v791_v5, %v790_v4  ;;  %v5467_v9 = vpack.c.bf16 %v809_v7, %v808_v6  ;;  %v793_v11 = vld [vmem:[%s7549_s23 + $0x258] sm:$0xff]  ;;  %v810_v12 = vld [vmem:[%s7549_s23 + $0x2e0] sm:$0xff]  ;;  %v811_v13 = vld [vmem:[%s7549_s23 + $0x2e8] sm:$0xff] }
  0x96   : > { %5448 = vmatprep.subr.bf16.mxu0 %v5447_v36  ;;  %v5469_v14 = vpack.c.bf16 %v793_v11, %v792_v10  ;;  %v5471_v15 = vpack.c.bf16 %v811_v13, %v810_v12  ;;  %v794_v16 = vld [vmem:[%s7549_s23 + $0x260] sm:$0xff]  ;;  %v795_v17 = vld [vmem:[%s7549_s23 + $0x268] sm:$0xff]  ;;  %v812_v18 = vld [vmem:[%s7549_s23 + $0x2f0] sm:$0xff] }
  0x97   : > { %5446 = vmatpush3.bf16.msra.mxu1 %v5445_v35  ;;  %v813_v19 = vld [vmem:[%s7549_s23 + $0x2f8] sm:$0xff]  ;;  %v5473_v20 = vpack.c.bf16 %v795_v17, %v794_v16  ;;  %v796_v22 = vld [vmem:[%s7549_s23 + $0x270] sm:$0xff]  ;;  %v710_v25 = vld [vmem:[%s6410_s26 + $0x20] sm:$0xff] }
  0x98   : > { %881 = vmatmul.mubr.f32.vlgmr.msra.gmra.mrb[0].mxu0 %v706_v41  ;;  %v5475_v21 = vpack.c.bf16 %v813_v19, %v812_v18  ;;  %v797_v23 = vld [vmem:[%s7549_s23 + $0x278] sm:$0xff]  ;;  %v716_v27 = vld [vmem:[%s6410_s26 + $0x50] sm:$0x3]  ;;  %v814_v29 = vld [vmem:[%s7551_s22] sm:$0xff] }
  0x99   : > { %5450 = vmatpush3.bf16.msra.mxu0 %v5449_v42  ;;  %885 = vmatprep.mubr.f32.mxu0 %v713_v49  ;;  %v5477_v24 = vpack.c.bf16 %v797_v23, %v796_v22  ;;  %v717_v26 = vld [vmem:[%s6410_s26 + $0x58] sm:$0x3]  ;;  %v815_v37 = vld [vmem:[%s7551_s22 + $0x8] sm:$0x3]  ;;  %v4578_v5 = vld [vmem:[%s7552_s18 + $0x60] sm:$0xff]  ;;  %s7553_s26 = sld [smem:[#allocation23_spill]] }
  0x9a   : > { %956 = vmatmul.mubr.f32.vlgmr.msra.gmra.mrb[0].mxu1 %v708_v43  ;;  %5452 = vmatprep.subr.bf16.mxu0 %v5451_v44  ;;  %v4579_v6 = vld [vmem:[%s7552_s18 + $0x68] sm:$0xff]  ;;  %v4580_v11 = vld [vmem:[%s7552_s18 + $0x70] sm:$0xff]  ;;  %v4581_v12 = vld [vmem:[%s7552_s18 + $0x78] sm:$0xff] }
  0x9b   : > { %960 = vmatprep.mubr.f32.mxu1 %v715_v50  ;;  %v5527_v7 = vpack.c.bf16 %v4579_v6, %v4578_v5  ;;  %v5531_v13 = vpack.c.bf16 %v4581_v12, %v4580_v11 }
  0x9c   : > { %886 = vmatmul.mubr.f32.gmra.mrb[2].mxu0 %v712_v52 }
  0x9d   : > { %5454 = vmatpush3.bf16.msra.mxu0 %v5453_v51  ;;  %1030 = vmatprep.mubr.f32.mxu0 %v711_v59 }
  0x9e   : > { %961 = vmatmul.mubr.f32.gmra.mrb[2].mxu1 %v714_v56  ;;  %5456 = vmatprep.subr.bf16.mxu0 %v5455_v53 }
  0x9f   : > { %s7554_s30 = smov %s7553_s26 }
  0xa1   : > { %5458 = vmatpush3.bf16.msra.mxu0 %v5457_v60 }
  0xa2   : > { %5460 = vmatprep.subr.bf16.mxu0 %v5459_v61 }
  0xa5   : > { %5462 = vmatpush3.bf16.msra.mxu0 %v5461_v2  ;;  %v1085_v2 = vld [vmem:[%s7552_s18] sm:$0xff] }
  0xa6   : > { %5464 = vmatprep.subr.bf16.mxu0 %v5463_v3  ;;  %v1086_v3 = vld [vmem:[%s7552_s18 + $0x8] sm:$0xff] }
  0xa7   : > { %v5479_v4 = vpack.c.bf16 %v1086_v3, %v1085_v2  ;;  %v4639_v2 = vld [vmem:[%s7561_s7 + $0x20] sm:$0xff] }
  0xa9   : > { %5466 = vmatpush3.bf16.msra.mxu0 %v5465_v8  ;;  %5480 = vmatprep.subr.bf16.mxu1 %v5479_v4  ;;  %v1087_v8 = vld [vmem:[%s7552_s18 + $0x10] sm:$0xff] }
  0xaa   : > { %5468 = vmatprep.subr.bf16.mxu0 %v5467_v9  ;;  %5482 = vmatpush3.bf16.msra.mxu1 %v5479_v4  ;;  %v1088_v9 = vld [vmem:[%s7552_s18 + $0x18] sm:$0xff] }
  0xab   : > { %v5483_v10 = vpack.c.bf16 %v1088_v9, %v1087_v8 }
  0xad   : > { %5470 = vmatpush3.bf16.msra.mxu0 %v5469_v14  ;;  %5484 = vmatprep.subr.bf16.mxu1 %v5483_v10  ;;  %v4547_v14 = vld [vmem:[%s7552_s18 + $0x40] sm:$0xff] }
  0xae   : > { %5472 = vmatprep.subr.bf16.mxu0 %v5471_v15  ;;  %5486 = vmatpush3.bf16.msra.mxu1 %v5483_v10  ;;  %v4548_v15 = vld [vmem:[%s7552_s18 + $0x48] sm:$0xff] }
  0xaf   : > { %v5487_v16 = vpack.c.bf16 %v4548_v15, %v4547_v14 }
  0xb1   : > { %5474 = vmatpush3.bf16.msra.mxu0 %v5473_v20  ;;  %5488 = vmatprep.subr.bf16.mxu1 %v5487_v16 }
  0xb2   : > { %5476 = vmatprep.subr.bf16.mxu0 %v5475_v21 }
  0xb5   : > { %5478 = vmatpush3.bf16.msra.mxu0 %v5477_v24  ;;  %v4542_v24 = vld [vmem:[%s7553_s26] ss:$0 sm:$0xff]  ;;  %s7246_s26 = sld [smem:[#allocation2 + $0x19]] }
  0xb6   : > { %5528 = vmatprep.subr.bf16.mxu0 %v5527_v7 }
  0xb8   : > { %1031 = vmatmul.mubr.f32.vlgmr.msra.gmra.mrb[4].mxu0 %v710_v25 }
  0xb9   : > { %1035 = vmatprep.mubr.f32.mxu0 %v717_v26  ;;  %5530 = vmatpush3.bf16.msra.mxu0 %v5527_v7  ;;  %v4543_v26 = vld [vmem:[%s7555_s29] ss:$0 sm:$0xff] }
  0xba   : > { %5532 = vmatprep.subr.bf16.mxu0 %v5531_v13 }
  0xbc   : > { %1036 = vmatmul.mubr.f32.gmra.mrb[6].mxu0 %v716_v27 }
  0xbd   : > { %5534 = vmatpush3.bf16.msra.mxu0 %v5531_v13 }
 0x16b   : > { %v4791_v28 = vpop.f32.mrb[0].mxu0 }
 0x16c   : > { %v4792_v30 = vpop.f32.mrb[1].mxu0 }
 0x16d   : > { %v4829_v31 = vpop.f32.mrb[0].mxu1  ;;  %v4793_v32 = vadd.f32 %v4792_v30, %v4791_v28 }
 0x16e   : > { %v4830_v33 = vpop.f32.mrb[1].mxu1 }
 0x16f   : > { %v4831_v34 = vadd.f32 %v4830_v33, %v4829_v31  ;;  %v883_v35 = vadd.f32 %v4793_v32, %v814_v29  ;;  %v4794_v36 = vpop.f32.mrb[2].mxu0  ;;  %v4549_v31 = vld [vmem:[%s7552_s18 + $0x50] sm:$0xff]  ;;  %v4550_v32 = vld [vmem:[%s7552_s18 + $0x58] sm:$0xff] }
 0x170   : > { %v4795_v38 = vpop.f32.mrb[3].mxu0 }
 0x171   : > { %v4832_v39 = vpop.f32.mrb[2].mxu1  ;;  %v958_v40 = vadd.f32 %v4831_v34, %v883_v35  ;;  %v4796_v41 = vadd.f32 %v4795_v38, %v4794_v36  ;;  %v5491_v35 = vpack.c.bf16 %v4550_v32, %v4549_v31  ;;  %v4554_v36 = vld [vmem:[%s7552_s18 + $0x80] sm:$0xff]  ;;  %v4572_v32 = vld [vmem:[%s7552_s18 + $0x28] sm:$0xff] }
 0x172   : > { %v4833_v42 = vpop.f32.mrb[3].mxu1  ;;  %v4571_v31 = vld [vmem:[%s7552_s18 + $0x20] sm:$0xff] }
 0x173   : > { %v4834_v43 = vadd.f32 %v4833_v42, %v4832_v39  ;;  %v888_v44 = vadd.f32 %v4796_v41, %v815_v37  ;;  %v4555_v37 = vld [vmem:[%s7552_s18 + $0x88] sm:$0xff]  ;;  %v4556_v39 = vld [vmem:[%s7552_s18 + $0x90] sm:$0xff]  ;;  %v4582_v42 = vld [vmem:[%s7556_s6 + $0x3] ss:$0 sm:$0xff] }
 0x174   : > { %v5495_v38 = vpack.c.bf16 %v4555_v37, %v4554_v36  ;;  %v4574_v36 = vld [vmem:[%s7552_s18 + $0x38] sm:$0xff] }
 0x175   : > { %v963_v45 = vadd.f32 %v4834_v43, %v888_v44  ;;  %v4544_v43 = vld [vmem:[%s7556_s6] ss:$0 sm:$0xff] }
 0x18b   : > { %v4867_v46 = vpop.f32.mrb[4].mxu0 }
 0x18c   : > { %v4868_v47 = vpop.f32.mrb[5].mxu0 }
 0x18d   : > { %v4869_v48 = vadd.f32 %v4868_v47, %v4867_v46 }
 0x18f   : > { %v6577_v49 = vadd.f32 %v4869_v48, %v958_v40  ;;  %v4870_v50 = vpop.f32.mrb[6].mxu0  ;;  %v4557_v40 = vld [vmem:[%s7552_s18 + $0x98] sm:$0xff] }
 0x190   : > { %v4871_v51 = vpop.f32.mrb[7].mxu0  ;;  %v5499_v41 = vpack.c.bf16 %v4557_v40, %v4556_v39  ;;  %v4585_v40 = vld [vmem:[%s7552_s18 + $0xa0] sm:$0xff] }
 0x191   : > { %v4872_v52 = vadd.f32 %v4871_v51, %v4870_v50  ;;  %v1044_v53 = vsel %vm1043_vm0, %v6577_v49, 0.0 }
 0x192   : > { %1045 = vadd.xlane.f32.xlu0 %v1044_v53 }
 0x193   : > { %v6581_v54 = vadd.f32 %v4872_v52, %v963_v45 }
 0x195   : > { %v1048_v55 = vsel %vm1047_vm1, %v6581_v54, 0.0 }
 0x196   : > { %1049 = vadd.xlane.f32.xlu0 %v1048_v55  ;;  %v4551_v55 = vld [vmem:[%s7556_s6 + $0x2] ss:$0 sm:$0xff] }
 0x21f   : > { %v1046_v56 = vpop.xlane.xlu0 %1045 }
 0x220   : > { %v1052_v57 = vmul.f32 0.03125, %v1046_v56 }
 0x222   : > { %v1054_v58 = vsub.f32 %v6577_v49, %v1052_v57 }
 0x223   : > { %v1050_v59 = vpop.xlane.xlu0 %1049 }
 0x224   : > { %v1053_v60 = vmul.f32 0.03125, %v1050_v59  ;;  %v1056_v61 = vmul.f32 %v1054_v58, %v1054_v58 }
 0x226   : > { %v1055_v62 = vsub.f32 %v6581_v54, %v1053_v60  ;;  %v1058_v63 = vsel %vm1043_vm0, %v1056_v61, 0.0  ;;  %v4558_v61 = vld [vmem:[%s7556_s6 + $0x4] ss:$0 sm:$0xff] }
 0x227   : > { %1059 = vadd.xlane.f32.xlu1 %v1058_v63 }
 0x228   : > { %v1057_v0 = vmul.f32 %v1055_v62, %v1055_v62 }
 0x22a   : > { %v1061_v1 = vsel %vm1047_vm1, %v1057_v0, 0.0 }
 0x22b   : > { %1062 = vadd.xlane.f32.xlu1 %v1061_v1 }
 0x2b4   : > { %v1060_v17 = vpop.xlane.xlu1 %1059 }
 0x2b5   : > { %v1064_v18 = vmul.f32 0.03125, %v1060_v17 }
 0x2b7   : > { %v1066_v19 = vadd.f32 1e-12, %v1064_v18 }
 0x2b8   : > { %v1063_v20 = vpop.xlane.xlu1 %1062 }
 0x2b9   : > { %5826 = vrsqrt.f32 %v1066_v19  ;;  %v1065_v21 = vmul.f32 0.03125, %v1063_v20 }
 0x2bb   : > { %v1067_v22 = vadd.f32 1e-12, %v1065_v21  ;;  %v1544_v21 = vld [vmem:[%s7561_s7] sm:$0xff] }
 0x2bd   : > { %5828 = vrsqrt.f32 %v1067_v22  ;;  %v1545_v22 = vld [vmem:[%s7561_s7 + $0x8] sm:$0xff] }
 0x2c3   : > { %v5827_v23 = vpop.eup %5826 }
 0x2c4   : > { %v1070_v25 = vmul.f32 %v5827_v23, %v1054_v58  ;;  %v5515_v23 = vpack.c.bf16 %v1545_v22, %v1544_v21 }
 0x2c6   : > { %v1076_v27 = vmul.f32 %v4542_v24, %v1070_v25 }
 0x2c7   : > { %v5829_v28 = vpop.eup %5828 }
 0x2c8   : > { %v6625_v29 = vadd.f32 %v4543_v26, %v1076_v27  ;;  %v1071_v30 = vmul.f32 %v5829_v28, %v1055_v62 }
 0x2ca   : > { %v1077_v33 = vmul.f32 %v4542_v24, %v1071_v30  ;;  %5061 = vmatprep.mubr.msk.f32.mxu1 %vm1043_vm0, %v6625_v29  ;;  %5126 = vmatprep.mubr.msk.f32.mxu0 %vm1043_vm0, %v6625_v29 }
 0x2cc   : > { %v6637_v34 = vadd.f32 %v4543_v26, %v1077_v33  ;;  %v5519_v33 = vpack.c.bf16 %v4572_v32, %v4571_v31 }
 0x2ce   : > { %5062 = vmatmul.mubr.msk.f32.vlgmr.msra.gmra.mrb[4].mxu1 %vm1043_vm0, %v6637_v34  ;;  %5127 = vmatmul.mubr.msk.f32.vlgmr.msra.gmra.mrb[8].mxu0 %vm1043_vm0, %v6637_v34 }
 0x2cf   : > { %5490 = vmatpush3.bf16.msra.mxu1 %v5487_v16  ;;  %5072 = vmatprep.mubr.msk.f32.mxu1 %vm1043_vm0, %v6625_v29 }
 0x2d0   : > { %5492 = vmatprep.subr.bf16.mxu1 %v5491_v35 }
 0x2d3   : > { %5494 = vmatpush3.bf16.msra.mxu1 %v5491_v35  ;;  %v4573_v35 = vld [vmem:[%s7552_s18 + $0x30] sm:$0xff] }
 0x2d4   : > { %5496 = vmatprep.subr.bf16.mxu1 %v5495_v38  ;;  %v5523_v39 = vpack.c.bf16 %v4574_v36, %v4573_v35 }
 0x2d6   : > { %5073 = vmatmul.mubr.msk.f32.vlgmr.msra.gmra.mrb[6].mxu1 %vm1043_vm0, %v6637_v34 }
 0x2d7   : > { %5498 = vmatpush3.bf16.msra.mxu1 %v5495_v38  ;;  %5083 = vmatprep.mubr.msk.f32.mxu1 %vm1043_vm0, %v6625_v29 }
 0x2d8   : > { %5500 = vmatprep.subr.bf16.mxu1 %v5499_v41 }
 0x2db   : > { %5502 = vmatpush3.bf16.msra.mxu1 %v5499_v41  ;;  %v4586_v41 = vld [vmem:[%s7552_s18 + $0xa8] sm:$0xff] }
 0x2de   : > { %5084 = vmatmul.mubr.msk.f32.vlgmr.msra.gmra.mrb[8].mxu1 %vm1043_vm0, %v6637_v34 }
 0x3a1   : > { %v5063_v44 = vpop.f32.mrb[4].mxu1  ;;  %v5128_v45 = vpop.f32.mrb[8].mxu0 }
 0x3a2   : > { %v1800_v46 = vadd.f32 %v5128_v45, %v4582_v42  ;;  %v1166_v47 = vpop.f32.mrb[5].mxu1  ;;  %v1794_v48 = vpop.f32.mrb[9].mxu0  ;;  %v1172_v3 = vadd.f32 %v5063_v44, %v4544_v43  ;;  %v4588_v44 = vld [vmem:[%s7552_s18 + $0xb8] sm:$0xff] }
 0x3a3   : > { %v1167_v50 = vadd.f32 %v4544_v43, %v1166_v47  ;;  %v1795_v51 = vadd.f32 %v4582_v42, %v1794_v48  ;;  %v5535_v42 = vpack.c.bf16 %v4586_v41, %v4585_v40  ;;  %v4587_v43 = vld [vmem:[%s7552_s18 + $0xb0] sm:$0xff]  ;;  %v4575_v48 = vld [vmem:[%s7556_s6 + $0x1] ss:$0 sm:$0xff] }
 0x3a4   : > { %v5539_v45 = vpack.c.bf16 %v4588_v44, %v4587_v43 }
 0x3a5   : > { %v5543_v53 = vpack.c.bf16 %v1800_v46, %v1795_v51  ;;  %5090 = vmatprep.mubr.msk.f32.mxu1 %vm1345_vm2, %v1167_v50 }
 0x3a7   : > { %5545 = vmatprep.subr.msk.bf16.mxu0 %vm6671_vm3, %v5543_v53 }
 0x3a8   : > { %5548 = vmatpush3.bf16.xpose.msk.msra.mxu0 %vm6671_vm3, %v5543_v53 }
 0x3a9   : > { %v5074_v56 = vpop.f32.mrb[6].mxu1 }
 0x3aa   : > { %v1257_v57 = vadd.f32 %v5074_v56, %v4551_v55  ;;  %v1251_v58 = vpop.f32.mrb[7].mxu1 }
 0x3ab   : > { %v1252_v59 = vadd.f32 %v4551_v55, %v1251_v58 }
 0x3ad   : > { %v5503_v60 = vpack.c.bf16 %v1257_v57, %v1252_v59 }
 0x3af   : > { %5505 = vmatprep.subr.msk.bf16.mxu1 %vm6671_vm3, %v5503_v60 }
 0x3b0   : > { %5508 = vmatpush3.bf16.xpose.msk.msra.mxu1 %vm6671_vm3, %v5503_v60 }
 0x3b1   : > { %v5085_v62 = vpop.f32.mrb[8].mxu1 }
 0x3b2   : > { %v1342_v63 = vadd.f32 %v5085_v62, %v4558_v61  ;;  %v1336_v0 = vpop.f32.mrb[9].mxu1 }
 0x3b3   : > { %v1337_v1 = vadd.f32 %v4558_v61, %v1336_v0 }
 0x3b5   : > { %v5509_v4 = vpack.c.bf16 %v1342_v63, %v1337_v1 }
 0x3b7   : > { %5091 = vmatmul.mubr.msk.f32.vlgmr.msra.gmra.mrb[10].mxu1 %vm1345_vm2, %v1172_v3  ;;  %5511 = vmatprep.subr.msk.bf16.mxu1 %vm6690_vm6, %v5509_v4 }
 0x3b8   : > { %5514 = vmatpush3.bf16.msk.msra.mxu1 %vm6690_vm6, %v5509_v4 }
 0x3b9   : > { %5516 = vmatprep.subr.bf16.mxu1 %v5515_v23 }
 0x48a   : > { %v5092_v5 = vpop.f32.mrb[10].mxu1 }
 0x48b   : > { %v1434_v6 = vmul.f32 0.25, %v5092_v5  ;;  %v1424_v7 = vpop.f32.mrb[11].mxu1 }
 0x48c   : > { %v1433_v8 = vmul.f32 0.25, %v1424_v7 }
 0x48d   : > { %v1440_v9 = vsel %vm1439_vm7, %v1434_v6, -inf }
 0x48e   : > { %1441 = vmax.xlane.f32.xlu1 %v1440_v9  ;;  %v1436_v10 = vsel %vm1435_vm8, %v1433_v8, -inf }
 0x48f   : > { %1437 = vmax.xlane.f32.xlu0 %v1436_v10 }
 0x51b   : > { %v1442_v11 = vpop.xlane.xlu1 %1441 }
 0x51c   : > { %v1444_v12 = vsub.f32 %v1434_v6, %v1442_v11  ;;  %v1438_v13 = vpop.xlane.xlu0 %1437 }
 0x51d   : > { %v1443_v14 = vsub.f32 %v1433_v8, %v1438_v13  ;;  %v4599_v13 = vld [vmem:[%s7561_s7 + $0x10] sm:$0xff] }
 0x51e   : > { %v1447_v15 = vmul.f32 1.442695, %v1444_v12 }
 0x51f   : > { %v1445_v16 = vmul.f32 1.442695, %v1443_v14  ;;  %v4600_v14 = vld [vmem:[%s7561_s7 + $0x18] sm:$0xff] }
 0x520   : > { %5830 = vpow2.f32 %v1447_v15  ;;  %v5555_v15 = vpack.c.bf16 %v4600_v14, %v4599_v13  ;;  %v2325_v14 = vld [vmem:[%s7566_s13 + $0x30] sm:$0xff] }
 0x521   : > { %5832 = vpow2.f32 %v1445_v16 }
 0x522   : > { %5556 = vmatprep.subr.bf16.mxu0 %v5555_v15 }
 0x52a   : > { %v5831_v17 = vpop.eup %5830 }
 0x52b   : > { %v5833_v18 = vpop.eup %5832  ;;  %v1452_v19 = vsel %vm1439_vm7, %v5831_v17, 0.0 }
 0x52c   : > { %1453 = vadd.xlane.f32.xlu1 %v1452_v19  ;;  %v1449_v20 = vsel %vm1435_vm8, %v5833_v18, 0.0 }
 0x52d   : > { %1450 = vadd.xlane.f32.xlu0 %v1449_v20 }
 0x5b9   : > { %v1454_v24 = vpop.xlane.xlu1 %1453 }
 0x5ba   : > { %5834 = vrcp.f32 %v1454_v24  ;;  %v1451_v25 = vpop.xlane.xlu0 %1450  ;;  %v4570_v24 = vld [vmem:[%s7562_s8] ss:$0 sm:$0xff] }
 0x5bb   : > { %5836 = vrcp.f32 %v1451_v25 }
 0x5c4   : > { %v5835_v26 = vpop.eup %5834 }
 0x5c5   : > { %v5837_v27 = vpop.eup %5836  ;;  %v1458_v30 = vmul.f32 %v5835_v26, %v5831_v17 }
 0x5c6   : > { %v1456_v28 = vmul.f32 %v5837_v27, %v5833_v18 }
 0x5c8   : > { %5097 = vmatprep.mubr.msk.f32.mxu1 %vm1435_vm8, %v1456_v28 }
 0x5c9   : > { %5098 = vmatmul.mubr.msk.f32.vlgmr.msra.gmra.mrb[12].mxu1 %vm1435_vm8, %v1458_v30 }
 0x5ca   : > { %5518 = vmatpush3.bf16.msra.mxu1 %v5515_v23 }
 0x5cb   : > { %5520 = vmatprep.subr.bf16.mxu1 %v5519_v33 }
 0x69c   : > { %v5099_v37 = vpop.f32.mrb[12].mxu1 }
 0x69d   : > { %v1535_v38 = vpop.f32.mrb[13].mxu1 }
 0x69e   : > { %5104 = vmatprep.mubr.msk.f32.mxu1 %vm1345_vm2, %v1535_v38 }
 0x69f   : > { %5105 = vmatmul.mubr.msk.f32.vlgmr.msra.gmra.mrb[14].mxu1 %vm1345_vm2, %v5099_v37 }
 0x6a0   : > { %5522 = vmatpush3.bf16.msra.mxu1 %v5519_v33  ;;  %5115 = vmatprep.mubr.msk.f32.mxu1 %vm1043_vm0, %v6625_v29 }
 0x6a1   : > { %5524 = vmatprep.subr.bf16.mxu1 %v5523_v39 }
 0x6a4   : > { %5526 = vmatpush3.bf16.msra.mxu1 %v5523_v39 }
 0x6a5   : > { %5536 = vmatprep.subr.bf16.mxu1 %v5535_v42 }
 0x6a7   : > { %5116 = vmatmul.mubr.msk.f32.vlgmr.msra.gmra.mrb[16].mxu1 %vm1043_vm0, %v6637_v34 }
 0x6a8   : > { %5538 = vmatpush3.bf16.msra.mxu1 %v5535_v42  ;;  %5137 = vmatprep.mubr.msk.f32.mxu1 %vm1043_vm0, %v6625_v29  ;;  %v4589_v29 = vld [vmem:[%s7556_s6 + $0x5] ss:$0 sm:$0xff] }
 0x6a9   : > { %5540 = vmatprep.subr.bf16.mxu1 %v5539_v45 }
 0x6ac   : > { %5542 = vmatpush3.bf16.msra.mxu1 %v5539_v45  ;;  %v2211_v45 = vld [vmem:[%s7563_s11] sm:$0xff] }
 0x6af   : > { %5138 = vmatmul.mubr.msk.f32.vlgmr.msra.gmra.mrb[18].mxu1 %vm1043_vm0, %v6637_v34 }
 0x772   : > { %v5106_v46 = vpop.f32.mrb[14].mxu1 }
 0x773   : > { %v1618_v47 = vpop.f32.mrb[15].mxu1  ;;  %v1632_v25 = vadd.f32 %v5106_v46, %v4570_v24  ;;  %v2212_v46 = vld [vmem:[%s7563_s11 + $0x8] sm:$0xff] }
 0x774   : > { %v1631_v26 = vadd.f32 %v4570_v24, %v1618_v47  ;;  %v5559_v47 = vpack.c.bf16 %v2212_v46, %v2211_v45  ;;  %v2332_v24 = vld [vmem:[%s7566_s13 + $0x68] sm:$0xff] }
 0x77a   : > { %v5117_v50 = vpop.f32.mrb[16].mxu1 }
 0x77b   : > { %v1709_v51 = vpop.f32.mrb[17].mxu1  ;;  %v1715_v55 = vadd.f32 %v5117_v50, %v4575_v48  ;;  %v2214_v50 = vld [vmem:[%s7563_s11 + $0x18] sm:$0xff] }
 0x77c   : > { %v1710_v53 = vadd.f32 %v4575_v48, %v1709_v51  ;;  %v2213_v48 = vld [vmem:[%s7563_s11 + $0x10] sm:$0xff] }
 0x77d   : > { %v5563_v51 = vpack.c.bf16 %v2214_v50, %v2213_v48 }
 0x77e   : > { %5144 = vmatprep.mubr.msk.f32.mxu0 %vm1345_vm2, %v1710_v53 }
 0x77f   : > { %5145 = vmatmul.mubr.msk.f32.vlgmr.msra.gmra.mrb[10].mxu0 %vm1345_vm2, %v1715_v55 }
 0x780   : > { %5558 = vmatpush3.bf16.msra.mxu0 %v5555_v15  ;;  %v2326_v15 = vld [vmem:[%s7566_s13 + $0x38] sm:$0xff] }
 0x782   : > { %v5139_v56 = vpop.f32.mrb[18].mxu1 }
 0x783   : > { %v1885_v34 = vadd.f32 %v5139_v56, %v4589_v29  ;;  %v1879_v57 = vpop.f32.mrb[19].mxu1 }
 0x784   : > { %v1880_v58 = vadd.f32 %v4589_v29, %v1879_v57 }
 0x786   : > { %v5549_v59 = vpack.c.bf16 %v1885_v34, %v1880_v58 }
 0x788   : > { %5551 = vmatprep.subr.msk.bf16.mxu1 %vm6690_vm6, %v5549_v59 }
 0x789   : > { %5554 = vmatpush3.bf16.msk.msra.mxu1 %vm6690_vm6, %v5549_v59  ;;  %v4603_v59 = vld [vmem:[%s7564_s9] ss:$0 sm:$0xff] }
 0x78a   : > { %5560 = vmatprep.subr.bf16.mxu1 %v5559_v47 }
 0x852   : > { %v5146_v60 = vpop.f32.mrb[10].mxu0 }
 0x853   : > { %v1976_v61 = vmul.f32 0.25, %v5146_v60  ;;  %v1966_v62 = vpop.f32.mrb[11].mxu0 }
 0x854   : > { %v1975_v63 = vmul.f32 0.25, %v1966_v62 }
 0x855   : > { %v1980_v0 = vsel %vm1439_vm7, %v1976_v61, -inf }
 0x856   : > { %1981 = vmax.xlane.f32.xlu1 %v1980_v0  ;;  %v1977_v1 = vsel %vm1435_vm8, %v1975_v63, -inf }
 0x857   : > { %1978 = vmax.xlane.f32.xlu0 %v1977_v1 }
 0x8e3   : > { %v1982_v3 = vpop.xlane.xlu1 %1981 }
 0x8e4   : > { %v1984_v4 = vsub.f32 %v1976_v61, %v1982_v3  ;;  %v1979_v5 = vpop.xlane.xlu0 %1978 }
 0x8e5   : > { %v1983_v6 = vsub.f32 %v1975_v63, %v1979_v5  ;;  %v4604_v63 = vld [vmem:[%s7565_s10] ss:$0 sm:$0xff] }
 0x8e6   : > { %v1987_v7 = vmul.f32 1.442695, %v1984_v4  ;;  %v2319_v5 = vld [vmem:[%s7566_s13] sm:$0xff] }
 0x8e7   : > { %v1985_v8 = vmul.f32 1.442695, %v1983_v6  ;;  %v2320_v6 = vld [vmem:[%s7566_s13 + $0x8] sm:$0xff] }
 0x8e8   : > { %5838 = vpow2.f32 %v1987_v7  ;;  %v5567_v7 = vpack.c.bf16 %v2320_v6, %v2319_v5 }
 0x8e9   : > { %5840 = vpow2.f32 %v1985_v8  ;;  %v2321_v8 = vld [vmem:[%s7566_s13 + $0x10] sm:$0xff] }
 0x8ea   : > { %5568 = vmatprep.subr.bf16.mxu0 %v5567_v7 }
 0x8f2   : > { %v5839_v9 = vpop.eup %5838 }
 0x8f3   : > { %v5841_v10 = vpop.eup %5840  ;;  %v1992_v11 = vsel %vm1439_vm7, %v5839_v9, 0.0 }
 0x8f4   : > { %1993 = vadd.xlane.f32.xlu1 %v1992_v11  ;;  %v1989_v12 = vsel %vm1435_vm8, %v5841_v10, 0.0  ;;  %v2323_v11 = vld [vmem:[%s7566_s13 + $0x20] sm:$0xff] }
 0x8f5   : > { %1990 = vadd.xlane.f32.xlu0 %v1989_v12  ;;  %v2324_v12 = vld [vmem:[%s7566_s13 + $0x28] sm:$0xff] }
 0x8f6   : > { %v5575_v13 = vpack.c.bf16 %v2324_v12, %v2323_v11  ;;  %v4613_v12 = vld [vmem:[%s7552_s18 + $0xd0] sm:$0xff] }
 0x981   : > { %v1994_v16 = vpop.xlane.xlu1 %1993 }
 0x982   : > { %5842 = vrcp.f32 %v1994_v16  ;;  %v1991_v17 = vpop.xlane.xlu0 %1990  ;;  %v5579_v16 = vpack.c.bf16 %v2326_v15, %v2325_v14  ;;  %v4618_v15 = vld [vmem:[%s7552_s18 + $0x100] sm:$0xff] }
 0x983   : > { %5844 = vrcp.f32 %v1991_v17  ;;  %v2327_v17 = vld [vmem:[%s7566_s13 + $0x40] sm:$0xff] }
 0x98c   : > { %v5843_v18 = vpop.eup %5842 }
 0x98d   : > { %v5845_v19 = vpop.eup %5844  ;;  %v1998_v21 = vmul.f32 %v5843_v18, %v5839_v9  ;;  %v2322_v9 = vld [vmem:[%s7566_s13 + $0x18] sm:$0xff]  ;;  %v2328_v18 = vld [vmem:[%s7566_s13 + $0x48] sm:$0xff] }
 0x98e   : > { %v1996_v20 = vmul.f32 %v5845_v19, %v5841_v10  ;;  %v5571_v10 = vpack.c.bf16 %v2322_v9, %v2321_v8  ;;  %v2329_v19 = vld [vmem:[%s7566_s13 + $0x50] sm:$0xff]  ;;  %v4611_v9 = vld [vmem:[%s7552_s18 + $0xc0] sm:$0xff] }
 0x990   : > { %5151 = vmatprep.mubr.msk.f32.mxu1 %vm1435_vm8, %v1996_v20  ;;  %v5583_v20 = vpack.c.bf16 %v2328_v18, %v2327_v17 }
 0x991   : > { %5152 = vmatmul.mubr.msk.f32.vlgmr.msra.gmra.mrb[20].mxu1 %vm1435_vm8, %v1998_v21  ;;  %v2330_v21 = vld [vmem:[%s7566_s13 + $0x58] sm:$0xff] }
 0x992   : > { %5562 = vmatpush3.bf16.msra.mxu1 %v5559_v47 }
 0x993   : > { %5564 = vmatprep.subr.bf16.mxu1 %v5563_v51 }
 0x996   : > { %5566 = vmatpush3.bf16.msra.mxu1 %v5563_v51 }
 0xa64   : > { %v5153_v22 = vpop.f32.mrb[20].mxu1 }
 0xa65   : > { %v2074_v23 = vpop.f32.mrb[21].mxu1 }
 0xa66   : > { %5158 = vmatprep.mubr.msk.f32.mxu0 %vm1345_vm2, %v2074_v23  ;;  %v2331_v23 = vld [vmem:[%s7566_s13 + $0x60] sm:$0xff] }
 0xa67   : > { %5159 = vmatmul.mubr.msk.f32.vlgmr.msra.gmra.mrb[12].mxu0 %vm1345_vm2, %v5153_v22  ;;  %v5587_v22 = vpack.c.bf16 %v2330_v21, %v2329_v19 }
 0xa68   : > { %5570 = vmatpush3.bf16.msra.mxu0 %v5567_v7 }
 0xa69   : > { %5572 = vmatprep.subr.bf16.mxu0 %v5571_v10 }
 0xa6c   : > { %5574 = vmatpush3.bf16.msra.mxu0 %v5571_v10  ;;  %v4612_v10 = vld [vmem:[%s7552_s18 + $0xc8] sm:$0xff] }
 0xa6d   : > { %5576 = vmatprep.subr.bf16.mxu0 %v5575_v13  ;;  %v5599_v11 = vpack.c.bf16 %v4612_v10, %v4611_v9  ;;  %v4660_v9 = vld [vmem:[%s7552_s18 + $0x170] sm:$0xff]  ;;  %v4661_v10 = vld [vmem:[%s7552_s18 + $0x178] sm:$0xff] }
 0xa6f   : > { %5600 = vmatprep.subr.bf16.mxu1 %v5599_v11 }
 0xa70   : > { %5578 = vmatpush3.bf16.msra.mxu0 %v5575_v13  ;;  %v4614_v13 = vld [vmem:[%s7552_s18 + $0xd8] sm:$0xff] }
 0xa71   : > { %5580 = vmatprep.subr.bf16.mxu0 %v5579_v16  ;;  %v5603_v14 = vpack.c.bf16 %v4614_v13, %v4613_v12 }
 0xa74   : > { %5582 = vmatpush3.bf16.msra.mxu0 %v5579_v16  ;;  %v4619_v16 = vld [vmem:[%s7552_s18 + $0x108] sm:$0xff] }
 0xa75   : > { %5584 = vmatprep.subr.bf16.mxu0 %v5583_v20  ;;  %v5607_v17 = vpack.c.bf16 %v4619_v16, %v4618_v15 }
 0xa78   : > { %5586 = vmatpush3.bf16.msra.mxu0 %v5583_v20 }
 0xa79   : > { %5588 = vmatprep.subr.bf16.mxu0 %v5587_v22 }
 0xa7c   : > { %5590 = vmatpush3.bf16.msra.mxu0 %v5587_v22 }
 0xb3a   : > { %v5160_v27 = vpop.f32.mrb[12].mxu0 }
 0xb3b   : > { %v2168_v28 = vadd.f32 %v5160_v27, %v1632_v25  ;;  %v2158_v30 = vpop.f32.mrb[13].mxu0  ;;  %v5591_v25 = vpack.c.bf16 %v2332_v24, %v2331_v23  ;;  %v2334_v27 = vld [vmem:[%s7566_s13 + $0x78] sm:$0xff] }
 0xb3c   : > { %v2167_v31 = vadd.f32 %v2158_v30, %v1631_v26  ;;  %v2333_v26 = vld [vmem:[%s7566_s13 + $0x70] sm:$0xff]  ;;  %v4605_v30 = vld [vmem:[%s7567_s12] ss:$0 sm:$0xff] }
 0xb3d   : > { %v6775_v32 = vadd.f32 %v2168_v28, %v6581_v54  ;;  %5592 = vmatprep.subr.bf16.mxu0 %v5591_v25  ;;  %v5595_v28 = vpack.c.bf16 %v2334_v27, %v2333_v26 }
 0xb3e   : > { %v6778_v33 = vadd.f32 %v2167_v31, %v6577_v49  ;;  %5594 = vmatpush3.bf16.msra.mxu0 %v5591_v25  ;;  %v4609_v25 = vld [vmem:[%s7554_s30 + $0x1] ss:$0 sm:$0xff] }
 0xb3f   : > { %v2176_v35 = vsel %vm1047_vm1, %v6775_v32, 0.0  ;;  %5596 = vmatprep.subr.bf16.mxu0 %v5595_v28 }
 0xb40   : > { %2177 = vadd.xlane.f32.xlu1 %v2176_v35  ;;  %v2173_v36 = vsel %vm1043_vm0, %v6778_v33, 0.0 }
 0xb41   : > { %2174 = vadd.xlane.f32.xlu0 %v2173_v36 }
 0xb42   : > { %5598 = vmatpush3.bf16.msra.mxu0 %v5595_v28 }
 0xbcd   : > { %v2178_v37 = vpop.xlane.xlu1 %2177 }
 0xbce   : > { %v2180_v38 = vmul.f32 0.03125, %v2178_v37  ;;  %v2175_v39 = vpop.xlane.xlu0 %2174 }
 0xbcf   : > { %v2179_v40 = vmul.f32 0.03125, %v2175_v39 }
 0xbd0   : > { %v2182_v41 = vsub.f32 %v6775_v32, %v2180_v38 }
 0xbd1   : > { %v2181_v54 = vsub.f32 %v6778_v33, %v2179_v40 }
 0xbd2   : > { %v2184_v42 = vmul.f32 %v2182_v41, %v2182_v41 }
 0xbd3   : > { %v2183_v43 = vmul.f32 %v2181_v54, %v2181_v54 }
 0xbd4   : > { %v2188_v49 = vsel %vm1047_vm1, %v2184_v42, 0.0 }
 0xbd5   : > { %2189 = vadd.xlane.f32.xlu1 %v2188_v49  ;;  %v2185_v44 = vsel %vm1043_vm0, %v2183_v43, 0.0 }
 0xbd6   : > { %2186 = vadd.xlane.f32.xlu0 %v2185_v44 }
 0xc62   : > { %v2190_v53 = vpop.xlane.xlu1 %2189 }
 0xc63   : > { %v2192_v55 = vmul.f32 0.03125, %v2190_v53  ;;  %v2187_v29 = vpop.xlane.xlu0 %2186 }
 0xc64   : > { %v2191_v56 = vmul.f32 0.03125, %v2187_v29 }
 0xc65   : > { %v2194_v34 = vadd.f32 1e-12, %v2192_v55 }
 0xc66   : > { %v2193_v57 = vadd.f32 1e-12, %v2191_v56 }
 0xc67   : > { %5846 = vrsqrt.f32 %v2194_v34  ;;  %v4608_v34 = vld [vmem:[%s7568_s14] ss:$0 sm:$0xff] }
 0xc68   : > { %5848 = vrsqrt.f32 %v2193_v57 }
 0xc71   : > { %v5847_v58 = vpop.eup %5846 }
 0xc72   : > { %v5849_v60 = vpop.eup %5848  ;;  %v2198_v61 = vmul.f32 %v5847_v58, %v2182_v41 }
 0xc73   : > { %v2197_v62 = vmul.f32 %v5849_v60, %v2181_v54 }
 0xc74   : > { %v2204_v0 = vmul.f32 %v4603_v59, %v2198_v61 }
 0xc75   : > { %v2203_v1 = vmul.f32 %v4603_v59, %v2197_v62 }
 0xc76   : > { %v2210_v4 = vadd.f32 %v4604_v63, %v2204_v0 }
 0xc77   : > { %v2209_v3 = vadd.f32 %v4604_v63, %v2203_v1 }
 0xc79   : > { %5169 = vmatprep.mubr.msk.f32.mxu1 %vm1043_vm0, %v2209_v3 }
 0xc7a   : > { %5170 = vmatmul.mubr.msk.f32.vlgmr.msra.gmra.mrb[22].mxu1 %vm1043_vm0, %v2210_v4 }
 0xc7b   : > { %5602 = vmatpush3.bf16.msra.mxu1 %v5599_v11  ;;  %v5659_v11 = vpack.c.bf16 %v4661_v10, %v4660_v9 }
 0xc7c   : > { %5604 = vmatprep.subr.bf16.mxu1 %v5603_v14 }
 0xc7f   : > { %5606 = vmatpush3.bf16.msra.mxu1 %v5603_v14 }
 0xc80   : > { %5608 = vmatprep.subr.bf16.mxu1 %v5607_v17 }
 0xd4d   : > { %v5171_v31 = vpop.f32.mrb[22].mxu1 }
 0xd4e   : > { %v2298_v35 = vadd.f32 %v5171_v31, %v4605_v30  ;;  %v2292_v36 = vpop.f32.mrb[23].mxu1 }
 0xd4f   : > { %v2293_v37 = vadd.f32 %v4605_v30, %v2292_v36  ;;  %v4610_v30 = vld [vmem:[%s7555_s29 + $0x1] ss:$0 sm:$0xff]  ;;  %v4620_v36 = vld [vmem:[%s7552_s18 + $0x110] sm:$0xff] }
 0xd50   : > { %v2302_v38 = vmul.f32 %v2298_v35, %v2298_v35 }
 0xd51   : > { %v2301_v39 = vmul.f32 %v2293_v37, %v2293_v37 }
 0xd52   : > { %v2304_v40 = vmul.f32 %v2302_v38, %v2298_v35 }
 0xd53   : > { %v2303_v41 = vmul.f32 %v2301_v39, %v2293_v37 }
 0xd54   : > { %v2306_v54 = vmul.f32 0.044715, %v2304_v40 }
 0xd55   : > { %v2305_v42 = vmul.f32 0.044715, %v2303_v41  ;;  %v4625_v41 = vld [vmem:[%s7552_s18 + $0x140] sm:$0xff] }
 0xd56   : > { %v2308_v43 = vadd.f32 %v2306_v54, %v2298_v35  ;;  %v4626_v54 = vld [vmem:[%s7552_s18 + $0x148] sm:$0xff] }
 0xd57   : > { %v2307_v49 = vadd.f32 %v2305_v42, %v2293_v37  ;;  %v5615_v42 = vpack.c.bf16 %v4626_v54, %v4625_v41 }
 0xd58   : > { %v2310_v44 = vmul.f32 0.7978846, %v2308_v43  ;;  %v4627_v43 = vld [vmem:[%s7552_s18 + $0x150] sm:$0xff] }
 0xd59   : > { %v2309_v45 = vmul.f32 0.7978846, %v2307_v49  ;;  %v4628_v49 = vld [vmem:[%s7552_s18 + $0x158] sm:$0xff] }
 0xd5a   : > { %5850 = vtanh.f32 %v2310_v44  ;;  %v5619_v44 = vpack.c.bf16 %v4628_v49, %v4627_v43  ;;  %v4640_v43 = vld [vmem:[%s7561_s7 + $0x28] sm:$0xff] }
 0xd5b   : > { %5852 = vtanh.f32 %v2309_v45  ;;  %v4615_v45 = vld [vmem:[%s7556_s6 + $0x6] ss:$0 sm:$0xff]  ;;  %v5635_v49 = vpack.c.bf16 %v4640_v43, %v4639_v2 }
 0xd64   : > { %v5851_v46 = vpop.eup %5850 }
 0xd65   : > { %v5853_v47 = vpop.eup %5852  ;;  %v2314_v48 = vadd.f32 1.0, %v5851_v46 }
 0xd66   : > { %v2313_v50 = vadd.f32 1.0, %v5853_v47 }
 0xd67   : > { %v2316_v51 = vmul.f32 0.5, %v2314_v48 }
 0xd68   : > { %v2315_v53 = vmul.f32 0.5, %v2313_v50  ;;  %v4622_v50 = vld [vmem:[%s7556_s6 + $0x8] ss:$0 sm:$0xff] }
 0xd69   : > { %v2318_v29 = vmul.f32 %v2316_v51, %v2298_v35 }
 0xd6a   : > { %v2317_v55 = vmul.f32 %v2315_v53, %v2293_v37  ;;  %v4621_v37 = vld [vmem:[%s7552_s18 + $0x118] sm:$0xff] }
 0xd6b   : > { %v5611_v40 = vpack.c.bf16 %v4621_v37, %v4620_v36 }
 0xd6c   : > { %5204 = vmatprep.mubr.f32.mxu0 %v2317_v55 }
 0xd6d   : > { %5205 = vmatmul.mubr.f32.vlgmr.msra.gmra.mrb[14].mxu0 %v2318_v29  ;;  %v4644_v29 = vld [vmem:[%s7552_s18 + $0xe0] sm:$0xff] }
 0xe40   : > { %v5206_v56 = vpop.f32.mrb[14].mxu0 }
 0xe41   : > { %v2411_v57 = vadd.f32 %v5206_v56, %v6775_v32  ;;  %v2401_v58 = vpop.f32.mrb[15].mxu0  ;;  %v4645_v56 = vld [vmem:[%s7552_s18 + $0xe8] sm:$0xff] }
 0xe42   : > { %v2410_v59 = vadd.f32 %v2401_v58, %v6778_v33  ;;  %v5639_v58 = vpack.c.bf16 %v4645_v56, %v4644_v29  ;;  %v4653_v29 = vld [vmem:[%s7552_s18 + $0x130] sm:$0xff]  ;;  %v4654_v56 = vld [vmem:[%s7552_s18 + $0x138] sm:$0xff] }
 0xe43   : > { %v6864_v60 = vadd.f32 %v4608_v34, %v2411_v57 }
 0xe44   : > { %v6866_v61 = vadd.f32 %v4608_v34, %v2410_v59  ;;  %v4629_v59 = vld [vmem:[%s7556_s6 + $0xa] ss:$0 sm:$0xff] }
 0xe45   : > { %v2424_v62 = vsel %vm1047_vm1, %v6864_v60, 0.0 }
 0xe46   : > { %2425 = vadd.xlane.f32.xlu1 %v2424_v62  ;;  %v2421_v63 = vsel %vm1043_vm0, %v6866_v61, 0.0 }
 0xe47   : > { %2422 = vadd.xlane.f32.xlu0 %v2421_v63 }
 0xed3   : > { %v2426_v0 = vpop.xlane.xlu1 %2425 }
 0xed4   : > { %v2428_v1 = vmul.f32 0.03125, %v2426_v0  ;;  %v2423_v3 = vpop.xlane.xlu0 %2422 }
 0xed5   : > { %v2427_v4 = vmul.f32 0.03125, %v2423_v3  ;;  %v4647_v3 = vld [vmem:[%s7552_s18 + $0xf8] sm:$0xff] }
 0xed6   : > { %v2430_v32 = vsub.f32 %v6864_v60, %v2428_v1  ;;  %v4646_v1 = vld [vmem:[%s7552_s18 + $0xf0] sm:$0xff] }
 0xed7   : > { %v2429_v33 = vsub.f32 %v6866_v61, %v2427_v4 }
 0xed8   : > { %v2432_v5 = vmul.f32 %v2430_v32, %v2430_v32 }
 0xed9   : > { %v2431_v6 = vmul.f32 %v2429_v33, %v2429_v33 }
 0xeda   : > { %v2436_v7 = vsel %vm1047_vm1, %v2432_v5, 0.0  ;;  %v5643_v5 = vpack.c.bf16 %v4647_v3, %v4646_v1 }
 0xedb   : > { %2437 = vadd.xlane.f32.xlu1 %v2436_v7  ;;  %v2433_v8 = vsel %vm1043_vm0, %v2431_v6, 0.0  ;;  %v4658_v6 = vld [vmem:[%s7552_s18 + $0x160] sm:$0xff]  ;;  %v4659_v7 = vld [vmem:[%s7552_s18 + $0x168] sm:$0xff] }
 0xedc   : > { %2434 = vadd.xlane.f32.xlu0 %v2433_v8  ;;  %v5655_v8 = vpack.c.bf16 %v4659_v7, %v4658_v6 }
 0xf68   : > { %v2438_v18 = vpop.xlane.xlu1 %2437 }
 0xf69   : > { %v2440_v19 = vmul.f32 0.03125, %v2438_v18  ;;  %v2435_v20 = vpop.xlane.xlu0 %2434  ;;  %v4648_v18 = vld [vmem:[%s7556_s6 + $0x7] ss:$0 sm:$0xff] }
 0xf6a   : > { %v2439_v21 = vmul.f32 0.03125, %v2435_v20 }
 0xf6b   : > { %v2442_v22 = vadd.f32 1e-12, %v2440_v19 }
 0xf6c   : > { %v2441_v23 = vadd.f32 1e-12, %v2439_v21 }
 0xf6d   : > { %5854 = vrsqrt.f32 %v2442_v22  ;;  %v4662_v22 = vld [vmem:[%s7556_s6 + $0xb] ss:$0 sm:$0xff] }
 0xf6e   : > { %5856 = vrsqrt.f32 %v2441_v23 }
 0xf77   : > { %v5855_v24 = vpop.eup %5854 }
 0xf78   : > { %v5857_v26 = vpop.eup %5856  ;;  %v2446_v27 = vmul.f32 %v5855_v24, %v2430_v32 }
 0xf79   : > { %v2445_v28 = vmul.f32 %v5857_v26, %v2429_v33 }
 0xf7a   : > { %v2452_v31 = vmul.f32 %v4609_v25, %v2446_v27 }
 0xf7b   : > { %v2451_v35 = vmul.f32 %v4609_v25, %v2445_v28 }
 0xf7c   : > { %v6908_v39 = vadd.f32 %v4610_v30, %v2452_v31 }
 0xf7d   : > { %v6906_v38 = vadd.f32 %v4610_v30, %v2451_v35 }
 0xf7f   : > { %5215 = vmatprep.mubr.msk.f32.mxu1 %vm1043_vm0, %v6906_v38 }
 0xf80   : > { %5216 = vmatmul.mubr.msk.f32.vlgmr.msra.gmra.mrb[24].mxu1 %vm1043_vm0, %v6908_v39 }
 0xf81   : > { %5610 = vmatpush3.bf16.msra.mxu1 %v5607_v17  ;;  %5226 = vmatprep.mubr.msk.f32.mxu1 %vm1043_vm0, %v6906_v38 }
 0xf82   : > { %5612 = vmatprep.subr.bf16.mxu1 %v5611_v40 }
 0xf85   : > { %5614 = vmatpush3.bf16.msra.mxu1 %v5611_v40 }
 0xf86   : > { %5616 = vmatprep.subr.bf16.mxu1 %v5615_v42 }
 0xf88   : > { %5227 = vmatmul.mubr.msk.f32.vlgmr.msra.gmra.mrb[26].mxu1 %vm1043_vm0, %v6908_v39 }
 0xf89   : > { %5618 = vmatpush3.bf16.msra.mxu1 %v5615_v42  ;;  %5237 = vmatprep.mubr.msk.f32.mxu1 %vm1043_vm0, %v6906_v38 }
 0xf8a   : > { %5620 = vmatprep.subr.bf16.mxu1 %v5619_v44 }
 0xf8d   : > { %5622 = vmatpush3.bf16.msra.mxu1 %v5619_v44 }
 0xf90   : > { %5238 = vmatmul.mubr.msk.f32.vlgmr.msra.gmra.mrb[28].mxu1 %vm1043_vm0, %v6908_v39 }
0x1053   : > { %v5217_v46 = vpop.f32.mrb[24].mxu1 }
0x1054   : > { %v2542_v47 = vpop.f32.mrb[25].mxu1  ;;  %v2548_v32 = vadd.f32 %v5217_v46, %v4615_v45 }
0x1055   : > { %v2543_v48 = vadd.f32 %v4615_v45, %v2542_v47 }
0x1057   : > { %5244 = vmatprep.mubr.msk.f32.mxu1 %vm1345_vm2, %v2543_v48 }
0x105b   : > { %v5228_v51 = vpop.f32.mrb[26].mxu1 }
0x105c   : > { %v2633_v53 = vadd.f32 %v5228_v51, %v4622_v50  ;;  %v2627_v55 = vpop.f32.mrb[27].mxu1  ;;  %v4651_v51 = vld [vmem:[%s7552_s18 + $0x120] sm:$0xff] }
0x105d   : > { %v2628_v34 = vadd.f32 %v4622_v50, %v2627_v55 }
0x105f   : > { %v5623_v57 = vpack.c.bf16 %v2633_v53, %v2628_v34  ;;  %v4652_v53 = vld [vmem:[%s7552_s18 + $0x128] sm:$0xff] }
0x1060   : > { %v5647_v55 = vpack.c.bf16 %v4652_v53, %v4651_v51  ;;  %v4680_v51 = vld [vmem:[%s7563_s11 + $0x30] sm:$0xff]  ;;  %v4681_v53 = vld [vmem:[%s7563_s11 + $0x38] sm:$0xff] }
0x1061   : > { %5625 = vmatprep.subr.msk.bf16.mxu1 %vm6671_vm3, %v5623_v57 }
0x1062   : > { %5628 = vmatpush3.bf16.xpose.msk.msra.mxu1 %vm6671_vm3, %v5623_v57 }
0x1063   : > { %v5239_v62 = vpop.f32.mrb[28].mxu1  ;;  %5640 = vmatprep.subr.bf16.mxu1 %v5639_v58 }
0x1064   : > { %v2718_v63 = vadd.f32 %v5239_v62, %v4629_v59  ;;  %v2712_v0 = vpop.f32.mrb[29].mxu1  ;;  %v4655_v62 = vld [vmem:[%s7556_s6 + $0x9] ss:$0 sm:$0xff]  ;;  %s7250_s6 = sld [smem:[#allocation2 + $0xa]] }
0x1065   : > { %v2713_v4 = vadd.f32 %v4629_v59, %v2712_v0 }
0x1067   : > { %v5629_v33 = vpack.c.bf16 %v2718_v63, %v2713_v4 }
0x1069   : > { %5245 = vmatmul.mubr.msk.f32.vlgmr.msra.gmra.mrb[30].mxu1 %vm1345_vm2, %v2548_v32  ;;  %5631 = vmatprep.subr.msk.bf16.mxu0 %vm6690_vm6, %v5629_v33 }
0x106a   : > { %5634 = vmatpush3.bf16.msk.msra.mxu0 %vm6690_vm6, %v5629_v33  ;;  %5642 = vmatpush3.bf16.msra.mxu1 %v5639_v58  ;;  %v5651_v58 = vpack.c.bf16 %v4654_v56, %v4653_v29 }
0x106b   : > { %5269 = vmatprep.mubr.msk.f32.mxu1 %vm1043_vm0, %v6906_v38  ;;  %5644 = vmatprep.subr.bf16.mxu1 %v5643_v5 }
0x106c   : > { %5636 = vmatprep.subr.bf16.mxu0 %v5635_v49 }
0x106e   : > { %5646 = vmatpush3.bf16.msra.mxu1 %v5643_v5 }
0x106f   : > { %5656 = vmatprep.subr.bf16.mxu1 %v5655_v8 }
0x1071   : > { %5270 = vmatmul.mubr.msk.f32.vlgmr.msra.gmra.mrb[32].mxu1 %vm1043_vm0, %v6908_v39 }
0x1072   : > { %5658 = vmatpush3.bf16.msra.mxu1 %v5655_v8  ;;  %5291 = vmatprep.mubr.msk.f32.mxu1 %vm1043_vm0, %v6906_v38 }
0x1073   : > { %5660 = vmatprep.subr.bf16.mxu1 %v5659_v11 }
0x1076   : > { %5662 = vmatpush3.bf16.msra.mxu1 %v5659_v11 }
0x1079   : > { %5292 = vmatmul.mubr.msk.f32.vlgmr.msra.gmra.mrb[34].mxu1 %vm1043_vm0, %v6908_v39 }
0x113c   : > { %v5246_v12 = vpop.f32.mrb[30].mxu1 }
0x113d   : > { %v2809_v13 = vmul.f32 0.25, %v5246_v12  ;;  %v2799_v14 = vpop.f32.mrb[31].mxu1 }
0x113e   : > { %v2808_v15 = vmul.f32 0.25, %v2799_v14 }
0x113f   : > { %v2813_v16 = vsel %vm1439_vm7, %v2809_v13, -inf }
0x1140   : > { %2814 = vmax.xlane.f32.xlu1 %v2813_v16  ;;  %v2810_v17 = vsel %vm1435_vm8, %v2808_v15, -inf  ;;  %v4672_v16 = vld [vmem:[%s7561_s7 + $0x30] sm:$0xff] }
0x1141   : > { %2811 = vmax.xlane.f32.xlu0 %v2810_v17  ;;  %v4673_v17 = vld [vmem:[%s7561_s7 + $0x38] sm:$0xff]  ;;  %s7252_s7 = sld [smem:[#allocation2 + $0x13]] }
0x1144   : > { %v5271_v19 = vpop.f32.mrb[32].mxu1 }
0x1145   : > { %v6990_v20 = vadd.f32 %v5271_v19, %v4648_v18  ;;  %v3082_v21 = vpop.f32.mrb[33].mxu1 }
0x1146   : > { %v3083_v59 = vadd.f32 %v4648_v18, %v3082_v21  ;;  %v5675_v18 = vpack.c.bf16 %v4673_v17, %v4672_v16  ;;  %v4693_v16 = vld [vmem:[%s7566_s13 + $0xc0] sm:$0xff]  ;;  %v4694_v17 = vld [vmem:[%s7566_s13 + $0xc8] sm:$0xff] }
0x114c   : > { %v5293_v23 = vpop.f32.mrb[34].mxu1 }
0x114d   : > { %v3258_v24 = vadd.f32 %v5293_v23, %v4662_v22  ;;  %v3252_v25 = vpop.f32.mrb[35].mxu1 }
0x114e   : > { %v3253_v26 = vadd.f32 %v4662_v22, %v3252_v25 }
0x1150   : > { %v5669_v27 = vpack.c.bf16 %v3258_v24, %v3253_v26 }
0x1152   : > { %5671 = vmatprep.subr.msk.bf16.mxu1 %vm6690_vm6, %v5669_v27 }
0x1153   : > { %5674 = vmatpush3.bf16.msk.msra.mxu1 %vm6690_vm6, %v5669_v27  ;;  %v4643_v27 = vld [vmem:[%s7562_s8 + $0x1] ss:$0 sm:$0xff]  ;;  %vm4050_vm6 = vcmask 1046528   ;;  %s7254_s8 = sld [smem:[#allocation2 + $0x5]] }
0x11cd   : > { %v2815_v28 = vpop.xlane.xlu1 %2814 }
0x11ce   : > { %v2817_v30 = vsub.f32 %v2809_v13, %v2815_v28  ;;  %v2812_v31 = vpop.xlane.xlu0 %2811 }
0x11cf   : > { %v2816_v35 = vsub.f32 %v2808_v15, %v2812_v31 }
0x11d0   : > { %v2820_v36 = vmul.f32 1.442695, %v2817_v30 }
0x11d1   : > { %v2818_v37 = vmul.f32 1.442695, %v2816_v35 }
0x11d2   : > { %5858 = vpow2.f32 %v2820_v36 }
0x11d3   : > { %5860 = vpow2.f32 %v2818_v37 }
0x11dc   : > { %v5859_v40 = vpop.eup %5858 }
0x11dd   : > { %v5861_v41 = vpop.eup %5860  ;;  %v2825_v54 = vsel %vm1439_vm7, %v5859_v40, 0.0 }
0x11de   : > { %2826 = vadd.xlane.f32.xlu1 %v2825_v54  ;;  %v2822_v42 = vsel %vm1435_vm8, %v5861_v41, 0.0 }
0x11df   : > { %2823 = vadd.xlane.f32.xlu0 %v2822_v42 }
0x126b   : > { %v2827_v44 = vpop.xlane.xlu1 %2826 }
0x126c   : > { %5862 = vrcp.f32 %v2827_v44  ;;  %v2824_v45 = vpop.xlane.xlu0 %2823 }
0x126d   : > { %5864 = vrcp.f32 %v2824_v45 }
0x1276   : > { %v5863_v46 = vpop.eup %5862 }
0x1277   : > { %v5865_v47 = vpop.eup %5864  ;;  %v2831_v50 = vmul.f32 %v5863_v46, %v5859_v40 }
0x1278   : > { %v2829_v48 = vmul.f32 %v5865_v47, %v5861_v41  ;;  %v4678_v47 = vld [vmem:[%s7563_s11 + $0x20] sm:$0xff] }
0x127a   : > { %5251 = vmatprep.mubr.msk.f32.mxu0 %vm1435_vm8, %v2829_v48  ;;  %v4679_v48 = vld [vmem:[%s7563_s11 + $0x28] sm:$0xff]  ;;  %s7260_s11 = sld [smem:[#allocation2 + $0x11]] }
0x127b   : > { %5252 = vmatmul.mubr.msk.f32.vlgmr.msra.gmra.mrb[16].mxu0 %vm1435_vm8, %v2831_v50  ;;  %v5679_v50 = vpack.c.bf16 %v4679_v48, %v4678_v47 }
0x127c   : > { %5638 = vmatpush3.bf16.msra.mxu0 %v5635_v49 }
0x127d   : > { %5648 = vmatprep.subr.bf16.mxu0 %v5647_v55  ;;  %5680 = vmatprep.subr.bf16.mxu1 %v5679_v50 }
0x134e   : > { %v5253_v34 = vpop.f32.mrb[16].mxu0 }
0x134f   : > { %v2907_v57 = vpop.f32.mrb[17].mxu0 }
0x1350   : > { %5258 = vmatprep.mubr.msk.f32.mxu0 %vm1345_vm2, %v2907_v57 }
0x1351   : > { %5259 = vmatmul.mubr.msk.f32.vlgmr.msra.gmra.mrb[18].mxu0 %vm1345_vm2, %v5253_v34 }
0x1352   : > { %5650 = vmatpush3.bf16.msra.mxu0 %v5647_v55  ;;  %5280 = vmatprep.mubr.msk.f32.mxu0 %vm1043_vm0, %v6906_v38  ;;  %v5683_v55 = vpack.c.bf16 %v4681_v53, %v4680_v51 }
0x1353   : > { %5652 = vmatprep.subr.bf16.mxu0 %v5651_v58 }
0x1356   : > { %5654 = vmatpush3.bf16.msra.mxu0 %v5651_v58 }
0x1359   : > { %5281 = vmatmul.mubr.msk.f32.vlgmr.msra.gmra.mrb[20].mxu0 %vm1043_vm0, %v6908_v39 }
0x135a   : > { %5298 = vmatprep.mubr.msk.f32.mxu0 %vm1345_vm2, %v3083_v59 }
0x142c   : > { %v5282_v63 = vpop.f32.mrb[20].mxu0 }
0x142d   : > { %v3173_v0 = vadd.f32 %v5282_v63, %v4655_v62  ;;  %v3167_v1 = vpop.f32.mrb[21].mxu0  ;;  %v4676_v63 = vld [vmem:[%s7564_s9 + $0x1] ss:$0 sm:$0xff]  ;;  %s7256_s9 = sld [smem:[#allocation2 + $0x8]] }
0x142e   : > { %v3168_v3 = vadd.f32 %v4655_v62, %v3167_v1 }
0x1430   : > { %v5663_v4 = vpack.c.bf16 %v3173_v0, %v3168_v3 }
0x1432   : > { %5665 = vmatprep.subr.msk.bf16.mxu0 %vm6671_vm3, %v5663_v4 }
0x1433   : > { %5668 = vmatpush3.bf16.xpose.msk.msra.mxu0 %vm6671_vm3, %v5663_v4  ;;  %v4677_v4 = vld [vmem:[%s7565_s10 + $0x1] ss:$0 sm:$0xff]  ;;  %s7258_s10 = sld [smem:[#allocation2 + $0xe]] }
0x1434   : > { %5676 = vmatprep.subr.bf16.mxu0 %v5675_v18 }
0x143a   : > { %5299 = vmatmul.mubr.msk.f32.vlgmr.msra.gmra.mrb[22].mxu0 %vm1345_vm2, %v6990_v20 }
0x143b   : > { %5678 = vmatpush3.bf16.msra.mxu0 %v5675_v18  ;;  %v4695_v18 = vld [vmem:[%s7566_s13 + $0xd0] sm:$0xff] }
0x150d   : > { %v5300_v38 = vpop.f32.mrb[22].mxu0 }
0x150e   : > { %v3349_v39 = vmul.f32 0.25, %v5300_v38  ;;  %v3339_v32 = vpop.f32.mrb[23].mxu0 }
0x150f   : > { %v3348_v33 = vmul.f32 0.25, %v3339_v32 }
0x1510   : > { %v3353_v5 = vsel %vm1439_vm7, %v3349_v39, -inf }
0x1511   : > { %3354 = vmax.xlane.f32.xlu1 %v3353_v5  ;;  %v3350_v6 = vsel %vm1435_vm8, %v3348_v33, -inf  ;;  %v4685_v5 = vld [vmem:[%s7566_s13 + $0x80] sm:$0xff] }
0x1512   : > { %3351 = vmax.xlane.f32.xlu0 %v3350_v6  ;;  %v4686_v6 = vld [vmem:[%s7566_s13 + $0x88] sm:$0xff] }
0x159e   : > { %v3355_v7 = vpop.xlane.xlu1 %3354 }
0x159f   : > { %v3357_v8 = vsub.f32 %v3349_v39, %v3355_v7  ;;  %v3352_v9 = vpop.xlane.xlu0 %3351  ;;  %v5687_v7 = vpack.c.bf16 %v4686_v6, %v4685_v5 }
0x15a0   : > { %v3356_v10 = vsub.f32 %v3348_v33, %v3352_v9  ;;  %v4688_v9 = vld [vmem:[%s7566_s13 + $0x98] sm:$0xff] }
0x15a1   : > { %v3360_v11 = vmul.f32 1.442695, %v3357_v8  ;;  %5688 = vmatprep.subr.bf16.mxu0 %v5687_v7  ;;  %v4687_v8 = vld [vmem:[%s7566_s13 + $0x90] sm:$0xff] }
0x15a2   : > { %v3358_v52 = vmul.f32 1.442695, %v3356_v10  ;;  %v5691_v10 = vpack.c.bf16 %v4688_v9, %v4687_v8 }
0x15a3   : > { %5866 = vpow2.f32 %v3360_v11  ;;  %v4689_v11 = vld [vmem:[%s7566_s13 + $0xa0] sm:$0xff] }
0x15a4   : > { %5868 = vpow2.f32 %v3358_v52  ;;  %v4690_v52 = vld [vmem:[%s7566_s13 + $0xa8] sm:$0xff] }
0x15ad   : > { %v5867_v12 = vpop.eup %5866 }
0x15ae   : > { %v5869_v13 = vpop.eup %5868  ;;  %v3365_v14 = vsel %vm1439_vm7, %v5867_v12, 0.0  ;;  %vm4084_vm7 = vcmask 1045504  }
0x15af   : > { %3366 = vadd.xlane.f32.xlu1 %v3365_v14  ;;  %v3362_v15 = vsel %vm1435_vm8, %v5869_v13, 0.0  ;;  %v4692_v14 = vld [vmem:[%s7566_s13 + $0xb8] sm:$0xff] }
0x15b0   : > { %3363 = vadd.xlane.f32.xlu0 %v3362_v15 }
0x163c   : > { %v3367_v19 = vpop.xlane.xlu1 %3366 }
0x163d   : > { %5870 = vrcp.f32 %v3367_v19  ;;  %v3364_v20 = vpop.xlane.xlu0 %3363  ;;  %v5703_v19 = vpack.c.bf16 %v4694_v17, %v4693_v16 }
0x163e   : > { %5872 = vrcp.f32 %v3364_v20  ;;  %v4696_v20 = vld [vmem:[%s7566_s13 + $0xd8] sm:$0xff] }
0x1647   : > { %v5871_v21 = vpop.eup %5870 }
0x1648   : > { %v5873_v22 = vpop.eup %5872  ;;  %v3371_v24 = vmul.f32 %v5871_v21, %v5867_v12  ;;  %v5695_v12 = vpack.c.bf16 %v4690_v52, %v4689_v11  ;;  %v5707_v21 = vpack.c.bf16 %v4696_v20, %v4695_v18  ;;  %v6027_v52 = vmov 1.0|1.0  }
0x1649   : > { %v3369_v23 = vmul.f32 %v5873_v22, %v5869_v13  ;;  %v4691_v13 = vld [vmem:[%s7566_s13 + $0xb0] sm:$0xff]  ;;  %v4697_v22 = vld [vmem:[%s7566_s13 + $0xe0] sm:$0xff] }
0x164a   : > { %v5699_v15 = vpack.c.bf16 %v4692_v14, %v4691_v13 }
0x164b   : > { %5305 = vmatprep.mubr.msk.f32.mxu1 %vm1435_vm8, %v3369_v23  ;;  %v4698_v23 = vld [vmem:[%s7566_s13 + $0xe8] sm:$0xff] }
0x164c   : > { %5306 = vmatmul.mubr.msk.f32.vlgmr.msra.gmra.mrb[36].mxu1 %vm1435_vm8, %v3371_v24  ;;  %v5711_v24 = vpack.c.bf16 %v4698_v23, %v4697_v22 }
0x164d   : > { %5682 = vmatpush3.bf16.msra.mxu1 %v5679_v50 }
0x164e   : > { %5684 = vmatprep.subr.bf16.mxu1 %v5683_v55 }
0x1651   : > { %5686 = vmatpush3.bf16.msra.mxu1 %v5683_v55 }
0x171f   : > { %v5307_v25 = vpop.f32.mrb[36].mxu1 }
0x1720   : > { %v3447_v26 = vpop.f32.mrb[37].mxu1 }
0x1721   : > { %5312 = vmatprep.mubr.msk.f32.mxu0 %vm1345_vm2, %v3447_v26  ;;  %v4700_v26 = vld [vmem:[%s7566_s13 + $0xf8] sm:$0xff] }
0x1722   : > { %5313 = vmatmul.mubr.msk.f32.vlgmr.msra.gmra.mrb[18].mxu0 %vm1345_vm2, %v5307_v25  ;;  %v4699_v25 = vld [vmem:[%s7566_s13 + $0xf0] sm:$0xff]  ;;  %s7264_s13 = sld [smem:[#allocation2 + $0x1a]] }
0x1723   : > { %5690 = vmatpush3.bf16.msra.mxu0 %v5687_v7  ;;  %v3838_v7 = vlaneseq }
0x1724   : > { %5692 = vmatprep.subr.bf16.mxu0 %v5691_v10 }
0x1725   : > { %v7148_v8 = vshrl.u32 %v3838_v7, 7  ;;  %v7150_v9 = vand.u32 127, %v3838_v7 }
0x1727   : > { %5694 = vmatpush3.bf16.msra.mxu0 %v5691_v10  ;;  %v3840_v10 = vadd.s32 8, %v7148_v8  ;;  %v3845_v11 = vadd.s32 1, %v7150_v9  ;;  %v3842_v13 = vadd.s32 24, %v7148_v8  ;;  %v3939_v14 = vadd.s32 2, %v7150_v9 }
0x1728   : > { %5696 = vmatprep.subr.bf16.mxu0 %v5695_v12 }
0x1729   : > { %vm3846_vm9 = vcmp.eq.s32.totalorder %v7148_v8, %v3845_v11  ;;  %vm3847_vm10 = vcmp.eq.s32.totalorder %v3840_v10, %v3845_v11  ;;  %vm3849_vm13 = vcmp.eq.s32.totalorder %v3842_v13, %v3845_v11  ;;  %vm3940_vm15 = vcmp.eq.s32.totalorder %v7148_v8, %v3939_v14 }
0x172a   : > { %vm5719_vm11 = vmpackc.low %vm3847_vm10, %vm3846_vm9  ;;  %vm3943_vm4 = vcmp.eq.s32.totalorder %v3842_v13, %v3939_v14  ;;  %v4091_v13 = vstv %s7238_s17  ;;  %vm4138_vm10 = vcmp.ge.s32.totalorder %v7150_v9, 8 }
0x172b   : > { %5698 = vmatpush3.bf16.msra.mxu0 %v5695_v12  ;;  %5720 = vmatprep.subr.msk.bf16.mxu1 %vm5719_vm11, %v6027_v52  ;;  %v3841_v12 = vadd.s32 16, %v7148_v8 }
0x172c   : > { %5700 = vmatprep.subr.bf16.mxu0 %v5699_v15 }
0x172d   : > { %vm3848_vm12 = vcmp.eq.s32.totalorder %v3841_v12, %v3845_v11  ;;  %vm3942_vm3 = vcmp.eq.s32.totalorder %v3841_v12, %v3939_v14 }
0x172e   : > { %vm5723_vm14 = vmpackc.low %vm3849_vm13, %vm3848_vm12  ;;  %vm4153_vm12 = vcmp.ge.s32.totalorder %v7150_v9, 16 }
0x172f   : > { %5702 = vmatpush3.bf16.msra.mxu0 %v5699_v15  ;;  %vm7170_vm5 = vmpackc.low %vm3943_vm4, %vm3942_vm3  ;;  %vm4151_vm3 = vcmp.eq.s32.totalorder %v7150_v9, 1  ;;  %vm4166_vm4 = vcmp.eq.s32.totalorder %v7150_v9, 2 }
0x1730   : > { %5704 = vmatprep.subr.bf16.mxu0 %v5703_v19 }
0x1733   : > { %5706 = vmatpush3.bf16.msra.mxu0 %v5703_v19 }
0x1734   : > { %5708 = vmatprep.subr.bf16.mxu0 %v5707_v21 }
0x1737   : > { %5710 = vmatpush3.bf16.msra.mxu0 %v5707_v21 }
0x1738   : > { %5712 = vmatprep.subr.bf16.mxu0 %v5711_v24 }
0x173b   : > { %5714 = vmatpush3.bf16.msra.mxu0 %v5711_v24  ;;  %v4702_v24 = vld [vmem:[%s7573_s15] ss:$0 sm:$0xff]  ;;  %s7268_s15 = sld [smem:[#allocation2 + $0xb]] }
0x17f5   : > { %v5314_v28 = vpop.f32.mrb[18].mxu0 }
0x17f6   : > { %v5739_v30 = vadd.f32 %v5314_v28, %v4643_v27  ;;  %v3531_v31 = vpop.f32.mrb[19].mxu0  ;;  %v4682_v28 = vld [vmem:[%s7567_s12 + $0x1] ss:$0 sm:$0xff]  ;;  %s7262_s12 = sld [smem:[#allocation2 + $0x17]] }
0x17f7   : > { %v5740_v35 = vadd.f32 %v4643_v27, %v3531_v31  ;;  %v5715_v27 = vpack.c.bf16 %v4700_v26, %v4699_v25 }
0x17f8   : > { %v7055_v36 = vadd.f32 %v5739_v30, %v6864_v60 }
0x17f9   : > { %v7058_v37 = vadd.f32 %v5740_v35, %v6866_v61  ;;  %5716 = vmatprep.subr.bf16.mxu0 %v5715_v27 }
0x17fa   : > { %v3549_v40 = vsel %vm1047_vm1, %v7055_v36, 0.0  ;;  %5718 = vmatpush3.bf16.msra.mxu0 %v5715_v27  ;;  %v4703_v27 = vld [vmem:[%s7574_s16] ss:$0 sm:$0xff]  ;;  %s7270_s16 = sld [smem:[#allocation2 + $0x14]] }
0x17fb   : > { %3550 = vadd.xlane.f32.xlu1 %v3549_v40  ;;  %v3546_v41 = vsel %vm1043_vm0, %v7058_v37, 0.0 }
0x17fc   : > { %3547 = vadd.xlane.f32.xlu0 %v3546_v41 }
0x1888   : > { %v3551_v54 = vpop.xlane.xlu1 %3550 }
0x1889   : > { %v3553_v42 = vmul.f32 0.03125, %v3551_v54  ;;  %v3548_v2 = vpop.xlane.xlu0 %3547 }
0x188a   : > { %v3552_v43 = vmul.f32 0.03125, %v3548_v2 }
0x188b   : > { %v3555_v49 = vsub.f32 %v7055_v36, %v3553_v42 }
0x188c   : > { %v3554_v60 = vsub.f32 %v7058_v37, %v3552_v43 }
0x188d   : > { %v3557_v44 = vmul.f32 %v3555_v49, %v3555_v49 }
0x188e   : > { %v3556_v45 = vmul.f32 %v3554_v60, %v3554_v60 }
0x188f   : > { %v3561_v61 = vsel %vm1047_vm1, %v3557_v44, 0.0 }
0x1890   : > { %3562 = vadd.xlane.f32.xlu1 %v3561_v61  ;;  %v3558_v46 = vsel %vm1043_vm0, %v3556_v45, 0.0 }
0x1891   : > { %3559 = vadd.xlane.f32.xlu0 %v3558_v46 }
0x191d   : > { %v3563_v29 = vpop.xlane.xlu1 %3562 }
0x191e   : > { %v3565_v56 = vmul.f32 0.03125, %v3563_v29  ;;  %v3560_v34 = vpop.xlane.xlu0 %3559 }
0x191f   : > { %v3564_v57 = vmul.f32 0.03125, %v3560_v34  ;;  %v4701_v34 = vld [vmem:[%s7568_s14 + $0x1] ss:$0 sm:$0xff]  ;;  %s7266_s14 = sld [smem:[#allocation2 + $0x2]] }
0x1920   : > { %v3567_v58 = vadd.f32 1e-12, %v3565_v56 }
0x1921   : > { %v3566_v59 = vadd.f32 1e-12, %v3564_v57 }
0x1922   : > { %5874 = vrsqrt.f32 %v3567_v58 }
0x1923   : > { %5876 = vrsqrt.f32 %v3566_v59 }
0x192c   : > { %v5875_v62 = vpop.eup %5874 }
0x192d   : > { %v5877_v0 = vpop.eup %5876  ;;  %v3571_v1 = vmul.f32 %v5875_v62, %v3555_v49 }
0x192e   : > { %v3570_v3 = vmul.f32 %v5877_v0, %v3554_v60 }
0x192f   : > { %v3577_v38 = vmul.f32 %v4676_v63, %v3571_v1 }
0x1930   : > { %v3576_v39 = vmul.f32 %v4676_v63, %v3570_v3 }
0x1931   : > { %v3583_v33 = vadd.f32 %v4677_v4, %v3577_v38 }
0x1932   : > { %v3582_v32 = vadd.f32 %v4677_v4, %v3576_v39 }
0x1934   : > { %5323 = vmatprep.mubr.msk.f32.mxu1 %vm1043_vm0, %v3582_v32 }
0x1935   : > { %5324 = vmatmul.mubr.msk.f32.vlgmr.msra.gmra.mrb[38].mxu1 %vm1043_vm0, %v3583_v33 }
0x1936   : > { %5722 = vmatpush3.bf16.msk.msra.mxu1 %vm5719_vm11, %v6027_v52  ;;  %vm4139_vm11 = vcmp.lt.s32.totalorder %v7150_v9, 16 }
0x1937   : > { %5724 = vmatprep.subr.msk.bf16.mxu1 %vm5723_vm14, %v6027_v52 }
0x193a   : > { %5726 = vmatpush3.bf16.msk.msra.mxu1 %vm5723_vm14, %v6027_v52  ;;  %vm4154_vm14 = vcmp.lt.s32.totalorder %v7150_v9, 24 }
0x1a08   : > { %v5325_v30 = vpop.f32.mrb[38].mxu1 }
0x1a09   : > { %v3672_v31 = vadd.f32 %v5325_v30, %v4682_v28  ;;  %v3666_v35 = vpop.f32.mrb[39].mxu1 }
0x1a0a   : > { %v3667_v40 = vadd.f32 %v4682_v28, %v3666_v35 }
0x1a0b   : > { %v3676_v41 = vmul.f32 %v3672_v31, %v3672_v31 }
0x1a0c   : > { %v3675_v54 = vmul.f32 %v3667_v40, %v3667_v40 }
0x1a0d   : > { %v3678_v42 = vmul.f32 %v3676_v41, %v3672_v31  ;;  %v4181_v41 = vstv %s7176_s2  ;;  %s7236_s2 = sld [smem:[#allocation2 + $0x4]] }
0x1a0e   : > { %v3677_v2 = vmul.f32 %v3675_v54, %v3667_v40  ;;  %v4214_v54 = vstv %s7178_s28  ;;  %s4744_s28 = sld [smem:[#allocation2 + $0x12]] }
0x1a0f   : > { %v3680_v43 = vmul.f32 0.044715, %v3678_v42 }
0x1a10   : > { %v3679_v49 = vmul.f32 0.044715, %v3677_v2 }
0x1a11   : > { %v3682_v60 = vadd.f32 %v3680_v43, %v3672_v31 }
0x1a12   : > { %v3681_v44 = vadd.f32 %v3679_v49, %v3667_v40 }
0x1a13   : > { %v3684_v45 = vmul.f32 0.7978846, %v3682_v60  ;;  %v4057_v12 = vstv %s7236_s2 }
0x1a14   : > { %v3683_v61 = vmul.f32 0.7978846, %v3681_v44 }
0x1a15   : > { %5878 = vtanh.f32 %v3684_v45 }
0x1a16   : > { %5880 = vtanh.f32 %v3683_v61  ;;  %v4306_v61 = vstv %s7183_s4  ;;  %s7242_s4 = sld [smem:[#allocation2 + $0x10]] }
0x1a1c   : > { %v4225_v16 = vstv %s7242_s4  ;;  %s6028_s4 = smov [#allocation10]  }
0x1a1f   : > { %v5879_v46 = vpop.eup %5878 }
0x1a20   : > { %v5881_v47 = vpop.eup %5880  ;;  %v3688_v48 = vadd.f32 1.0, %v5879_v46  ;;  %v4339_v46 = vstv %s7185_s24  ;;  %s7244_s24 = sld [smem:[#allocation2 + $0x16]] }
0x1a21   : > { %v3687_v50 = vadd.f32 1.0, %v5881_v47 }
0x1a22   : > { %v3690_v51 = vmul.f32 0.5, %v3688_v48 }
0x1a23   : > { %v3689_v53 = vmul.f32 0.5, %v3687_v50 }
0x1a24   : > { %v3692_v29 = vmul.f32 %v3690_v51, %v3672_v31  ;;  %v4045_v31 = vstv %s4726_s20  ;;  %s4032_s20 = sld [smem:[#allocation2]] }
0x1a25   : > { %v3691_v55 = vmul.f32 %v3689_v53, %v3667_v40  ;;  %v4079_v40 = vstv %s7174_s19  ;;  %s4732_s19 = sld [smem:[#allocation2 + $0x9]] }
0x1a27   : > { %5358 = vmatprep.mubr.f32.mxu0 %v3691_v55 }
0x1a28   : > { %5359 = vmatmul.mubr.f32.vlgmr.msra.gmra.mrb[24].mxu0 %v3692_v29 }
0x1a2b   : > { %v4169_v7 = vstv %s4732_s19 }
0x1afb   : > { %v5360_v56 = vpop.f32.mrb[24].mxu0 }
0x1afc   : > { %v3786_v57 = vadd.f32 %v5360_v56, %v7055_v36  ;;  %v3776_v58 = vpop.f32.mrb[25].mxu0 }
0x1afd   : > { %v3785_v59 = vadd.f32 %v3776_v58, %v7058_v37 }
0x1afe   : > { %v3793_v62 = vadd.f32 %v4701_v34, %v3786_v57 }
0x1aff   : > { %v3792_v63 = vadd.f32 %v4701_v34, %v3785_v59 }
0x1b00   : > { %v3799_v0 = vsel %vm1047_vm1, %v3793_v62, 0.0 }
0x1b01   : > { %3800 = vadd.xlane.f32.xlu1 %v3799_v0  ;;  %v3796_v1 = vsel %vm1043_vm0, %v3792_v63, 0.0 }
0x1b02   : > { %3797 = vadd.xlane.f32.xlu0 %v3796_v1 }
0x1b8e   : > { %v3801_v3 = vpop.xlane.xlu1 %3800 }
0x1b8f   : > { %v3803_v4 = vmul.f32 0.03125, %v3801_v3  ;;  %v3798_v38 = vpop.xlane.xlu0 %3797 }
0x1b90   : > { %v3802_v39 = vmul.f32 0.03125, %v3798_v38 }
0x1b91   : > { %v3805_v32 = vsub.f32 %v3793_v62, %v3803_v4 }
0x1b92   : > { %v3804_v33 = vsub.f32 %v3792_v63, %v3802_v39 }
0x1b93   : > { %v3807_v5 = vmul.f32 %v3805_v32, %v3805_v32 }
0x1b94   : > { %v3806_v6 = vmul.f32 %v3804_v33, %v3804_v33 }
0x1b95   : > { %v3811_v36 = vsel %vm1047_vm1, %v3807_v5, 0.0  ;;  %vm3941_vm1 = vcmp.eq.s32.totalorder %v3840_v10, %v3939_v14  ;;  %v4294_v10 = vstv %s4744_s28  ;;  %v4192_v14 = vstv %s7240_s1 }
0x1b96   : > { %3812 = vadd.xlane.f32.xlu1 %v3811_v36  ;;  %v3808_v37 = vsel %vm1043_vm0, %v3806_v6, 0.0  ;;  %vm7163_vm2 = vmpackc.low %vm3941_vm1, %vm3940_vm15  ;;  %vm4124_vm1 = vcmp.lt.s32.totalorder %v7150_v9, 8 }
0x1b97   : > { %3809 = vadd.xlane.f32.xlu0 %v3808_v37  ;;  %5728 = vmatprep.subr.msk.bf16.mxu1 %vm7163_vm2, %v6027_v52  ;;  %v4033_v37 = vstv %s4032_s20  ;;  %vm7369_vm15 = vmand %vm4138_vm10, %vm4139_vm11  ;;  %vm4416_vm10 = vcmp.eq.s32.totalorder %v7150_v9, 8  ;;  %vm4418_vm11 = vcmask 65536  }
0x1c23   : > { %v3813_v17 = vpop.xlane.xlu1 %3812 }
0x1c24   : > { %v3815_v18 = vmul.f32 0.03125, %v3813_v17  ;;  %v3810_v19 = vpop.xlane.xlu0 %3809  ;;  %v4317_v17 = vstv %s7244_s24  ;;  %s5950_s24 = sshll.u32 %s6028_s4, 4  ;;  %s5951_s24 = int_to_ptr.vmem [resolvable:$false] %s5950_s24 }
0x1c25   : > { %v3814_v20 = vmul.f32 0.03125, %v3810_v19  ;;  %v4037_v19 = vstv %s7248_s0 }
0x1c26   : > { %v3817_v21 = vadd.f32 1e-12, %v3815_v18  ;;  %v4350_v18 = vstv %s7246_s26  ;;  %s5952_s26 = scalar_lea.vmem %s5951_s24, 32 }
0x1c27   : > { %v3816_v22 = vadd.f32 1e-12, %v3814_v20  ;;  %v4173_v20 = vstv %s7250_s6  ;;  %s7314_s6 = sld [smem:[#allocation5]] }
0x1c28   : > { %5882 = vrsqrt.f32 %v3817_v21  ;;  %v4298_v21 = vstv %s7252_s7  ;;  %s7324_s7 = sld [smem:[#allocation5 + $0x1]] }
0x1c29   : > { %5884 = vrsqrt.f32 %v3816_v22  ;;  %v4068_v22 = vstv %s7254_s8  ;;  %s7328_s8 = sld [smem:[#allocation5 + $0x2]] }
0x1c32   : > { %v5883_v23 = vpop.eup %5882 }
0x1c33   : > { %v5885_v25 = vpop.eup %5884  ;;  %v3821_v26 = vmul.f32 %v5883_v23, %v3805_v32  ;;  %v4102_v23 = vstv %s7256_s9  ;;  %s7330_s9 = sld [smem:[#allocation7]] }
0x1c34   : > { %v3820_v28 = vmul.f32 %v5885_v25, %v3804_v33  ;;  %v4203_v25 = vstv %s7258_s10  ;;  %s7335_s10 = sld [smem:[#allocation8]] }
0x1c35   : > { %v3829_v30 = vmul.f32 %v4702_v24, %v3821_v26  ;;  %v4236_v26 = vstv %s7260_s11  ;;  %s7341_s11 = sld [smem:[#allocation7 + $0x1]] }
0x1c36   : > { %v3828_v35 = vmul.f32 %v4702_v24, %v3820_v28  ;;  %v4361_v28 = vstv %s7264_s13  ;;  %s7350_s13 = sld [smem:[#allocation8 + $0x1]] }
0x1c37   : > { %v3837_v42 = vadd.f32 %v4703_v27, %v3829_v30 }
0x1c38   : > { %v7193_v2 = vadd.f32 %v4703_v27, %v3828_v35  ;;  %v4328_v27 = vstv %s7262_s12  ;;  %s7346_s12 = sld [smem:[#allocation7 + $0x2]] }
0x1c39   : > { %v4047_v43 = vmul.f32 %v4045_v31, %v3837_v42  ;;  %v4081_v49 = vmul.f32 %v4079_v40, %v3837_v42  ;;  %v4183_v60 = vmul.f32 %v4181_v41, %v3837_v42  ;;  %v4216_v44 = vmul.f32 %v4214_v54, %v3837_v42 }
0x1c3a   : > { %5369 = vmatprep.mubr.msk.f32.mxu1 %vm1043_vm0, %v7193_v2  ;;  %v4046_v45 = vmul.f32 %v4045_v31, %v7193_v2  ;;  %v4080_v48 = vmul.f32 %v4079_v40, %v7193_v2  ;;  %v4182_v51 = vmul.f32 %v4181_v41, %v7193_v2  ;;  %v4215_v29 = vmul.f32 %v4214_v54, %v7193_v2 }
0x1c3b   : > { %5370 = vmatmul.mubr.msk.f32.vlgmr.msra.gmra.mrb[40].mxu1 %vm1043_vm0, %v3837_v42  ;;  %v4052_v47 = vrot.slane %v4047_v43, 1  ;;  %v4086_v50 = vrot.slane %v4081_v49, 2  ;;  %v4187_v55 = vrot.slane %v4183_v60, 1  ;;  %v4220_v56 = vrot.slane %v4216_v44, 2 }
0x1c3c   : > { %5730 = vmatpush3.bf16.msk.msra.mxu1 %vm7163_vm2, %v6027_v52  ;;  %5380 = vmatprep.mubr.msk.f32.mxu1 %vm1043_vm0, %v7193_v2  ;;  %v4051_v53 = vrot.slane %v4046_v45, 1  ;;  %v4085_v34 = vrot.slane %v4080_v48, 2  ;;  %v4186_v57 = vrot.slane %v4182_v51, 1  ;;  %v4307_v58 = vmul.f32 %v4306_v61, %v7193_v2  ;;  %vm7377_vm2 = vmand %vm4153_vm12, %vm4154_vm14 }
0x1c3d   : > { %5732 = vmatprep.subr.msk.bf16.mxu1 %vm7170_vm5, %v6027_v52  ;;  %v4308_v59 = vmul.f32 %v4306_v61, %v3837_v42  ;;  %v4219_v63 = vrot.slane %v4215_v29, 2  ;;  %v4340_v0 = vmul.f32 %v4339_v46, %v7193_v2  ;;  %v4341_v1 = vmul.f32 %v4339_v46, %v3837_v42 }
0x1c3e   : > { %v7214_v62 = vsel %vm4050_vm6, %v4051_v53, %v4052_v47  ;;  %v7218_v3 = vsel %vm4084_vm7, %v4085_v34, %v4086_v50  ;;  %v7221_v4 = vsel %vm4050_vm6, %v4186_v57, %v4187_v55  ;;  %v4311_v38 = vrot.slane %v4307_v58, 1 }
0x1c3f   : > { %v4312_v39 = vrot.slane %v4308_v59, 1  ;;  %v7227_v32 = vsel %vm4084_vm7, %v4219_v63, %v4220_v56  ;;  %v4344_v33 = vrot.slane %v4340_v0, 2  ;;  %v4345_v5 = vrot.slane %v4341_v1, 2 }
0x1c40   : > { %5734 = vmatpush3.bf16.msk.msra.mxu1 %vm7170_vm5, %v6027_v52  ;;  %v4034_v11 = vmul.f32 %v4033_v37, %v7193_v2  ;;  %v4170_v52 = vmul.f32 %v4169_v7, %v7193_v2  ;;  %v4295_v15 = vmul.f32 %v4294_v10, %v7193_v2  ;;  %v4041_v41 = vstv %s7266_s14  ;;  %s7356_s14 = sld [smem:[#allocation8 + $0x2]] }
0x1c41   : > { %v7230_v6 = vsel %vm4050_vm6, %v4311_v38, %v4312_v39  ;;  %v7233_v36 = vsel %vm4084_vm7, %v4344_v33, %v4345_v5  ;;  %v4177_v2 = vstv %s7268_s15  ;;  %v4302_v43 = vstv %s7270_s16  ;;  %s699_s15 = sand.u32 1, %s6012_s25   ;;  %s4756_s16 = sshll.u32 %s6160_s3, 4 }
0x1c42   : > { %vm4267_vm5 = vcmp.eq.s32.totalorder %v7150_v9, 3  ;;  %s700_s20 = scalar_lea.vmem [#allocation10], %s699_s15  ;;  %s7431_s17 = scalar_lea.hbm %s7494_s21, %s4756_s16 }
0x1c43   : > { %5381 = vmatmul.mubr.msk.f32.vlgmr.msra.gmra.mrb[42].mxu1 %vm1043_vm0, %v3837_v42  ;;  %s4433_s19 = sshll.u32 %s700_s20, 4  ;;  %s4421_s3 = scalar_lea.sflag [#allocation3], %s699_s15  ;;  %s7433_s19 = int_to_ptr.vmem [resolvable:$true] %s4433_s19 }
0x1c44   : > { %s5946_s1 = scalar_lea.vmem %s7433_s19, 16  ;;  %p5953_p2 = scmp.lt.s32.totalorder %s7433_s19, %s5951_s24 }
0x1c45   : > { %p5947_p8 = scmp.ne.s32.totalorder %s7433_s19, %s5946_s1  ;;  %p5954_p3 = scmp.lt.s32.totalorder %s5952_s26, %s5946_s1 }
0x1c47   : > { %p5948_p13 = pnand %p5947_p8, %p7581_p11  ;;  %p5955_p4 = por %p5954_p3, %p5953_p2 }
0x1c49   : > { %p5949_p1 = pneg %p5948_p13 }
0x1c4b   : > { %p5956_p9 = pnand %p5955_p4, %p5949_p1 }
0x1d0e   : > { %v5371_v24 = vpop.f32.mrb[40].mxu1 }
0x1d0f   : > { %v4059_v30 = vmul.f32 %v5371_v24, %v4057_v12  ;;  %v4093_v31 = vmul.f32 %v5371_v24, %v4091_v13  ;;  %v7290_v35 = vmul.f32 %v5371_v24, %v4192_v14  ;;  %v3930_v40 = vpop.f32.mrb[41].mxu1  ;;  %v4227_v60 = vmul.f32 %v5371_v24, %v4225_v16 }
0x1d10   : > { %v4038_v54 = vmul.f32 %v4037_v19, %v3930_v40  ;;  %v4058_v42 = vmul.f32 %v4057_v12, %v3930_v40  ;;  %v7295_v44 = vmul.f32 %v5371_v24, %v4317_v17  ;;  %v7297_v45 = vmul.f32 %v5371_v24, %v4350_v18 }
0x1d11   : > { %v4063_v49 = vrot.slane %v4059_v30, 1  ;;  %v4097_v61 = vrot.slane %v4093_v31, 2  ;;  %v4198_v46 = vrot.slane %v7290_v35, 1  ;;  %v4174_v48 = vmul.f32 %v4173_v20, %v3930_v40 }
0x1d12   : > { %v4062_v47 = vrot.slane %v4058_v42, 1  ;;  %v4193_v50 = vmul.f32 %v4192_v14, %v3930_v40  ;;  %v4299_v51 = vmul.f32 %v4298_v21, %v3930_v40  ;;  %v4318_v53 = vmul.f32 %v4317_v17, %v3930_v40 }
0x1d13   : > { %v4039_v55 = vadd.f32 %v4038_v54, %v4034_v11  ;;  %v4175_v29 = vadd.f32 %v4174_v48, %v4170_v52  ;;  %v4092_v34 = vmul.f32 %v4091_v13, %v3930_v40  ;;  %v4226_v57 = vmul.f32 %v4225_v16, %v3930_v40 }
0x1d14   : > { %v4064_v56 = vsel %vm4050_vm6, %v4062_v47, %v4063_v49  ;;  %v4231_v58 = vrot.slane %v4227_v60, 2  ;;  %v4323_v59 = vrot.slane %v7295_v44, 1  ;;  %v4356_v63 = vrot.slane %v7297_v45, 2 }
0x1d15   : > { %v4300_v0 = vadd.f32 %v4299_v51, %v4295_v15  ;;  %v4197_v1 = vrot.slane %v4193_v50, 1  ;;  %v4322_v38 = vrot.slane %v4318_v53, 1  ;;  %v4096_v33 = vrot.slane %v4092_v34, 2 }
0x1d16   : > { %v5382_v39 = vpop.f32.mrb[42].mxu1  ;;  %v4351_v5 = vmul.f32 %v4350_v18, %v3930_v40  ;;  %v4230_v16 = vrot.slane %v4226_v57, 2  ;;  %v4029_v45 = vand.u32 1, %v7150_v9 }
0x1d17   : > { %v4070_v37 = vmul.f32 %v5382_v39, %v4068_v22  ;;  %v4104_v7 = vmul.f32 %v5382_v39, %v4102_v23  ;;  %v4205_v10 = vmul.f32 %v5382_v39, %v4203_v25  ;;  %v4238_v11 = vmul.f32 %v5382_v39, %v4236_v26  ;;  %v4018_v52 = vpop.f32.mrb[43].mxu1 }
0x1d18   : > { %v4330_v12 = vmul.f32 %v5382_v39, %v4328_v27  ;;  %v4042_v13 = vmul.f32 %v4041_v41, %v4018_v52  ;;  %v4069_v14 = vmul.f32 %v4068_v22, %v4018_v52  ;;  %v4363_v20 = vmul.f32 %v5382_v39, %v4361_v28 }
0x1d19   : > { %v4074_v17 = vrot.slane %v4070_v37, 1  ;;  %v4108_v15 = vrot.slane %v4104_v7, 2  ;;  %v4209_v19 = vrot.slane %v4205_v10, 1  ;;  %v4242_v21 = vrot.slane %v4238_v11, 2 }
0x1d1a   : > { %v4334_v24 = vrot.slane %v4330_v12, 1  ;;  %v4043_v18 = vadd.f32 %v4042_v13, %v4039_v55  ;;  %v4073_v30 = vrot.slane %v4069_v14, 1  ;;  %v4178_v31 = vmul.f32 %v4177_v2, %v4018_v52 }
0x1d1b   : > { %v4204_v35 = vmul.f32 %v4203_v25, %v4018_v52  ;;  %v4303_v40 = vmul.f32 %v4302_v43, %v4018_v52  ;;  %v4329_v54 = vmul.f32 %v4328_v27, %v4018_v52  ;;  %v4098_v41 = vsel %vm4084_vm7, %v4096_v33, %v4097_v61 }
0x1d1c   : > { %v4055_v42 = vadd.f32 %v7214_v62, %v4043_v18  ;;  %v4075_v22 = vsel %vm4050_vm6, %v4073_v30, %v4074_v17  ;;  %v4103_v49 = vmul.f32 %v4102_v23, %v4018_v52  ;;  %v4179_v60 = vadd.f32 %v4178_v31, %v4175_v29 }
0x1d1d   : > { %v4208_v44 = vrot.slane %v4204_v35, 1  ;;  %v4304_v47 = vadd.f32 %v4303_v40, %v4300_v0  ;;  %v4333_v48 = vrot.slane %v4329_v54, 1  ;;  %v4199_v25 = vsel %vm4050_vm6, %v4197_v1, %v4198_v46 }
0x1d1e   : > { %v4066_v50 = vadd.f32 %v4064_v56, %v4055_v42  ;;  %v4107_v2 = vrot.slane %v4103_v49, 2  ;;  %v4232_v27 = vsel %vm4084_vm7, %v4230_v16, %v4231_v58  ;;  %v4190_v62 = vadd.f32 %v7221_v4, %v4179_v60 }
0x1d1f   : > { %v4210_v43 = vsel %vm4050_vm6, %v4208_v44, %v4209_v19  ;;  %v4237_v61 = vmul.f32 %v4236_v26, %v4018_v52  ;;  %v4315_v23 = vadd.f32 %v7230_v6, %v4304_v47  ;;  %v4324_v55 = vsel %vm4050_vm6, %v4322_v38, %v4323_v59 }
0x1d20   : > { %v4077_v51 = vadd.f32 %v4075_v22, %v4066_v50  ;;  %v4109_v53 = vsel %vm4084_vm7, %v4107_v2, %v4108_v15  ;;  %v4335_v46 = vsel %vm4050_vm6, %v4333_v48, %v4334_v24  ;;  %v4201_v4 = vadd.f32 %v4199_v25, %v4190_v62 }
0x1d21   : > { %v4241_v29 = vrot.slane %v4237_v61, 2  ;;  %v4326_v56 = vadd.f32 %v4324_v55, %v4315_v23  ;;  %v4355_v26 = vrot.slane %v4351_v5, 2  ;;  %v4367_v34 = vrot.slane %v4363_v20, 2 }
0x1d22   : > { %v4089_v6 = vadd.f32 %v7218_v3, %v4077_v51  ;;  %v4362_v57 = vmul.f32 %v4361_v28, %v4018_v52  ;;  %v4212_v58 = vadd.f32 %v4210_v43, %v4201_v4  ;;  %v4113_v3 = vstv %s7314_s6 }
0x1d23   : > { %v4243_v59 = vsel %vm4084_vm7, %v4241_v29, %v4242_v21  ;;  %v4337_v0 = vadd.f32 %v4335_v46, %v4326_v56  ;;  %v4357_v1 = vsel %vm4084_vm7, %v4355_v26, %v4356_v63  ;;  %v4027_v5 = vand.u32 1, %v7148_v8 }
0x1d24   : > { %v4100_v38 = vadd.f32 %v4098_v41, %v4089_v6  ;;  %v4366_v39 = vrot.slane %v4362_v57, 2  ;;  %v4223_v28 = vadd.f32 %v7227_v32, %v4212_v58  ;;  %v4247_v52 = vstv %s7324_s7 }
0x1d25   : > { %v4348_v33 = vadd.f32 %v7233_v36, %v4337_v0  ;;  %v4372_v32 = vstv %s7328_s8  ;;  %v4117_v12 = vstv %s7330_s9  ;;  %vm4028_vm8 = vcmp.eq.s32.totalorder %v4027_v5, 0 }
0x1d26   : > { %v4111_v37 = vadd.f32 %v4109_v53, %v4100_v38  ;;  %v4368_v63 = vsel %vm4084_vm7, %v4366_v39, %v4367_v34  ;;  %v4234_v7 = vadd.f32 %v4232_v27, %v4223_v28  ;;  %vm4030_vm9 = vcmp.eq.s32.totalorder %v4029_v45, 0 }
0x1d27   : > { %v4359_v10 = vadd.f32 %v4357_v1, %v4348_v33  ;;  %v4120_v14 = vstv %s7335_s10  ;;  %v4251_v19 = vstv %s7341_s11  ;;  %vm7363_vm13 = vmand %vm4028_vm8, %vm4030_vm9  ;;  %v4376_v18 = vstv %s7346_s12 }
0x1d28   : > { %v4114_v11 = vadd.f32 %v4113_v3, %v4111_v37  ;;  %v4245_v36 = vadd.f32 %v4243_v59, %v4234_v7  ;;  %v4254_v35 = vstv %s7350_s13  ;;  %v4379_v44 = vstv %s7356_s14 }
0x1d29   : > { %v4370_v13 = vadd.f32 %v4368_v63, %v4359_v10  ;;  %vm4279_vm6 = vcmp.eq.s32.totalorder %v7150_v9, 4  ;;  %vm4291_vm7 = vcmp.eq.s32.totalorder %v7150_v9, 5  ;;  %vm4392_vm8 = vcmp.eq.s32.totalorder %v7150_v9, 6 }
0x1d2a   : > { %v4115_v8 = vmax.f32 %v4114_v11, 0.0  ;;  %v4248_v16 = vadd.f32 %v4247_v52, %v4245_v36  ;;  %vm4404_vm9 = vcmp.eq.s32.totalorder %v7150_v9, 7 }
0x1d2b   : > { %v4373_v17 = vadd.f32 %v4372_v32, %v4370_v13 }
0x1d2c   : > { %v4118_v15 = vmul.f32 %v4117_v12, %v4115_v8  ;;  %v4249_v21 = vmax.f32 %v4248_v16, 0.0 }
0x1d2d   : > { %v4374_v24 = vmax.f32 %v4373_v17, 0.0 }
0x1d2e   : > { %v4121_v30 = vadd.f32 %v4120_v14, %v4118_v15  ;;  %v4252_v40 = vmul.f32 %v4251_v19, %v4249_v21 }
0x1d2f   : > { %v4377_v22 = vmul.f32 %v4376_v18, %v4374_v24 }
0x1d30   : > { %v4122_v54 = vsel %vm7363_vm13, %v4121_v30, -3e+38  ;;  %v4255_v60 = vadd.f32 %v4254_v35, %v4252_v40 }
0x1d31   : > { %v4141_v41 = vsel %vm7369_vm15, %v4122_v54, -3e+38  ;;  %v4126_v49 = vsel %vm4124_vm1, %v4122_v54, -3e+38  ;;  %v4156_v2 = vsel %vm7377_vm2, %v4122_v54, -3e+38  ;;  %v4380_v27 = vadd.f32 %v4379_v44, %v4377_v22 }
0x1d32   : > { %v4142_v47 = vsel %vm1043_vm0, %v4141_v41, -inf  ;;  %v4127_v48 = vsel %vm1043_vm0, %v4126_v49, -inf  ;;  %v4256_v50 = vsel %vm7363_vm13, %v4255_v60, -3e+38  ;;  %v4157_v43 = vsel %vm1043_vm0, %v4156_v2, -inf }
0x1d33   : > { %4143 = vmax.xlane.f32.xlu1 %v4142_v47  ;;  %4128 = vmax.xlane.f32.xlu0 %v4127_v48  ;;  %v4257_v25 = vsel %vm4124_vm1, %v4256_v50, -3e+38  ;;  %v4281_v61 = vsel %vm7377_vm2, %v4256_v50, -3e+38  ;;  %v4269_v23 = vsel %vm7369_vm15, %v4256_v50, -3e+38 }
0x1d34   : > { %v4258_v62 = vsel %vm1043_vm0, %v4257_v25, -inf  ;;  %v4381_v51 = vsel %vm7363_vm13, %v4380_v27, -3e+38  ;;  %v4282_v53 = vsel %vm1043_vm0, %v4281_v61, -inf  ;;  %v4270_v55 = vsel %vm1043_vm0, %v4269_v23, -inf }
0x1d35   : > { %v4394_v46 = vsel %vm7369_vm15, %v4381_v51, -3e+38  ;;  %v4382_v4 = vsel %vm4124_vm1, %v4381_v51, -3e+38  ;;  %v4406_v26 = vsel %vm7377_vm2, %v4381_v51, -3e+38 }
0x1d36   : > { %v4395_v29 = vsel %vm1043_vm0, %v4394_v46, -inf  ;;  %v4383_v56 = vsel %vm1043_vm0, %v4382_v4, -inf  ;;  %v4407_v34 = vsel %vm1043_vm0, %v4406_v26, -inf  ;;  %vm4136_vm0 = vcmp.eq.s32.totalorder %v7150_v9, 0 }
0x1d37   : > { %4259 = vmax.xlane.f32.xlu1 %v4258_v62  ;;  %4158 = vmax.xlane.f32.xlu0 %v4157_v43 }
0x1d3b   : > { %4283 = vmax.xlane.f32.xlu1 %v4282_v53  ;;  %4271 = vmax.xlane.f32.xlu0 %v4270_v55 }
0x1d3f   : > { %4396 = vmax.xlane.f32.xlu1 %v4395_v29  ;;  %4384 = vmax.xlane.f32.xlu0 %v4383_v56 }
0x1d43   : > { %4408 = vmax.xlane.f32.xlu0 %v4407_v34 }
0x1dc0   : > { %v4144_v6 = vpop.xlane.xlu1 %4143  ;;  %v4129_v57 = vpop.xlane.xlu0 %4128 }
0x1dc1   : > { %v4145_v58 = vrot.slane %v4144_v6, 4  ;;  %v4130_v59 = vrot.slane %v4129_v57, 4 }
0x1dc3   : > { %v4146_v0 = vmax.f32 %v4144_v6, %v4145_v58  ;;  %v4131_v1 = vmax.f32 %v4129_v57, %v4130_v59 }
0x1dc4   : > { %v4260_v38 = vpop.xlane.xlu1 %4259  ;;  %v4159_v39 = vpop.xlane.xlu0 %4158 }
0x1dc5   : > { %v4147_v3 = vrot.slane %v4146_v0, 2  ;;  %v4132_v28 = vrot.slane %v4131_v1, 2  ;;  %v4261_v33 = vrot.slane %v4260_v38, 4  ;;  %v4160_v5 = vrot.slane %v4159_v39, 4 }
0x1dc7   : > { %v4148_v45 = vmax.f32 %v4146_v0, %v4147_v3  ;;  %v4133_v37 = vmax.f32 %v4131_v1, %v4132_v28  ;;  %v4262_v63 = vmax.f32 %v4260_v38, %v4261_v33  ;;  %v4161_v7 = vmax.f32 %v4159_v39, %v4160_v5 }
0x1dc8   : > { %v4284_v10 = vpop.xlane.xlu1 %4283  ;;  %v4272_v11 = vpop.xlane.xlu0 %4271 }
0x1dc9   : > { %v4149_v52 = vrot.slane %v4148_v45, 1  ;;  %v4134_v32 = vrot.slane %v4133_v37, 1  ;;  %v4263_v12 = vrot.slane %v4262_v63, 2  ;;  %v4162_v36 = vrot.slane %v4161_v7, 2 }
0x1dca   : > { %v4285_v13 = vrot.slane %v4284_v10, 4  ;;  %v4273_v8 = vrot.slane %v4272_v11, 4 }
0x1dcb   : > { %v4135_v14 = vmax.f32 %v4133_v37, %v4134_v32  ;;  %v4264_v16 = vmax.f32 %v4262_v63, %v4263_v12  ;;  %v4163_v17 = vmax.f32 %v4161_v7, %v4162_v36  ;;  %v4150_v24 = vmax.f32 %v4148_v45, %v4149_v52 }
0x1dcc   : > { %v4286_v15 = vmax.f32 %v4284_v10, %v4285_v13  ;;  %v4274_v19 = vmax.f32 %v4272_v11, %v4273_v8  ;;  %v4397_v20 = vpop.xlane.xlu1 %4396  ;;  %v4385_v21 = vpop.xlane.xlu0 %4384 }
0x1dcd   : > { %v4265_v18 = vrot.slane %v4264_v16, 1  ;;  %v4164_v30 = vrot.slane %v4163_v17, 1  ;;  %v4398_v31 = vrot.slane %v4397_v20, 4  ;;  %v4137_v35 = vsel %vm4136_vm0, %v4135_v14, 0.0 }
0x1dce   : > { %v4287_v40 = vrot.slane %v4286_v15, 2  ;;  %v4275_v54 = vrot.slane %v4274_v19, 2  ;;  %v4386_v42 = vrot.slane %v4385_v21, 4  ;;  %v4152_v48 = vsel %vm4151_vm3, %v4150_v24, %v4137_v35 }
0x1dcf   : > { %v4165_v22 = vmax.f32 %v4163_v17, %v4164_v30  ;;  %v4399_v41 = vmax.f32 %v4397_v20, %v4398_v31  ;;  %v4266_v50 = vmax.f32 %v4264_v16, %v4265_v18 }
0x1dd0   : > { %v4288_v49 = vmax.f32 %v4286_v15, %v4287_v40  ;;  %v4276_v60 = vmax.f32 %v4274_v19, %v4275_v54  ;;  %v4387_v44 = vmax.f32 %v4385_v21, %v4386_v42  ;;  %v4409_v47 = vpop.xlane.xlu0 %4408 }
0x1dd1   : > { %v4400_v2 = vrot.slane %v4399_v41, 2  ;;  %v4410_v25 = vrot.slane %v4409_v47, 4  ;;  %v4167_v27 = vsel %vm4166_vm4, %v4165_v22, %v4152_v48 }
0x1dd2   : > { %v4289_v62 = vrot.slane %v4288_v49, 1  ;;  %v4277_v43 = vrot.slane %v4276_v60, 1  ;;  %v4388_v61 = vrot.slane %v4387_v44, 2  ;;  %v4268_v4 = vsel %vm4267_vm5, %v4266_v50, %v4167_v27 }
0x1dd3   : > { %v4401_v23 = vmax.f32 %v4399_v41, %v4400_v2  ;;  %v4411_v51 = vmax.f32 %v4409_v47, %v4410_v25 }
0x1dd4   : > { %v4278_v53 = vmax.f32 %v4276_v60, %v4277_v43  ;;  %v4389_v55 = vmax.f32 %v4387_v44, %v4388_v61  ;;  %v4290_v46 = vmax.f32 %v4288_v49, %v4289_v62 }
0x1dd5   : > { %v4402_v29 = vrot.slane %v4401_v23, 1  ;;  %v4412_v56 = vrot.slane %v4411_v51, 2 }
0x1dd6   : > { %v4280_v26 = vsel %vm4279_vm6, %v4278_v53, %v4268_v4  ;;  %v4390_v34 = vrot.slane %v4389_v55, 1 }
0x1dd7   : > { %v4413_v6 = vmax.f32 %v4411_v51, %v4412_v56  ;;  %v4403_v57 = vmax.f32 %v4401_v23, %v4402_v29  ;;  %v4292_v0 = vsel %vm4291_vm7, %v4290_v46, %v4280_v26 }
0x1dd8   : > { %v4391_v58 = vmax.f32 %v4389_v55, %v4390_v34 }
0x1dd9   : > { %v4414_v59 = vrot.slane %v4413_v6, 1 }
0x1dda   : > { %v4393_v1 = vsel %vm4392_vm8, %v4391_v58, %v4292_v0 }
0x1ddb   : > { %v4415_v38 = vmax.f32 %v4413_v6, %v4414_v59  ;;  %v4405_v39 = vsel %vm4404_vm9, %v4403_v57, %v4393_v1 }
0x1ddd   : > { %v4417_v3 = vsel %vm4416_vm10, %v4415_v38, %v4405_v39 }
0x1dde   : > { %4419 = vst.msk [vmem:[%s700_s20] sm:$0x1] %vm4418_vm11, %v4417_v3 }
0x1ddf   : > { %5959 = shalt.err (!%p5956_p9)
}
0x1de0   : > { %s5960_s0 = scalar_lea.hbm %s7431_s17, 16  ;;  %s5964_s8 = scalar_lea.hbm %s7494_s21, 32 }
0x1de1   : > { %p5961_p7 = scmp.ne.s32.totalorder %s7431_s17, %s5960_s0  ;;  %p5965_p6 = scmp.lt.u32.totalorder %s7431_s17, %s7494_s21 }
0x1de2   : > { %p5966_p12 = scmp.lt.u32.totalorder %s5964_s8, %s5960_s0  ;;  %p5968_p8 = scmp.lt.u32.totalorder %s5960_s0, %s7431_s17 }
0x1de3   : > { %p5962_p0 = pnand %p5961_p7, %p7581_p11 }
0x1de4   : > { %p5967_p10 = por %p5966_p12, %p5965_p6 }
0x1de5   : > { %p5963_p5 = pneg %p5962_p0 }
0x1de6   : > { %p5969_p13 = por %p5968_p8, %p5967_p10 }
0x1de8   : > { %p5970_p1 = pnand %p5969_p13, %p5963_p5 }
0x1dea   : > { %5973 = shalt.err (!%p5970_p1)
}
0x1deb   : > { %5760 = dma.vmem_to_hbm [thread:$0]  (%p7581_p11), %s7433_s19, 16, %s7431_s17, %s4421_s3  }
0x1dec PF: > { %s7582_s11 = sld [smem:[#allocation15_spill]]  ;;  %s7583_s12 = sld [smem:[#allocation19_spill]] }
0x1ded   : > { %p5787_p2 = scmp.ge.s32.totalorder %s6020_s27, 2 }
0x1df2   : > { %s4445_s13 = sand.u32 1, %s7582_s11   ;;  %p7584_p3 = scmp.ne.s32.totalorder %s7583_s12, 0 }
0x1df3   : > { %s4446_s14 = scalar_lea.sflag [#allocation3], %s4445_s13 }
0x1df4   : > { %p5776_p4 = pnand %p5787_p2, %p7584_p3 }
0x1df6   : > { %6003 = dma.done.wait (!%p5776_p4), %s4446_s14, 16  }
0x1df7   : > { %6005 = vsyncadd (!%p5776_p4), %s4446_s14, 4294967280  ;;  %s7585_s27 = sld [smem:[#allocation17_spill]]  ;;  %s7586_s15 = sld [smem:[#allocation16_spill]] }
0x1df8   : > { %s7587_s26 = sld [smem:[#allocation18_spill]]  ;;  %s7588_s2 = smov %s6012_s25 }
0x1dfd   : > { %p34_p9 = scmp.ge.s32.totalorder %s7585_s27, 4   ;;  %s7589_s25 = smov %s7586_s15 }
0x1dff   :  { %36 = sbr.rel (!%p34_p9) target bundleno = 28 (0x1c), region = 172 }
0x1e06   :  { %4450 = vsyncpa [#allocation3], 1 }
0x1e07   :  { %4452 = vsyncpa [#allocation3 + $0x1], 1 }
0x1e08   :  { %4453 = vsyncpa [#allocation4], 1 }
0x1e09   :  { %4455 = vsyncpa [#allocation4 + $0x1], 1 }
0x1e0a   :  { %4456 = vsyncpa [#allocation6], 1 }
0x1e0b   :  { %4457 = vsyncpa [#allocation9], 1 }

</bundles_post_ra>
